<compile_context>
chip_gen: v7x
topology: tpu7x:2x2x1
jax: 0.10.0
libtpu: 0.0.40
codegen_flags: <defaults>
</compile_context>

<pallas_src>
import functools

import jax
import jax.numpy as jnp
from jax.experimental import pallas as pl
from jax.experimental.pallas import tpu as pltpu


# --------------------------- in-kernel math helpers ---------------------------

def _layernorm(x, gamma, beta, eps=1e-5):
    # PyTorch LayerNorm: biased variance over last dim, computed in float32.
    x = x.astype(jnp.float32)
    mu = jnp.mean(x, axis=-1, keepdims=True)
    var = jnp.mean(jnp.square(x - mu), axis=-1, keepdims=True)
    return (x - mu) * jax.lax.rsqrt(var + eps) * gamma + beta


def _erf(x):
    # Abramowitz & Stegun 7.1.26 rational approximation (|err| <= 1.5e-7),
    # built only from exp + elementwise arithmetic (robust Mosaic lowering).
    p = jnp.float32(0.3275911)
    a1 = jnp.float32(0.254829592)
    a2 = jnp.float32(-0.284496736)
    a3 = jnp.float32(1.421413741)
    a4 = jnp.float32(-1.453152027)
    a5 = jnp.float32(1.061405429)
    sgn = jnp.where(x >= 0, jnp.float32(1.0), jnp.float32(-1.0))
    ax = jnp.abs(x)
    t = 1.0 / (1.0 + p * ax)
    poly = ((((a5 * t + a4) * t + a3) * t + a2) * t + a1) * t
    return sgn * (1.0 - poly * jnp.exp(-ax * ax))


def _gelu_exact(x):
    # nn.GELU() default = exact (erf) gelu.
    return 0.5 * x * (1.0 + _erf(x * jnp.float32(0.7071067811865476)))


def _mha(h_q, h_kv, wq, bq, wk, wv, bv, wo, bo, n_head, causal, ctx_buf):
    """Whisper MultiHeadAttention over a block of Bt batch rows.

    h_q  : (Bt, T, D) bf16  post-LN query input
    h_kv : (Bt, S, D) bf16  key/value input (== h_q for self-attention)

    The dh**-0.25 scale is pre-folded into wq/bq and wk.  QKV / output
    projections run batch-blocked with M = Bt*T; per-head contexts are written
    into the ctx_buf VMEM scratch so the output projection is a single full-K
    matmul.  Softmax is per (batch, head) in float32.
    """
    Bt, T, D = h_q.shape
    S = h_kv.shape[1]
    dh = D // n_head

    q2 = jnp.dot(h_q.reshape(Bt * T, D), wq,
                 preferred_element_type=jnp.float32) + bq
    kv2 = h_kv.reshape(Bt * S, D)
    k2 = jnp.dot(kv2, wk, preferred_element_type=jnp.float32)     # key: no bias
    v2 = jnp.dot(kv2, wv, preferred_element_type=jnp.float32) + bv

    q = q2.astype(jnp.bfloat16).reshape(Bt, T, D)
    k = k2.astype(jnp.bfloat16).reshape(Bt, S, D)
    v = v2.astype(jnp.bfloat16).reshape(Bt, S, D)

    if causal:
        row = jax.lax.broadcasted_iota(jnp.int32, (T, S), 0)
        col = jax.lax.broadcasted_iota(jnp.int32, (T, S), 1)
        neg = jnp.where(col > row, jnp.float32(-1e30), jnp.float32(0.0))

    # TODO(synk): for dh < 128 these lane slices are not 128-aligned; a
    # sublane-major head layout (or two heads per iteration) would avoid the
    # XLU lane shuffles at large n_head.
    for h in range(n_head):
        lo = h * dh
        qh = q[:, :, lo:lo + dh]                               # (Bt, T, dh)
        kh = k[:, :, lo:lo + dh]                               # (Bt, S, dh)
        vh = v[:, :, lo:lo + dh]
        logits = jnp.einsum("btd,bsd->bts", qh, kh,
                            preferred_element_type=jnp.float32)  # (Bt, T, S)
        if causal:
            logits = logits + neg
        logits = logits - jnp.max(logits, axis=-1, keepdims=True)
        p = jnp.exp(logits)
        p = p * pl.reciprocal(jnp.sum(p, axis=-1, keepdims=True), approx=True)
        ctx = jnp.einsum("bts,bsd->btd", p.astype(jnp.bfloat16), vh,
                         preferred_element_type=jnp.float32)     # (Bt, T, dh)
        ctx_buf[:, :, lo:lo + dh] = ctx.astype(jnp.bfloat16)

    out = jnp.dot(ctx_buf[...].reshape(Bt * T, D), wo,
                  preferred_element_type=jnp.float32) + bo
    return out.reshape(Bt, T, D)


# ------------------------------- Pallas kernel --------------------------------

def _decoder_kernel(n_head,
                    x_ref, xa_ref,
                    aln_g, aln_b, a_wq, a_bq, a_wk, a_wv, a_bv, a_wo, a_bo,
                    cln_g, cln_b, c_wq, c_bq, c_wk, c_wv, c_bv, c_wo, c_bo,
                    mln_g, mln_b, m_w1, m_b1, m_w2, m_b2,
                    fln_g, fln_b,
                    out_ref,
                    x_res, h_in, ctx_buf):
    l = pl.program_id(1)
    ht = pl.program_id(2)
    n_layer = pl.num_programs(1)
    n_ht = pl.num_programs(2)

    # Load the embedded tokens into the resident activation at the very first
    # step of each batch block.
    @pl.when(jnp.logical_and(l == 0, ht == 0))
    def _():
        x_res[...] = x_ref[...].astype(jnp.float32)

    # Attention phases + MLP layernorm run once per layer (first hidden tile).
    @pl.when(ht == 0)
    def _():
        x = x_res[...]                                     # (Bt, T, D) f32

        # x = x + self_attn(attn_ln(x))  with causal mask
        h = _layernorm(x, aln_g[0], aln_b[0]).astype(jnp.bfloat16)
        x = x + _mha(h, h, a_wq[0], a_bq[0], a_wk[0], a_wv[0], a_bv[0],
                     a_wo[0], a_bo[0], n_head, True, ctx_buf)

        # x = x + cross_attn(cross_attn_ln(x), xa)
        # TODO(synk): precompute per-layer cross K/V of xa outside this kernel
        # (prerequisite for the kv_cache incremental-decode path).
        h = _layernorm(x, cln_g[0], cln_b[0]).astype(jnp.bfloat16)
        x = x + _mha(h, xa_ref[...], c_wq[0], c_bq[0], c_wk[0], c_wv[0],
                     c_bv[0], c_wo[0], c_bo[0], n_head, False, ctx_buf)

        # MLP input; its hidden dim (4*D) is tiled over grid axis 2.
        h_in[...] = _layernorm(x, mln_g[0], mln_b[0]).astype(
            jnp.bfloat16).reshape(h_in.shape)
        x_res[...] = x + m_b2[0]            # MLP output bias added once/layer

    # One MLP hidden tile:  x += gelu(h_in @ w1_tile + b1_tile) @ w2_tile
    hmid = _gelu_exact(jnp.dot(h_in[...], m_w1[0],
                               preferred_element_type=jnp.float32) + m_b1[0])
    x_res[...] += jnp.dot(hmid.astype(jnp.bfloat16), m_w2[0],
                          preferred_element_type=jnp.float32).reshape(x_res.shape)

    # Fused final LayerNorm, written once per batch block.
    @pl.when(jnp.logical_and(l == n_layer - 1, ht == n_ht - 1))
    def _():
        out_ref[...] = _layernorm(x_res[...], fln_g[...],
                                  fln_b[...]).astype(out_ref.dtype)


# --------------------------------- wrappers ------------------------------------

_STACKED_PARAM_ORDER = (
    "attn_ln_g", "attn_ln_b",
    "attn_wq", "attn_bq", "attn_wk", "attn_wv", "attn_bv", "attn_wo", "attn_bo",
    "cross_ln_g", "cross_ln_b",
    "cross_wq", "cross_bq", "cross_wk", "cross_wv", "cross_bv", "cross_wo", "cross_bo",
    "mlp_ln_g", "mlp_ln_b",
    "mlp_w1", "mlp_b1", "mlp_w2", "mlp_b2",
)


def _pick_batch_block(B, max_block=4):
    # Larger Bt => weights streamed fewer times and better MXU M fill, at the
    # cost of fewer parallel (megacore) batch blocks and a bigger xa block.
    bb = min(B, max_block)
    while B % bb:
        bb -= 1
    return bb


def _pick_hidden_block(d_mlp, target=2048):
    # Largest lane-aligned tile <= target that divides the MLP hidden dim.
    # Tiling mlp_w1/mlp_w2 keeps the per-step weight block small enough for
    # v7x's 64 MiB VMEM while preserving full-K matmuls.
    if d_mlp <= target or d_mlp % 128 != 0:
        return d_mlp
    best = 128
    for th in range(128, target + 1, 128):
        if d_mlp % th == 0:
            best = th
    return best


def _physical_vmem_bytes():
    try:
        return int(pltpu.get_tpu_info().vmem_capacity_bytes)
    except Exception:
        return 64 * 1024 * 1024        # conservative (v7x per-core VMEM)


def _vmem_limit_bytes(Bt, T, Ta, D, TH, out_itemsize):
    bf16, f32 = 2, 4
    weights = (8 * D * D + 2 * D * TH) * bf16 + (16 * D + 2 * TH) * f32
    io = (Bt * T * D) * bf16 + (Bt * Ta * D) * bf16 + (Bt * T * D) * out_itemsize
    dbuf = 2 * (weights + io)                        # double-buffered blocks
    scratch = Bt * T * D * (f32 + 2 * bf16)
    S = max(T, Ta)
    temps = (3 * Bt * S * D) * (f32 + bf16) + 2 * Bt * T * S * f32 \
        + 4 * Bt * T * D * f32 + Bt * T * TH * (f32 + bf16)
    est = dbuf + scratch + temps
    cap = int(0.85 * _physical_vmem_bytes())         # headroom below physical
    return int(min(max(int(1.5 * est), 32 * 1024 * 1024), cap))


def decoder_stack(x, xa, params, n_head, batch_block=None, hidden_block=None):
    B, T, D = x.shape
    Ta = xa.shape[1]
    L = params["attn_wq"].shape[0]
    D_mlp = params["mlp_w1"].shape[-1]
    assert D % n_head == 0

    Bt = _pick_batch_block(B) if batch_block is None else batch_block
    assert B % Bt == 0
    TH = _pick_hidden_block(D_mlp) if hidden_block is None else hidden_block
    assert D_mlp % TH == 0
    NH = D_mlp // TH

    out_dtype = xa.dtype
    x = x.astype(jnp.bfloat16)
    xa = xa.astype(jnp.bfloat16)

    stacked = [params[name] for name in _STACKED_PARAM_ORDER]

    def layer_spec(shape):
        # (L, a, b) -> one layer slice per grid step along the layer axis.
        return pl.BlockSpec((1,) + tuple(shape[1:]), lambda b, l, h: (l, 0, 0))

    spec_overrides = {
        "mlp_w1": pl.BlockSpec((1, D, TH), lambda b, l, h: (l, 0, h)),
        "mlp_b1": pl.BlockSpec((1, 1, TH), lambda b, l, h: (l, 0, h)),
        "mlp_w2": pl.BlockSpec((1, TH, D), lambda b, l, h: (l, h, 0)),
    }
    weight_specs = [spec_overrides.get(name, layer_spec(params[name].shape))
                    for name in _STACKED_PARAM_ORDER]

    in_specs = (
        [pl.BlockSpec((Bt, T, D), lambda b, l, h: (b, 0, 0)),    # x (read at l==0)
         pl.BlockSpec((Bt, Ta, D), lambda b, l, h: (b, 0, 0))]   # xa
        + weight_specs
        + [pl.BlockSpec((1, D), lambda b, l, h: (0, 0)),         # final LN gamma
           pl.BlockSpec((1, D), lambda b, l, h: (0, 0))]         # final LN beta
    )

    return pl.pallas_call(
        functools.partial(_decoder_kernel, n_head),
        out_shape=jax.ShapeDtypeStruct((B, T, D), out_dtype),
        grid=(B // Bt, L, NH),
        in_specs=in_specs,
        out_specs=pl.BlockSpec((Bt, T, D), lambda b, l, h: (b, 0, 0)),
        scratch_shapes=[pltpu.VMEM((Bt, T, D), jnp.float32),     # resident x
                        pltpu.VMEM((Bt * T, D), jnp.bfloat16),   # MLP input
                        pltpu.VMEM((Bt, T, D), jnp.bfloat16)],   # per-head ctx
        compiler_params=pltpu.CompilerParams(
            dimension_semantics=("parallel", "arbitrary", "arbitrary"),
            vmem_limit_bytes=_vmem_limit_bytes(
                Bt, T, Ta, D, TH, jnp.dtype(out_dtype).itemsize)),
    )(x, xa, *stacked, params["ln_g"], params["ln_b"])


def decoder_forward(tokens, xa, params, n_head):
    """Decoder.forward(x, xa, kv_cache=None)."""
    # TODO(synk): kv_cache incremental decoding (offset > 0) is not implemented.
    T = tokens.shape[-1]
    # Embedding gather + positional add are cheap glue; keep them in plain JAX.
    x = params["token_embedding"][tokens] + params["positional_embedding"][:T]
    return decoder_stack(x, xa, params, n_head)


# ----------------------------- parameter init ----------------------------------

def init_params(key, n_vocab, n_ctx, n_state, n_head, n_layer):
    keys = iter(jax.random.split(key, 64))
    D, L = n_state, n_layer
    scale = jnp.float32((D // n_head) ** -0.25)

    def nrm(shape, s=0.02):
        return (s * jax.random.normal(next(keys), shape)).astype(jnp.float32)

    p = {
        "token_embedding": nrm((n_vocab, D), 1.0),
        "positional_embedding": nrm((n_ctx, D), 1.0),
        "ln_g": jnp.ones((1, D), jnp.float32),
        "ln_b": jnp.zeros((1, D), jnp.float32),
    }

    def add_ln(prefix):
        p[prefix + "_g"] = jnp.ones((L, 1, D), jnp.float32)
        p[prefix + "_b"] = jnp.zeros((L, 1, D), jnp.float32)

    def add_attn(prefix):
        # The dh**-0.25 attention scale is folded into wq/bq and wk here
        # (numerically equivalent to scaling q and k in-kernel).  Matrices are
        # stored in bf16 (MXU inputs), biases in f32.
        p[prefix + "_wq"] = (nrm((L, D, D)) * scale).astype(jnp.bfloat16)
        p[prefix + "_bq"] = nrm((L, 1, D)) * scale
        p[prefix + "_wk"] = (nrm((L, D, D)) * scale).astype(jnp.bfloat16)  # no bias
        p[prefix + "_wv"] = nrm((L, D, D)).astype(jnp.bfloat16)
        p[prefix + "_bv"] = nrm((L, 1, D))
        p[prefix + "_wo"] = nrm((L, D, D)).astype(jnp.bfloat16)
        p[prefix + "_bo"] = nrm((L, 1, D))

    add_ln("attn_ln");  add_attn("attn")
    add_ln("cross_ln"); add_attn("cross")
    add_ln("mlp_ln")
    p["mlp_w1"] = nrm((L, D, 4 * D)).astype(jnp.bfloat16)
    p["mlp_b1"] = nrm((L, 1, 4 * D))
    p["mlp_w2"] = nrm((L, 4 * D, D)).astype(jnp.bfloat16)
    p["mlp_b2"] = nrm((L, 1, D))
    return p


# ------------------------------------ demo --------------------------------------

if __name__ == "__main__":
    # Small but lane-aligned shapes (D multiple of 128).
    n_vocab, n_ctx, n_state, n_head, n_layer = 100, 16, 128, 4, 2
    B, T, n_audio_ctx = 2, 8, 16

    key = jax.random.PRNGKey(0)
    pkey, tkey, akey = jax.random.split(key, 3)

    params = init_params(pkey, n_vocab, n_ctx, n_state, n_head, n_layer)
    tokens = jax.random.randint(tkey, (B, T), 0, n_vocab, dtype=jnp.int32)
    xa = jax.random.normal(akey, (B, n_audio_ctx, n_state), dtype=jnp.float32)

    fwd = jax.jit(functools.partial(decoder_forward, n_head=n_head))
    out = jax.block_until_ready(fwd(tokens, xa, params))
    assert out.shape == (B, T, n_state)
    assert bool(jnp.all(jnp.isfinite(out)))
    print("KERNEL_OK")
</pallas_src>

<mosaic_0001>
module attributes {stable_mosaic.version = 11 : i64} {
  func.func @_decoder_kernel(%arg0: i32, %arg1: i32, %arg2: i32, %arg3: memref<2x8x128xbf16, #tpu.memory_space<vmem>>, %arg4: memref<2x16x128xbf16, #tpu.memory_space<vmem>>, %arg5: memref<1x1x128xf32, #tpu.memory_space<vmem>>, %arg6: memref<1x1x128xf32, #tpu.memory_space<vmem>>, %arg7: memref<1x128x128xbf16, #tpu.memory_space<vmem>>, %arg8: memref<1x1x128xf32, #tpu.memory_space<vmem>>, %arg9: memref<1x128x128xbf16, #tpu.memory_space<vmem>>, %arg10: memref<1x128x128xbf16, #tpu.memory_space<vmem>>, %arg11: memref<1x1x128xf32, #tpu.memory_space<vmem>>, %arg12: memref<1x128x128xbf16, #tpu.memory_space<vmem>>, %arg13: memref<1x1x128xf32, #tpu.memory_space<vmem>>, %arg14: memref<1x1x128xf32, #tpu.memory_space<vmem>>, %arg15: memref<1x1x128xf32, #tpu.memory_space<vmem>>, %arg16: memref<1x128x128xbf16, #tpu.memory_space<vmem>>, %arg17: memref<1x1x128xf32, #tpu.memory_space<vmem>>, %arg18: memref<1x128x128xbf16, #tpu.memory_space<vmem>>, %arg19: memref<1x128x128xbf16, #tpu.memory_space<vmem>>, %arg20: memref<1x1x128xf32, #tpu.memory_space<vmem>>, %arg21: memref<1x128x128xbf16, #tpu.memory_space<vmem>>, %arg22: memref<1x1x128xf32, #tpu.memory_space<vmem>>, %arg23: memref<1x1x128xf32, #tpu.memory_space<vmem>>, %arg24: memref<1x1x128xf32, #tpu.memory_space<vmem>>, %arg25: memref<1x128x512xbf16, #tpu.memory_space<vmem>>, %arg26: memref<1x1x512xf32, #tpu.memory_space<vmem>>, %arg27: memref<1x512x128xbf16, #tpu.memory_space<vmem>>, %arg28: memref<1x1x128xf32, #tpu.memory_space<vmem>>, %arg29: memref<1x128xf32, #tpu.memory_space<vmem>>, %arg30: memref<1x128xf32, #tpu.memory_space<vmem>>, %arg31: memref<2x8x128xf32, #tpu.memory_space<vmem>>, %arg32: memref<2x8x128xf32, #tpu.memory_space<vmem>>, %arg33: memref<16x128xbf16, #tpu.memory_space<vmem>>, %arg34: memref<2x8x128xbf16, #tpu.memory_space<vmem>>) attributes {dimension_semantics = [#tpu.dimension_semantics<parallel>, #tpu.dimension_semantics<arbitrary>, #tpu.dimension_semantics<arbitrary>], iteration_bounds = array<i64: 1, 2, 1>, scalar_prefetch = 0 : i64, scratch_operands = 3 : i64, tpu.core_type = #tpu.core_type<tc>, window_params = [{transform_indices = @transform_0, window_bounds = array<i64: 2, 8, 128>}, {transform_indices = @transform_1, window_bounds = array<i64: 2, 16, 128>}, {transform_indices = @transform_2, window_bounds = array<i64: 1, 1, 128>}, {transform_indices = @transform_3, window_bounds = array<i64: 1, 1, 128>}, {transform_indices = @transform_4, window_bounds = array<i64: 1, 128, 128>}, {transform_indices = @transform_5, window_bounds = array<i64: 1, 1, 128>}, {transform_indices = @transform_6, window_bounds = array<i64: 1, 128, 128>}, {transform_indices = @transform_7, window_bounds = array<i64: 1, 128, 128>}, {transform_indices = @transform_8, window_bounds = array<i64: 1, 1, 128>}, {transform_indices = @transform_9, window_bounds = array<i64: 1, 128, 128>}, {transform_indices = @transform_10, window_bounds = array<i64: 1, 1, 128>}, {transform_indices = @transform_11, window_bounds = array<i64: 1, 1, 128>}, {transform_indices = @transform_12, window_bounds = array<i64: 1, 1, 128>}, {transform_indices = @transform_13, window_bounds = array<i64: 1, 128, 128>}, {transform_indices = @transform_14, window_bounds = array<i64: 1, 1, 128>}, {transform_indices = @transform_15, window_bounds = array<i64: 1, 128, 128>}, {transform_indices = @transform_16, window_bounds = array<i64: 1, 128, 128>}, {transform_indices = @transform_17, window_bounds = array<i64: 1, 1, 128>}, {transform_indices = @transform_18, window_bounds = array<i64: 1, 128, 128>}, {transform_indices = @transform_19, window_bounds = array<i64: 1, 1, 128>}, {transform_indices = @transform_20, window_bounds = array<i64: 1, 1, 128>}, {transform_indices = @transform_21, window_bounds = array<i64: 1, 1, 128>}, {transform_indices = @transform_22, window_bounds = array<i64: 1, 128, 512>}, {transform_indices = @transform_23, window_bounds = array<i64: 1, 1, 512>}, {transform_indices = @transform_24, window_bounds = array<i64: 1, 512, 128>}, {transform_indices = @transform_25, window_bounds = array<i64: 1, 1, 128>}, {pipeline_mode = #tpu.pipeline_mode<synchronous>, transform_indices = @transform_26, window_bounds = array<i64: 1, 128>}, {pipeline_mode = #tpu.pipeline_mode<synchronous>, transform_indices = @transform_27, window_bounds = array<i64: 1, 128>}, {transform_indices = @transform_28, window_bounds = array<i64: 2, 8, 128>}]} {
    %c0_i32 = arith.constant 0 : i32
    %0 = arith.cmpi eq, %arg1, %c0_i32 : i32
    %c0_i32_0 = arith.constant 0 : i32
    %1 = arith.cmpi eq, %arg2, %c0_i32_0 : i32
    %2 = arith.andi %0, %1 : i1
    %3 = arith.extui %2 : i1 to i32
    %c0_i32_1 = arith.constant 0 : i32
    %4 = arith.cmpi ne, %3, %c0_i32_1 : i32
    scf.if %4 {
      %c0_39 = arith.constant 0 : index
      %c0_40 = arith.constant 0 : index
      %c0_41 = arith.constant 0 : index
      %70 = vector.load %arg3[%c0_39, %c0_40, %c0_41] : memref<2x8x128xbf16, #tpu.memory_space<vmem>>, vector<2x8x128xbf16>
      %71 = arith.extf %70 : vector<2x8x128xbf16> to vector<2x8x128xf32>
      %c0_42 = arith.constant 0 : index
      %c0_43 = arith.constant 0 : index
      %c0_44 = arith.constant 0 : index
      %72 = vector.load %arg32[%c0_42, %c0_43, %c0_44] : memref<2x8x128xf32, #tpu.memory_space<vmem>>, vector<2x8x128xf32>
      tpu.vector_store %arg32[%c0_42, %c0_43, %c0_44], %71 {strides = array<i32>} : memref<2x8x128xf32, #tpu.memory_space<vmem>>, vector<2x8x128xf32>,
    } else {
    }
    %c0_i32_2 = arith.constant 0 : i32
    %5 = arith.cmpi eq, %arg2, %c0_i32_2 : i32
    %6 = arith.extui %5 : i1 to i32
    %c0_i32_3 = arith.constant 0 : i32
    %7 = arith.cmpi ne, %6, %c0_i32_3 : i32
    scf.if %7 {
      %c0_39 = arith.constant 0 : index
      %c0_40 = arith.constant 0 : index
      %c0_41 = arith.constant 0 : index
      %70 = vector.load %arg32[%c0_39, %c0_40, %c0_41] : memref<2x8x128xf32, #tpu.memory_space<vmem>>, vector<2x8x128xf32>
      %c0_42 = arith.constant 0 : index
      %c0_43 = arith.constant 0 : index
      %c0_44 = arith.constant 0 : index
      %71 = vector.load %arg5[%c0_42, %c0_43, %c0_44] : memref<1x1x128xf32, #tpu.memory_space<vmem>>, vector<1x1x128xf32>
      %72 = vector.shape_cast %71 : vector<1x1x128xf32> to vector<1x128xf32>
      %c0_45 = arith.constant 0 : index
      %c0_46 = arith.constant 0 : index
      %c0_47 = arith.constant 0 : index
      %73 = vector.load %arg6[%c0_45, %c0_46, %c0_47] : memref<1x1x128xf32, #tpu.memory_space<vmem>>, vector<1x1x128xf32>
      %74 = vector.shape_cast %73 : vector<1x1x128xf32> to vector<1x128xf32>
      %cst_48 = arith.constant dense<0.000000e+00> : vector<2x8xf32>
      %75 = vector.multi_reduction <add>, %70, %cst_48 [2] : vector<2x8x128xf32> to vector<2x8xf32>
      %76 = vector.shape_cast %75 : vector<2x8xf32> to vector<2x8x1xf32>
      %cst_49 = arith.constant 1.280000e+02 : f32
      %77 = vector.broadcast %cst_49 : f32 to vector<2x8x1xf32>
      %78 = arith.divf %76, %77 : vector<2x8x1xf32>
      %79 = vector.broadcast %78 : vector<2x8x1xf32> to vector<2x8x128xf32>
      %80 = arith.subf %70, %79 : vector<2x8x128xf32>
      %81 = arith.mulf %80, %80 : vector<2x8x128xf32>
      %cst_50 = arith.constant dense<0.000000e+00> : vector<2x8xf32>
      %82 = vector.multi_reduction <add>, %81, %cst_50 [2] : vector<2x8x128xf32> to vector<2x8xf32>
      %83 = vector.shape_cast %82 : vector<2x8xf32> to vector<2x8x1xf32>
      %cst_51 = arith.constant 1.280000e+02 : f32
      %84 = vector.broadcast %cst_51 : f32 to vector<2x8x1xf32>
      %85 = arith.divf %83, %84 : vector<2x8x1xf32>
      %86 = vector.broadcast %78 : vector<2x8x1xf32> to vector<2x8x128xf32>
      %87 = arith.subf %70, %86 : vector<2x8x128xf32>
      %cst_52 = arith.constant 9.99999974E-6 : f32
      %88 = vector.broadcast %cst_52 : f32 to vector<2x8x1xf32>
      %89 = arith.addf %85, %88 : vector<2x8x1xf32>
      %90 = math.rsqrt %89 : vector<2x8x1xf32>
      %91 = vector.broadcast %90 : vector<2x8x1xf32> to vector<2x8x128xf32>
      %92 = arith.mulf %87, %91 : vector<2x8x128xf32>
      %93 = vector.shape_cast %72 : vector<1x128xf32> to vector<1x1x128xf32>
      %94 = vector.broadcast %93 : vector<1x1x128xf32> to vector<2x8x128xf32>
      %95 = arith.mulf %92, %94 : vector<2x8x128xf32>
      %96 = vector.shape_cast %74 : vector<1x128xf32> to vector<1x1x128xf32>
      %97 = vector.broadcast %96 : vector<1x1x128xf32> to vector<2x8x128xf32>
      %98 = arith.addf %95, %97 : vector<2x8x128xf32>
      %99 = arith.truncf %98 : vector<2x8x128xf32> to vector<2x8x128xbf16>
      %c0_53 = arith.constant 0 : index
      %c0_54 = arith.constant 0 : index
      %c0_55 = arith.constant 0 : index
      %100 = vector.load %arg7[%c0_53, %c0_54, %c0_55] : memref<1x128x128xbf16, #tpu.memory_space<vmem>>, vector<1x128x128xbf16>
      %101 = vector.shape_cast %100 : vector<1x128x128xbf16> to vector<128x128xbf16>
      %c0_56 = arith.constant 0 : index
      %c0_57 = arith.constant 0 : index
      %c0_58 = arith.constant 0 : index
      %102 = vector.load %arg8[%c0_56, %c0_57, %c0_58] : memref<1x1x128xf32, #tpu.memory_space<vmem>>, vector<1x1x128xf32>
      %103 = vector.shape_cast %102 : vector<1x1x128xf32> to vector<1x128xf32>
      %c0_59 = arith.constant 0 : index
      %c0_60 = arith.constant 0 : index
      %c0_61 = arith.constant 0 : index
      %104 = vector.load %arg9[%c0_59, %c0_60, %c0_61] : memref<1x128x128xbf16, #tpu.memory_space<vmem>>, vector<1x128x128xbf16>
      %105 = vector.shape_cast %104 : vector<1x128x128xbf16> to vector<128x128xbf16>
      %c0_62 = arith.constant 0 : index
      %c0_63 = arith.constant 0 : index
      %c0_64 = arith.constant 0 : index
      %106 = vector.load %arg10[%c0_62, %c0_63, %c0_64] : memref<1x128x128xbf16, #tpu.memory_space<vmem>>, vector<1x128x128xbf16>
      %107 = vector.shape_cast %106 : vector<1x128x128xbf16> to vector<128x128xbf16>
      %c0_65 = arith.constant 0 : index
      %c0_66 = arith.constant 0 : index
      %c0_67 = arith.constant 0 : index
      %108 = vector.load %arg11[%c0_65, %c0_66, %c0_67] : memref<1x1x128xf32, #tpu.memory_space<vmem>>, vector<1x1x128xf32>
      %109 = vector.shape_cast %108 : vector<1x1x128xf32> to vector<1x128xf32>
      %c0_68 = arith.constant 0 : index
      %c0_69 = arith.constant 0 : index
      %c0_70 = arith.constant 0 : index
      %110 = vector.load %arg12[%c0_68, %c0_69, %c0_70] : memref<1x128x128xbf16, #tpu.memory_space<vmem>>, vector<1x128x128xbf16>
      %111 = vector.shape_cast %110 : vector<1x128x128xbf16> to vector<128x128xbf16>
      %c0_71 = arith.constant 0 : index
      %c0_72 = arith.constant 0 : index
      %c0_73 = arith.constant 0 : index
      %112 = vector.load %arg13[%c0_71, %c0_72, %c0_73] : memref<1x1x128xf32, #tpu.memory_space<vmem>>, vector<1x1x128xf32>
      %113 = vector.shape_cast %112 : vector<1x1x128xf32> to vector<1x128xf32>
      %114 = vector.shape_cast %99 : vector<2x8x128xbf16> to vector<16x128xbf16>
      %cst_74 = arith.constant dense<0.000000e+00> : vector<16x128xf32>
      %115 = tpu.matmul %114, %101, %cst_74 {dimension_numbers = #tpu.dot_dimension_numbers<[1], [0], [0], [1], [0, 0, 1, 1], [], []>} : vector<16x128xbf16>, vector<128x128xbf16>, vector<16x128xf32> -> vector<16x128xf32>
      %116 = vector.broadcast %103 : vector<1x128xf32> to vector<16x128xf32>
      %117 = arith.addf %115, %116 : vector<16x128xf32>
      %118 = vector.shape_cast %99 : vector<2x8x128xbf16> to vector<16x128xbf16>
      %cst_75 = arith.constant dense<0.000000e+00> : vector<16x128xf32>
      %119 = tpu.matmul %118, %105, %cst_75 {dimension_numbers = #tpu.dot_dimension_numbers<[1], [0], [0], [1], [0, 0, 1, 1], [], []>} : vector<16x128xbf16>, vector<128x128xbf16>, vector<16x128xf32> -> vector<16x128xf32>
      %cst_76 = arith.constant dense<0.000000e+00> : vector<16x128xf32>
      %120 = tpu.matmul %118, %107, %cst_76 {dimension_numbers = #tpu.dot_dimension_numbers<[1], [0], [0], [1], [0, 0, 1, 1], [], []>} : vector<16x128xbf16>, vector<128x128xbf16>, vector<16x128xf32> -> vector<16x128xf32>
      %121 = vector.broadcast %109 : vector<1x128xf32> to vector<16x128xf32>
      %122 = arith.addf %120, %121 : vector<16x128xf32>
      %123 = arith.truncf %117 : vector<16x128xf32> to vector<16x128xbf16>
      %124 = vector.shape_cast %123 : vector<16x128xbf16> to vector<2x8x128xbf16>
      %125 = arith.truncf %119 : vector<16x128xf32> to vector<16x128xbf16>
      %126 = vector.shape_cast %125 : vector<16x128xbf16> to vector<2x8x128xbf16>
      %127 = arith.truncf %122 : vector<16x128xf32> to vector<16x128xbf16>
      %128 = vector.shape_cast %127 : vector<16x128xbf16> to vector<2x8x128xbf16>
      %129 = tpu.iota {dimensions = array<i32: 0>} : vector<8x8xi32>
      %130 = tpu.iota {dimensions = array<i32: 1>} : vector<8x8xi32>
      %131 = arith.cmpi sgt, %130, %129 : vector<8x8xi32>
      %cst_77 = arith.constant -1.000000e+30 : f32
      %cst_78 = arith.constant 0.000000e+00 : f32
      %132 = vector.broadcast %cst_77 : f32 to vector<8x8xf32>
      %133 = vector.broadcast %cst_78 : f32 to vector<8x8xf32>
      %134 = arith.select %131, %132, %133 : vector<8x8xi1>, vector<8x8xf32>
      %135 = vector.extract_strided_slice %124 {offsets = [0, 0, 0], sizes = [2, 8, 32], strides = [1, 1, 1]} : vector<2x8x128xbf16> to vector<2x8x32xbf16>
      %136 = vector.extract_strided_slice %126 {offsets = [0, 0, 0], sizes = [2, 8, 32], strides = [1, 1, 1]} : vector<2x8x128xbf16> to vector<2x8x32xbf16>
      %137 = vector.extract_strided_slice %128 {offsets = [0, 0, 0], sizes = [2, 8, 32], strides = [1, 1, 1]} : vector<2x8x128xbf16> to vector<2x8x32xbf16>
      "tpu.trace_start"() <{level = 10 : i32, message = "btd,bsd->bts"}> : () -> ()
      %cst_79 = arith.constant dense<0.000000e+00> : vector<2x8x8xf32>
      %138 = tpu.matmul %135, %136, %cst_79 {dimension_numbers = #tpu.dot_dimension_numbers<[2], [2], [1], [1], [0, 0, 0, 1, 1, 1], [0], [0]>} : vector<2x8x32xbf16>, vector<2x8x32xbf16>, vector<2x8x8xf32> -> vector<2x8x8xf32>
      "tpu.trace_stop"() : () -> ()
      %139 = vector.shape_cast %134 : vector<8x8xf32> to vector<1x8x8xf32>
      %140 = vector.broadcast %139 : vector<1x8x8xf32> to vector<2x8x8xf32>
      %141 = arith.addf %138, %140 : vector<2x8x8xf32>
      %cst_80 = arith.constant dense<0xFF800000> : vector<2x8xf32>
      %142 = vector.multi_reduction <maximumf>, %141, %cst_80 [2] : vector<2x8x8xf32> to vector<2x8xf32>
      %143 = vector.shape_cast %142 : vector<2x8xf32> to vector<2x8x1xf32>
      %144 = vector.broadcast %143 : vector<2x8x1xf32> to vector<2x8x8xf32>
      %145 = arith.subf %141, %144 : vector<2x8x8xf32>
      %146 = math.exp %145 : vector<2x8x8xf32>
      %cst_81 = arith.constant dense<0.000000e+00> : vector<2x8xf32>
      %147 = vector.multi_reduction <add>, %146, %cst_81 [2] : vector<2x8x8xf32> to vector<2x8xf32>
      %148 = vector.shape_cast %147 : vector<2x8xf32> to vector<2x8x1xf32>
      %149 = tpu.reciprocal %148 {approx = true} : vector<2x8x1xf32> -> vector<2x8x1xf32>
      %150 = vector.broadcast %149 : vector<2x8x1xf32> to vector<2x8x8xf32>
      %151 = arith.mulf %146, %150 : vector<2x8x8xf32>
      %152 = arith.truncf %151 : vector<2x8x8xf32> to vector<2x8x8xbf16>
      "tpu.trace_start"() <{level = 10 : i32, message = "bts,bsd->btd"}> : () -> ()
      %cst_82 = arith.constant dense<0.000000e+00> : vector<2x8x32xf32>
      %153 = tpu.matmul %152, %137, %cst_82 {dimension_numbers = #tpu.dot_dimension_numbers<[2], [1], [1], [2], [0, 0, 0, 1, 1, 2], [0], [0]>} : vector<2x8x8xbf16>, vector<2x8x32xbf16>, vector<2x8x32xf32> -> vector<2x8x32xf32>
      "tpu.trace_stop"() : () -> ()
      %154 = arith.truncf %153 : vector<2x8x32xf32> to vector<2x8x32xbf16>
      %c0_83 = arith.constant 0 : index
      %c0_84 = arith.constant 0 : index
      %c0_85 = arith.constant 0 : index
      %155 = vector.load %arg34[%c0_83, %c0_84, %c0_85] : memref<2x8x128xbf16, #tpu.memory_space<vmem>>, vector<2x8x32xbf16>
      tpu.vector_store %arg34[%c0_83, %c0_84, %c0_85], %154 {strides = array<i32>} : memref<2x8x128xbf16, #tpu.memory_space<vmem>>, vector<2x8x32xbf16>,
      %156 = vector.extract_strided_slice %124 {offsets = [0, 0, 32], sizes = [2, 8, 32], strides = [1, 1, 1]} : vector<2x8x128xbf16> to vector<2x8x32xbf16>
      %157 = vector.extract_strided_slice %126 {offsets = [0, 0, 32], sizes = [2, 8, 32], strides = [1, 1, 1]} : vector<2x8x128xbf16> to vector<2x8x32xbf16>
      %158 = vector.extract_strided_slice %128 {offsets = [0, 0, 32], sizes = [2, 8, 32], strides = [1, 1, 1]} : vector<2x8x128xbf16> to vector<2x8x32xbf16>
      "tpu.trace_start"() <{level = 10 : i32, message = "btd,bsd->bts"}> : () -> ()
      %cst_86 = arith.constant dense<0.000000e+00> : vector<2x8x8xf32>
      %159 = tpu.matmul %156, %157, %cst_86 {dimension_numbers = #tpu.dot_dimension_numbers<[2], [2], [1], [1], [0, 0, 0, 1, 1, 1], [0], [0]>} : vector<2x8x32xbf16>, vector<2x8x32xbf16>, vector<2x8x8xf32> -> vector<2x8x8xf32>
      "tpu.trace_stop"() : () -> ()
      %160 = vector.shape_cast %134 : vector<8x8xf32> to vector<1x8x8xf32>
      %161 = vector.broadcast %160 : vector<1x8x8xf32> to vector<2x8x8xf32>
      %162 = arith.addf %159, %161 : vector<2x8x8xf32>
      %cst_87 = arith.constant dense<0xFF800000> : vector<2x8xf32>
      %163 = vector.multi_reduction <maximumf>, %162, %cst_87 [2] : vector<2x8x8xf32> to vector<2x8xf32>
      %164 = vector.shape_cast %163 : vector<2x8xf32> to vector<2x8x1xf32>
      %165 = vector.broadcast %164 : vector<2x8x1xf32> to vector<2x8x8xf32>
      %166 = arith.subf %162, %165 : vector<2x8x8xf32>
      %167 = math.exp %166 : vector<2x8x8xf32>
      %cst_88 = arith.constant dense<0.000000e+00> : vector<2x8xf32>
      %168 = vector.multi_reduction <add>, %167, %cst_88 [2] : vector<2x8x8xf32> to vector<2x8xf32>
      %169 = vector.shape_cast %168 : vector<2x8xf32> to vector<2x8x1xf32>
      %170 = tpu.reciprocal %169 {approx = true} : vector<2x8x1xf32> -> vector<2x8x1xf32>
      %171 = vector.broadcast %170 : vector<2x8x1xf32> to vector<2x8x8xf32>
      %172 = arith.mulf %167, %171 : vector<2x8x8xf32>
      %173 = arith.truncf %172 : vector<2x8x8xf32> to vector<2x8x8xbf16>
      "tpu.trace_start"() <{level = 10 : i32, message = "bts,bsd->btd"}> : () -> ()
      %cst_89 = arith.constant dense<0.000000e+00> : vector<2x8x32xf32>
      %174 = tpu.matmul %173, %158, %cst_89 {dimension_numbers = #tpu.dot_dimension_numbers<[2], [1], [1], [2], [0, 0, 0, 1, 1, 2], [0], [0]>} : vector<2x8x8xbf16>, vector<2x8x32xbf16>, vector<2x8x32xf32> -> vector<2x8x32xf32>
      "tpu.trace_stop"() : () -> ()
      %175 = arith.truncf %174 : vector<2x8x32xf32> to vector<2x8x32xbf16>
      %c0_90 = arith.constant 0 : index
      %c0_91 = arith.constant 0 : index
      %c32 = arith.constant 32 : index
      %176 = vector.load %arg34[%c0_90, %c0_91, %c32] : memref<2x8x128xbf16, #tpu.memory_space<vmem>>, vector<2x8x32xbf16>
      tpu.vector_store %arg34[%c0_90, %c0_91, %c32], %175 {strides = array<i32>} : memref<2x8x128xbf16, #tpu.memory_space<vmem>>, vector<2x8x32xbf16>,
      %177 = vector.extract_strided_slice %124 {offsets = [0, 0, 64], sizes = [2, 8, 32], strides = [1, 1, 1]} : vector<2x8x128xbf16> to vector<2x8x32xbf16>
      %178 = vector.extract_strided_slice %126 {offsets = [0, 0, 64], sizes = [2, 8, 32], strides = [1, 1, 1]} : vector<2x8x128xbf16> to vector<2x8x32xbf16>
      %179 = vector.extract_strided_slice %128 {offsets = [0, 0, 64], sizes = [2, 8, 32], strides = [1, 1, 1]} : vector<2x8x128xbf16> to vector<2x8x32xbf16>
      "tpu.trace_start"() <{level = 10 : i32, message = "btd,bsd->bts"}> : () -> ()
      %cst_92 = arith.constant dense<0.000000e+00> : vector<2x8x8xf32>
      %180 = tpu.matmul %177, %178, %cst_92 {dimension_numbers = #tpu.dot_dimension_numbers<[2], [2], [1], [1], [0, 0, 0, 1, 1, 1], [0], [0]>} : vector<2x8x32xbf16>, vector<2x8x32xbf16>, vector<2x8x8xf32> -> vector<2x8x8xf32>
      "tpu.trace_stop"() : () -> ()
      %181 = vector.shape_cast %134 : vector<8x8xf32> to vector<1x8x8xf32>
      %182 = vector.broadcast %181 : vector<1x8x8xf32> to vector<2x8x8xf32>
      %183 = arith.addf %180, %182 : vector<2x8x8xf32>
      %cst_93 = arith.constant dense<0xFF800000> : vector<2x8xf32>
      %184 = vector.multi_reduction <maximumf>, %183, %cst_93 [2] : vector<2x8x8xf32> to vector<2x8xf32>
      %185 = vector.shape_cast %184 : vector<2x8xf32> to vector<2x8x1xf32>
      %186 = vector.broadcast %185 : vector<2x8x1xf32> to vector<2x8x8xf32>
      %187 = arith.subf %183, %186 : vector<2x8x8xf32>
      %188 = math.exp %187 : vector<2x8x8xf32>
      %cst_94 = arith.constant dense<0.000000e+00> : vector<2x8xf32>
      %189 = vector.multi_reduction <add>, %188, %cst_94 [2] : vector<2x8x8xf32> to vector<2x8xf32>
      %190 = vector.shape_cast %189 : vector<2x8xf32> to vector<2x8x1xf32>
      %191 = tpu.reciprocal %190 {approx = true} : vector<2x8x1xf32> -> vector<2x8x1xf32>
      %192 = vector.broadcast %191 : vector<2x8x1xf32> to vector<2x8x8xf32>
      %193 = arith.mulf %188, %192 : vector<2x8x8xf32>
      %194 = arith.truncf %193 : vector<2x8x8xf32> to vector<2x8x8xbf16>
      "tpu.trace_start"() <{level = 10 : i32, message = "bts,bsd->btd"}> : () -> ()
      %cst_95 = arith.constant dense<0.000000e+00> : vector<2x8x32xf32>
      %195 = tpu.matmul %194, %179, %cst_95 {dimension_numbers = #tpu.dot_dimension_numbers<[2], [1], [1], [2], [0, 0, 0, 1, 1, 2], [0], [0]>} : vector<2x8x8xbf16>, vector<2x8x32xbf16>, vector<2x8x32xf32> -> vector<2x8x32xf32>
      "tpu.trace_stop"() : () -> ()
      %196 = arith.truncf %195 : vector<2x8x32xf32> to vector<2x8x32xbf16>
      %c0_96 = arith.constant 0 : index
      %c0_97 = arith.constant 0 : index
      %c64 = arith.constant 64 : index
      %197 = vector.load %arg34[%c0_96, %c0_97, %c64] : memref<2x8x128xbf16, #tpu.memory_space<vmem>>, vector<2x8x32xbf16>
      tpu.vector_store %arg34[%c0_96, %c0_97, %c64], %196 {strides = array<i32>} : memref<2x8x128xbf16, #tpu.memory_space<vmem>>, vector<2x8x32xbf16>,
      %198 = vector.extract_strided_slice %124 {offsets = [0, 0, 96], sizes = [2, 8, 32], strides = [1, 1, 1]} : vector<2x8x128xbf16> to vector<2x8x32xbf16>
      %199 = vector.extract_strided_slice %126 {offsets = [0, 0, 96], sizes = [2, 8, 32], strides = [1, 1, 1]} : vector<2x8x128xbf16> to vector<2x8x32xbf16>
      %200 = vector.extract_strided_slice %128 {offsets = [0, 0, 96], sizes = [2, 8, 32], strides = [1, 1, 1]} : vector<2x8x128xbf16> to vector<2x8x32xbf16>
      "tpu.trace_start"() <{level = 10 : i32, message = "btd,bsd->bts"}> : () -> ()
      %cst_98 = arith.constant dense<0.000000e+00> : vector<2x8x8xf32>
      %201 = tpu.matmul %198, %199, %cst_98 {dimension_numbers = #tpu.dot_dimension_numbers<[2], [2], [1], [1], [0, 0, 0, 1, 1, 1], [0], [0]>} : vector<2x8x32xbf16>, vector<2x8x32xbf16>, vector<2x8x8xf32> -> vector<2x8x8xf32>
      "tpu.trace_stop"() : () -> ()
      %202 = vector.shape_cast %134 : vector<8x8xf32> to vector<1x8x8xf32>
      %203 = vector.broadcast %202 : vector<1x8x8xf32> to vector<2x8x8xf32>
      %204 = arith.addf %201, %203 : vector<2x8x8xf32>
      %cst_99 = arith.constant dense<0xFF800000> : vector<2x8xf32>
      %205 = vector.multi_reduction <maximumf>, %204, %cst_99 [2] : vector<2x8x8xf32> to vector<2x8xf32>
      %206 = vector.shape_cast %205 : vector<2x8xf32> to vector<2x8x1xf32>
      %207 = vector.broadcast %206 : vector<2x8x1xf32> to vector<2x8x8xf32>
      %208 = arith.subf %204, %207 : vector<2x8x8xf32>
      %209 = math.exp %208 : vector<2x8x8xf32>
      %cst_100 = arith.constant dense<0.000000e+00> : vector<2x8xf32>
      %210 = vector.multi_reduction <add>, %209, %cst_100 [2] : vector<2x8x8xf32> to vector<2x8xf32>
      %211 = vector.shape_cast %210 : vector<2x8xf32> to vector<2x8x1xf32>
      %212 = tpu.reciprocal %211 {approx = true} : vector<2x8x1xf32> -> vector<2x8x1xf32>
      %213 = vector.broadcast %212 : vector<2x8x1xf32> to vector<2x8x8xf32>
      %214 = arith.mulf %209, %213 : vector<2x8x8xf32>
      %215 = arith.truncf %214 : vector<2x8x8xf32> to vector<2x8x8xbf16>
      "tpu.trace_start"() <{level = 10 : i32, message = "bts,bsd->btd"}> : () -> ()
      %cst_101 = arith.constant dense<0.000000e+00> : vector<2x8x32xf32>
      %216 = tpu.matmul %215, %200, %cst_101 {dimension_numbers = #tpu.dot_dimension_numbers<[2], [1], [1], [2], [0, 0, 0, 1, 1, 2], [0], [0]>} : vector<2x8x8xbf16>, vector<2x8x32xbf16>, vector<2x8x32xf32> -> vector<2x8x32xf32>
      "tpu.trace_stop"() : () -> ()
      %217 = arith.truncf %216 : vector<2x8x32xf32> to vector<2x8x32xbf16>
      %c0_102 = arith.constant 0 : index
      %c0_103 = arith.constant 0 : index
      %c96 = arith.constant 96 : index
      %218 = vector.load %arg34[%c0_102, %c0_103, %c96] : memref<2x8x128xbf16, #tpu.memory_space<vmem>>, vector<2x8x32xbf16>
      tpu.vector_store %arg34[%c0_102, %c0_103, %c96], %217 {strides = array<i32>} : memref<2x8x128xbf16, #tpu.memory_space<vmem>>, vector<2x8x32xbf16>,
      %c0_104 = arith.constant 0 : index
      %c0_105 = arith.constant 0 : index
      %c0_106 = arith.constant 0 : index
      %219 = vector.load %arg34[%c0_104, %c0_105, %c0_106] : memref<2x8x128xbf16, #tpu.memory_space<vmem>>, vector<2x8x128xbf16>
      %220 = vector.shape_cast %219 : vector<2x8x128xbf16> to vector<16x128xbf16>
      %cst_107 = arith.constant dense<0.000000e+00> : vector<16x128xf32>
      %221 = tpu.matmul %220, %111, %cst_107 {dimension_numbers = #tpu.dot_dimension_numbers<[1], [0], [0], [1], [0, 0, 1, 1], [], []>} : vector<16x128xbf16>, vector<128x128xbf16>, vector<16x128xf32> -> vector<16x128xf32>
      %222 = vector.broadcast %113 : vector<1x128xf32> to vector<16x128xf32>
      %223 = arith.addf %221, %222 : vector<16x128xf32>
      %224 = vector.shape_cast %223 : vector<16x128xf32> to vector<2x8x128xf32>
      %225 = arith.addf %70, %224 : vector<2x8x128xf32>
      %c0_108 = arith.constant 0 : index
      %c0_109 = arith.constant 0 : index
      %c0_110 = arith.constant 0 : index
      %226 = vector.load %arg14[%c0_108, %c0_109, %c0_110] : memref<1x1x128xf32, #tpu.memory_space<vmem>>, vector<1x1x128xf32>
      %227 = vector.shape_cast %226 : vector<1x1x128xf32> to vector<1x128xf32>
      %c0_111 = arith.constant 0 : index
      %c0_112 = arith.constant 0 : index
      %c0_113 = arith.constant 0 : index
      %228 = vector.load %arg15[%c0_111, %c0_112, %c0_113] : memref<1x1x128xf32, #tpu.memory_space<vmem>>, vector<1x1x128xf32>
      %229 = vector.shape_cast %228 : vector<1x1x128xf32> to vector<1x128xf32>
      %cst_114 = arith.constant dense<0.000000e+00> : vector<2x8xf32>
      %230 = vector.multi_reduction <add>, %225, %cst_114 [2] : vector<2x8x128xf32> to vector<2x8xf32>
      %231 = vector.shape_cast %230 : vector<2x8xf32> to vector<2x8x1xf32>
      %cst_115 = arith.constant 1.280000e+02 : f32
      %232 = vector.broadcast %cst_115 : f32 to vector<2x8x1xf32>
      %233 = arith.divf %231, %232 : vector<2x8x1xf32>
      %234 = vector.broadcast %233 : vector<2x8x1xf32> to vector<2x8x128xf32>
      %235 = arith.subf %225, %234 : vector<2x8x128xf32>
      %236 = arith.mulf %235, %235 : vector<2x8x128xf32>
      %cst_116 = arith.constant dense<0.000000e+00> : vector<2x8xf32>
      %237 = vector.multi_reduction <add>, %236, %cst_116 [2] : vector<2x8x128xf32> to vector<2x8xf32>
      %238 = vector.shape_cast %237 : vector<2x8xf32> to vector<2x8x1xf32>
      %cst_117 = arith.constant 1.280000e+02 : f32
      %239 = vector.broadcast %cst_117 : f32 to vector<2x8x1xf32>
      %240 = arith.divf %238, %239 : vector<2x8x1xf32>
      %241 = vector.broadcast %233 : vector<2x8x1xf32> to vector<2x8x128xf32>
      %242 = arith.subf %225, %241 : vector<2x8x128xf32>
      %cst_118 = arith.constant 9.99999974E-6 : f32
      %243 = vector.broadcast %cst_118 : f32 to vector<2x8x1xf32>
      %244 = arith.addf %240, %243 : vector<2x8x1xf32>
      %245 = math.rsqrt %244 : vector<2x8x1xf32>
      %246 = vector.broadcast %245 : vector<2x8x1xf32> to vector<2x8x128xf32>
      %247 = arith.mulf %242, %246 : vector<2x8x128xf32>
      %248 = vector.shape_cast %227 : vector<1x128xf32> to vector<1x1x128xf32>
      %249 = vector.broadcast %248 : vector<1x1x128xf32> to vector<2x8x128xf32>
      %250 = arith.mulf %247, %249 : vector<2x8x128xf32>
      %251 = vector.shape_cast %229 : vector<1x128xf32> to vector<1x1x128xf32>
      %252 = vector.broadcast %251 : vector<1x1x128xf32> to vector<2x8x128xf32>
      %253 = arith.addf %250, %252 : vector<2x8x128xf32>
      %254 = arith.truncf %253 : vector<2x8x128xf32> to vector<2x8x128xbf16>
      %c0_119 = arith.constant 0 : index
      %c0_120 = arith.constant 0 : index
      %c0_121 = arith.constant 0 : index
      %255 = vector.load %arg4[%c0_119, %c0_120, %c0_121] : memref<2x16x128xbf16, #tpu.memory_space<vmem>>, vector<2x16x128xbf16>
      %c0_122 = arith.constant 0 : index
      %c0_123 = arith.constant 0 : index
      %c0_124 = arith.constant 0 : index
      %256 = vector.load %arg16[%c0_122, %c0_123, %c0_124] : memref<1x128x128xbf16, #tpu.memory_space<vmem>>, vector<1x128x128xbf16>
      %257 = vector.shape_cast %256 : vector<1x128x128xbf16> to vector<128x128xbf16>
      %c0_125 = arith.constant 0 : index
      %c0_126 = arith.constant 0 : index
      %c0_127 = arith.constant 0 : index
      %258 = vector.load %arg17[%c0_125, %c0_126, %c0_127] : memref<1x1x128xf32, #tpu.memory_space<vmem>>, vector<1x1x128xf32>
      %259 = vector.shape_cast %258 : vector<1x1x128xf32> to vector<1x128xf32>
      %c0_128 = arith.constant 0 : index
      %c0_129 = arith.constant 0 : index
      %c0_130 = arith.constant 0 : index
      %260 = vector.load %arg18[%c0_128, %c0_129, %c0_130] : memref<1x128x128xbf16, #tpu.memory_space<vmem>>, vector<1x128x128xbf16>
      %261 = vector.shape_cast %260 : vector<1x128x128xbf16> to vector<128x128xbf16>
      %c0_131 = arith.constant 0 : index
      %c0_132 = arith.constant 0 : index
      %c0_133 = arith.constant 0 : index
      %262 = vector.load %arg19[%c0_131, %c0_132, %c0_133] : memref<1x128x128xbf16, #tpu.memory_space<vmem>>, vector<1x128x128xbf16>
      %263 = vector.shape_cast %262 : vector<1x128x128xbf16> to vector<128x128xbf16>
      %c0_134 = arith.constant 0 : index
      %c0_135 = arith.constant 0 : index
      %c0_136 = arith.constant 0 : index
      %264 = vector.load %arg20[%c0_134, %c0_135, %c0_136] : memref<1x1x128xf32, #tpu.memory_space<vmem>>, vector<1x1x128xf32>
      %265 = vector.shape_cast %264 : vector<1x1x128xf32> to vector<1x128xf32>
      %c0_137 = arith.constant 0 : index
      %c0_138 = arith.constant 0 : index
      %c0_139 = arith.constant 0 : index
      %266 = vector.load %arg21[%c0_137, %c0_138, %c0_139] : memref<1x128x128xbf16, #tpu.memory_space<vmem>>, vector<1x128x128xbf16>
      %267 = vector.shape_cast %266 : vector<1x128x128xbf16> to vector<128x128xbf16>
      %c0_140 = arith.constant 0 : index
      %c0_141 = arith.constant 0 : index
      %c0_142 = arith.constant 0 : index
      %268 = vector.load %arg22[%c0_140, %c0_141, %c0_142] : memref<1x1x128xf32, #tpu.memory_space<vmem>>, vector<1x1x128xf32>
      %269 = vector.shape_cast %268 : vector<1x1x128xf32> to vector<1x128xf32>
      %270 = vector.shape_cast %254 : vector<2x8x128xbf16> to vector<16x128xbf16>
      %cst_143 = arith.constant dense<0.000000e+00> : vector<16x128xf32>
      %271 = tpu.matmul %270, %257, %cst_143 {dimension_numbers = #tpu.dot_dimension_numbers<[1], [0], [0], [1], [0, 0, 1, 1], [], []>} : vector<16x128xbf16>, vector<128x128xbf16>, vector<16x128xf32> -> vector<16x128xf32>
      %272 = vector.broadcast %259 : vector<1x128xf32> to vector<16x128xf32>
      %273 = arith.addf %271, %272 : vector<16x128xf32>
      %274 = vector.shape_cast %255 : vector<2x16x128xbf16> to vector<32x128xbf16>
      %cst_144 = arith.constant dense<0.000000e+00> : vector<32x128xf32>
      %275 = tpu.matmul %274, %261, %cst_144 {dimension_numbers = #tpu.dot_dimension_numbers<[1], [0], [0], [1], [0, 0, 1, 1], [], []>} : vector<32x128xbf16>, vector<128x128xbf16>, vector<32x128xf32> -> vector<32x128xf32>
      %cst_145 = arith.constant dense<0.000000e+00> : vector<32x128xf32>
      %276 = tpu.matmul %274, %263, %cst_145 {dimension_numbers = #tpu.dot_dimension_numbers<[1], [0], [0], [1], [0, 0, 1, 1], [], []>} : vector<32x128xbf16>, vector<128x128xbf16>, vector<32x128xf32> -> vector<32x128xf32>
      %277 = vector.broadcast %265 : vector<1x128xf32> to vector<32x128xf32>
      %278 = arith.addf %276, %277 : vector<32x128xf32>
      %279 = arith.truncf %273 : vector<16x128xf32> to vector<16x128xbf16>
      %280 = vector.shape_cast %279 : vector<16x128xbf16> to vector<2x8x128xbf16>
      %281 = arith.truncf %275 : vector<32x128xf32> to vector<32x128xbf16>
      %282 = vector.shape_cast %281 : vector<32x128xbf16> to vector<2x16x128xbf16>
      %283 = arith.truncf %278 : vector<32x128xf32> to vector<32x128xbf16>
      %284 = vector.shape_cast %283 : vector<32x128xbf16> to vector<2x16x128xbf16>
      %285 = vector.extract_strided_slice %280 {offsets = [0, 0, 0], sizes = [2, 8, 32], strides = [1, 1, 1]} : vector<2x8x128xbf16> to vector<2x8x32xbf16>
      %286 = vector.extract_strided_slice %282 {offsets = [0, 0, 0], sizes = [2, 16, 32], strides = [1, 1, 1]} : vector<2x16x128xbf16> to vector<2x16x32xbf16>
      %287 = vector.extract_strided_slice %284 {offsets = [0, 0, 0], sizes = [2, 16, 32], strides = [1, 1, 1]} : vector<2x16x128xbf16> to vector<2x16x32xbf16>
      "tpu.trace_start"() <{level = 10 : i32, message = "btd,bsd->bts"}> : () -> ()
      %cst_146 = arith.constant dense<0.000000e+00> : vector<2x8x16xf32>
      %288 = tpu.matmul %285, %286, %cst_146 {dimension_numbers = #tpu.dot_dimension_numbers<[2], [2], [1], [1], [0, 0, 0, 1, 1, 1], [0], [0]>} : vector<2x8x32xbf16>, vector<2x16x32xbf16>, vector<2x8x16xf32> -> vector<2x8x16xf32>
      "tpu.trace_stop"() : () -> ()
      %cst_147 = arith.constant dense<0xFF800000> : vector<2x8xf32>
      %289 = vector.multi_reduction <maximumf>, %288, %cst_147 [2] : vector<2x8x16xf32> to vector<2x8xf32>
      %290 = vector.shape_cast %289 : vector<2x8xf32> to vector<2x8x1xf32>
      %291 = vector.broadcast %290 : vector<2x8x1xf32> to vector<2x8x16xf32>
      %292 = arith.subf %288, %291 : vector<2x8x16xf32>
      %293 = math.exp %292 : vector<2x8x16xf32>
      %cst_148 = arith.constant dense<0.000000e+00> : vector<2x8xf32>
      %294 = vector.multi_reduction <add>, %293, %cst_148 [2] : vector<2x8x16xf32> to vector<2x8xf32>
      %295 = vector.shape_cast %294 : vector<2x8xf32> to vector<2x8x1xf32>
      %296 = tpu.reciprocal %295 {approx = true} : vector<2x8x1xf32> -> vector<2x8x1xf32>
      %297 = vector.broadcast %296 : vector<2x8x1xf32> to vector<2x8x16xf32>
      %298 = arith.mulf %293, %297 : vector<2x8x16xf32>
      %299 = arith.truncf %298 : vector<2x8x16xf32> to vector<2x8x16xbf16>
      "tpu.trace_start"() <{level = 10 : i32, message = "bts,bsd->btd"}> : () -> ()
      %cst_149 = arith.constant dense<0.000000e+00> : vector<2x8x32xf32>
      %300 = tpu.matmul %299, %287, %cst_149 {dimension_numbers = #tpu.dot_dimension_numbers<[2], [1], [1], [2], [0, 0, 0, 1, 1, 2], [0], [0]>} : vector<2x8x16xbf16>, vector<2x16x32xbf16>, vector<2x8x32xf32> -> vector<2x8x32xf32>
      "tpu.trace_stop"() : () -> ()
      %301 = arith.truncf %300 : vector<2x8x32xf32> to vector<2x8x32xbf16>
      %c0_150 = arith.constant 0 : index
      %c0_151 = arith.constant 0 : index
      %c0_152 = arith.constant 0 : index
      %302 = vector.load %arg34[%c0_150, %c0_151, %c0_152] : memref<2x8x128xbf16, #tpu.memory_space<vmem>>, vector<2x8x32xbf16>
      tpu.vector_store %arg34[%c0_150, %c0_151, %c0_152], %301 {strides = array<i32>} : memref<2x8x128xbf16, #tpu.memory_space<vmem>>, vector<2x8x32xbf16>,
      %303 = vector.extract_strided_slice %280 {offsets = [0, 0, 32], sizes = [2, 8, 32], strides = [1, 1, 1]} : vector<2x8x128xbf16> to vector<2x8x32xbf16>
      %304 = vector.extract_strided_slice %282 {offsets = [0, 0, 32], sizes = [2, 16, 32], strides = [1, 1, 1]} : vector<2x16x128xbf16> to vector<2x16x32xbf16>
      %305 = vector.extract_strided_slice %284 {offsets = [0, 0, 32], sizes = [2, 16, 32], strides = [1, 1, 1]} : vector<2x16x128xbf16> to vector<2x16x32xbf16>
      "tpu.trace_start"() <{level = 10 : i32, message = "btd,bsd->bts"}> : () -> ()
      %cst_153 = arith.constant dense<0.000000e+00> : vector<2x8x16xf32>
      %306 = tpu.matmul %303, %304, %cst_153 {dimension_numbers = #tpu.dot_dimension_numbers<[2], [2], [1], [1], [0, 0, 0, 1, 1, 1], [0], [0]>} : vector<2x8x32xbf16>, vector<2x16x32xbf16>, vector<2x8x16xf32> -> vector<2x8x16xf32>
      "tpu.trace_stop"() : () -> ()
      %cst_154 = arith.constant dense<0xFF800000> : vector<2x8xf32>
      %307 = vector.multi_reduction <maximumf>, %306, %cst_154 [2] : vector<2x8x16xf32> to vector<2x8xf32>
      %308 = vector.shape_cast %307 : vector<2x8xf32> to vector<2x8x1xf32>
      %309 = vector.broadcast %308 : vector<2x8x1xf32> to vector<2x8x16xf32>
      %310 = arith.subf %306, %309 : vector<2x8x16xf32>
      %311 = math.exp %310 : vector<2x8x16xf32>
      %cst_155 = arith.constant dense<0.000000e+00> : vector<2x8xf32>
      %312 = vector.multi_reduction <add>, %311, %cst_155 [2] : vector<2x8x16xf32> to vector<2x8xf32>
      %313 = vector.shape_cast %312 : vector<2x8xf32> to vector<2x8x1xf32>
      %314 = tpu.reciprocal %313 {approx = true} : vector<2x8x1xf32> -> vector<2x8x1xf32>
      %315 = vector.broadcast %314 : vector<2x8x1xf32> to vector<2x8x16xf32>
      %316 = arith.mulf %311, %315 : vector<2x8x16xf32>
      %317 = arith.truncf %316 : vector<2x8x16xf32> to vector<2x8x16xbf16>
      "tpu.trace_start"() <{level = 10 : i32, message = "bts,bsd->btd"}> : () -> ()
      %cst_156 = arith.constant dense<0.000000e+00> : vector<2x8x32xf32>
      %318 = tpu.matmul %317, %305, %cst_156 {dimension_numbers = #tpu.dot_dimension_numbers<[2], [1], [1], [2], [0, 0, 0, 1, 1, 2], [0], [0]>} : vector<2x8x16xbf16>, vector<2x16x32xbf16>, vector<2x8x32xf32> -> vector<2x8x32xf32>
      "tpu.trace_stop"() : () -> ()
      %319 = arith.truncf %318 : vector<2x8x32xf32> to vector<2x8x32xbf16>
      %c0_157 = arith.constant 0 : index
      %c0_158 = arith.constant 0 : index
      %c32_159 = arith.constant 32 : index
      %320 = vector.load %arg34[%c0_157, %c0_158, %c32_159] : memref<2x8x128xbf16, #tpu.memory_space<vmem>>, vector<2x8x32xbf16>
      tpu.vector_store %arg34[%c0_157, %c0_158, %c32_159], %319 {strides = array<i32>} : memref<2x8x128xbf16, #tpu.memory_space<vmem>>, vector<2x8x32xbf16>,
      %321 = vector.extract_strided_slice %280 {offsets = [0, 0, 64], sizes = [2, 8, 32], strides = [1, 1, 1]} : vector<2x8x128xbf16> to vector<2x8x32xbf16>
      %322 = vector.extract_strided_slice %282 {offsets = [0, 0, 64], sizes = [2, 16, 32], strides = [1, 1, 1]} : vector<2x16x128xbf16> to vector<2x16x32xbf16>
      %323 = vector.extract_strided_slice %284 {offsets = [0, 0, 64], sizes = [2, 16, 32], strides = [1, 1, 1]} : vector<2x16x128xbf16> to vector<2x16x32xbf16>
      "tpu.trace_start"() <{level = 10 : i32, message = "btd,bsd->bts"}> : () -> ()
      %cst_160 = arith.constant dense<0.000000e+00> : vector<2x8x16xf32>
      %324 = tpu.matmul %321, %322, %cst_160 {dimension_numbers = #tpu.dot_dimension_numbers<[2], [2], [1], [1], [0, 0, 0, 1, 1, 1], [0], [0]>} : vector<2x8x32xbf16>, vector<2x16x32xbf16>, vector<2x8x16xf32> -> vector<2x8x16xf32>
      "tpu.trace_stop"() : () -> ()
      %cst_161 = arith.constant dense<0xFF800000> : vector<2x8xf32>
      %325 = vector.multi_reduction <maximumf>, %324, %cst_161 [2] : vector<2x8x16xf32> to vector<2x8xf32>
      %326 = vector.shape_cast %325 : vector<2x8xf32> to vector<2x8x1xf32>
      %327 = vector.broadcast %326 : vector<2x8x1xf32> to vector<2x8x16xf32>
      %328 = arith.subf %324, %327 : vector<2x8x16xf32>
      %329 = math.exp %328 : vector<2x8x16xf32>
      %cst_162 = arith.constant dense<0.000000e+00> : vector<2x8xf32>
      %330 = vector.multi_reduction <add>, %329, %cst_162 [2] : vector<2x8x16xf32> to vector<2x8xf32>
      %331 = vector.shape_cast %330 : vector<2x8xf32> to vector<2x8x1xf32>
      %332 = tpu.reciprocal %331 {approx = true} : vector<2x8x1xf32> -> vector<2x8x1xf32>
      %333 = vector.broadcast %332 : vector<2x8x1xf32> to vector<2x8x16xf32>
      %334 = arith.mulf %329, %333 : vector<2x8x16xf32>
      %335 = arith.truncf %334 : vector<2x8x16xf32> to vector<2x8x16xbf16>
      "tpu.trace_start"() <{level = 10 : i32, message = "bts,bsd->btd"}> : () -> ()
      %cst_163 = arith.constant dense<0.000000e+00> : vector<2x8x32xf32>
      %336 = tpu.matmul %335, %323, %cst_163 {dimension_numbers = #tpu.dot_dimension_numbers<[2], [1], [1], [2], [0, 0, 0, 1, 1, 2], [0], [0]>} : vector<2x8x16xbf16>, vector<2x16x32xbf16>, vector<2x8x32xf32> -> vector<2x8x32xf32>
      "tpu.trace_stop"() : () -> ()
      %337 = arith.truncf %336 : vector<2x8x32xf32> to vector<2x8x32xbf16>
      %c0_164 = arith.constant 0 : index
      %c0_165 = arith.constant 0 : index
      %c64_166 = arith.constant 64 : index
      %338 = vector.load %arg34[%c0_164, %c0_165, %c64_166] : memref<2x8x128xbf16, #tpu.memory_space<vmem>>, vector<2x8x32xbf16>
      tpu.vector_store %arg34[%c0_164, %c0_165, %c64_166], %337 {strides = array<i32>} : memref<2x8x128xbf16, #tpu.memory_space<vmem>>, vector<2x8x32xbf16>,
      %339 = vector.extract_strided_slice %280 {offsets = [0, 0, 96], sizes = [2, 8, 32], strides = [1, 1, 1]} : vector<2x8x128xbf16> to vector<2x8x32xbf16>
      %340 = vector.extract_strided_slice %282 {offsets = [0, 0, 96], sizes = [2, 16, 32], strides = [1, 1, 1]} : vector<2x16x128xbf16> to vector<2x16x32xbf16>
      %341 = vector.extract_strided_slice %284 {offsets = [0, 0, 96], sizes = [2, 16, 32], strides = [1, 1, 1]} : vector<2x16x128xbf16> to vector<2x16x32xbf16>
      "tpu.trace_start"() <{level = 10 : i32, message = "btd,bsd->bts"}> : () -> ()
      %cst_167 = arith.constant dense<0.000000e+00> : vector<2x8x16xf32>
      %342 = tpu.matmul %339, %340, %cst_167 {dimension_numbers = #tpu.dot_dimension_numbers<[2], [2], [1], [1], [0, 0, 0, 1, 1, 1], [0], [0]>} : vector<2x8x32xbf16>, vector<2x16x32xbf16>, vector<2x8x16xf32> -> vector<2x8x16xf32>
      "tpu.trace_stop"() : () -> ()
      %cst_168 = arith.constant dense<0xFF800000> : vector<2x8xf32>
      %343 = vector.multi_reduction <maximumf>, %342, %cst_168 [2] : vector<2x8x16xf32> to vector<2x8xf32>
      %344 = vector.shape_cast %343 : vector<2x8xf32> to vector<2x8x1xf32>
      %345 = vector.broadcast %344 : vector<2x8x1xf32> to vector<2x8x16xf32>
      %346 = arith.subf %342, %345 : vector<2x8x16xf32>
      %347 = math.exp %346 : vector<2x8x16xf32>
      %cst_169 = arith.constant dense<0.000000e+00> : vector<2x8xf32>
      %348 = vector.multi_reduction <add>, %347, %cst_169 [2] : vector<2x8x16xf32> to vector<2x8xf32>
      %349 = vector.shape_cast %348 : vector<2x8xf32> to vector<2x8x1xf32>
      %350 = tpu.reciprocal %349 {approx = true} : vector<2x8x1xf32> -> vector<2x8x1xf32>
      %351 = vector.broadcast %350 : vector<2x8x1xf32> to vector<2x8x16xf32>
      %352 = arith.mulf %347, %351 : vector<2x8x16xf32>
      %353 = arith.truncf %352 : vector<2x8x16xf32> to vector<2x8x16xbf16>
      "tpu.trace_start"() <{level = 10 : i32, message = "bts,bsd->btd"}> : () -> ()
      %cst_170 = arith.constant dense<0.000000e+00> : vector<2x8x32xf32>
      %354 = tpu.matmul %353, %341, %cst_170 {dimension_numbers = #tpu.dot_dimension_numbers<[2], [1], [1], [2], [0, 0, 0, 1, 1, 2], [0], [0]>} : vector<2x8x16xbf16>, vector<2x16x32xbf16>, vector<2x8x32xf32> -> vector<2x8x32xf32>
      "tpu.trace_stop"() : () -> ()
      %355 = arith.truncf %354 : vector<2x8x32xf32> to vector<2x8x32xbf16>
      %c0_171 = arith.constant 0 : index
      %c0_172 = arith.constant 0 : index
      %c96_173 = arith.constant 96 : index
      %356 = vector.load %arg34[%c0_171, %c0_172, %c96_173] : memref<2x8x128xbf16, #tpu.memory_space<vmem>>, vector<2x8x32xbf16>
      tpu.vector_store %arg34[%c0_171, %c0_172, %c96_173], %355 {strides = array<i32>} : memref<2x8x128xbf16, #tpu.memory_space<vmem>>, vector<2x8x32xbf16>,
      %c0_174 = arith.constant 0 : index
      %c0_175 = arith.constant 0 : index
      %c0_176 = arith.constant 0 : index
      %357 = vector.load %arg34[%c0_174, %c0_175, %c0_176] : memref<2x8x128xbf16, #tpu.memory_space<vmem>>, vector<2x8x128xbf16>
      %358 = vector.shape_cast %357 : vector<2x8x128xbf16> to vector<16x128xbf16>
      %cst_177 = arith.constant dense<0.000000e+00> : vector<16x128xf32>
      %359 = tpu.matmul %358, %267, %cst_177 {dimension_numbers = #tpu.dot_dimension_numbers<[1], [0], [0], [1], [0, 0, 1, 1], [], []>} : vector<16x128xbf16>, vector<128x128xbf16>, vector<16x128xf32> -> vector<16x128xf32>
      %360 = vector.broadcast %269 : vector<1x128xf32> to vector<16x128xf32>
      %361 = arith.addf %359, %360 : vector<16x128xf32>
      %362 = vector.shape_cast %361 : vector<16x128xf32> to vector<2x8x128xf32>
      %363 = arith.addf %225, %362 : vector<2x8x128xf32>
      %c0_178 = arith.constant 0 : index
      %c0_179 = arith.constant 0 : index
      %c0_180 = arith.constant 0 : index
      %364 = vector.load %arg23[%c0_178, %c0_179, %c0_180] : memref<1x1x128xf32, #tpu.memory_space<vmem>>, vector<1x1x128xf32>
      %365 = vector.shape_cast %364 : vector<1x1x128xf32> to vector<1x128xf32>
      %c0_181 = arith.constant 0 : index
      %c0_182 = arith.constant 0 : index
      %c0_183 = arith.constant 0 : index
      %366 = vector.load %arg24[%c0_181, %c0_182, %c0_183] : memref<1x1x128xf32, #tpu.memory_space<vmem>>, vector<1x1x128xf32>
      %367 = vector.shape_cast %366 : vector<1x1x128xf32> to vector<1x128xf32>
      %cst_184 = arith.constant dense<0.000000e+00> : vector<2x8xf32>
      %368 = vector.multi_reduction <add>, %363, %cst_184 [2] : vector<2x8x128xf32> to vector<2x8xf32>
      %369 = vector.shape_cast %368 : vector<2x8xf32> to vector<2x8x1xf32>
      %cst_185 = arith.constant 1.280000e+02 : f32
      %370 = vector.broadcast %cst_185 : f32 to vector<2x8x1xf32>
      %371 = arith.divf %369, %370 : vector<2x8x1xf32>
      %372 = vector.broadcast %371 : vector<2x8x1xf32> to vector<2x8x128xf32>
      %373 = arith.subf %363, %372 : vector<2x8x128xf32>
      %374 = arith.mulf %373, %373 : vector<2x8x128xf32>
      %cst_186 = arith.constant dense<0.000000e+00> : vector<2x8xf32>
      %375 = vector.multi_reduction <add>, %374, %cst_186 [2] : vector<2x8x128xf32> to vector<2x8xf32>
      %376 = vector.shape_cast %375 : vector<2x8xf32> to vector<2x8x1xf32>
      %cst_187 = arith.constant 1.280000e+02 : f32
      %377 = vector.broadcast %cst_187 : f32 to vector<2x8x1xf32>
      %378 = arith.divf %376, %377 : vector<2x8x1xf32>
      %379 = vector.broadcast %371 : vector<2x8x1xf32> to vector<2x8x128xf32>
      %380 = arith.subf %363, %379 : vector<2x8x128xf32>
      %cst_188 = arith.constant 9.99999974E-6 : f32
      %381 = vector.broadcast %cst_188 : f32 to vector<2x8x1xf32>
      %382 = arith.addf %378, %381 : vector<2x8x1xf32>
      %383 = math.rsqrt %382 : vector<2x8x1xf32>
      %384 = vector.broadcast %383 : vector<2x8x1xf32> to vector<2x8x128xf32>
      %385 = arith.mulf %380, %384 : vector<2x8x128xf32>
      %386 = vector.shape_cast %365 : vector<1x128xf32> to vector<1x1x128xf32>
      %387 = vector.broadcast %386 : vector<1x1x128xf32> to vector<2x8x128xf32>
      %388 = arith.mulf %385, %387 : vector<2x8x128xf32>
      %389 = vector.shape_cast %367 : vector<1x128xf32> to vector<1x1x128xf32>
      %390 = vector.broadcast %389 : vector<1x1x128xf32> to vector<2x8x128xf32>
      %391 = arith.addf %388, %390 : vector<2x8x128xf32>
      %392 = arith.truncf %391 : vector<2x8x128xf32> to vector<2x8x128xbf16>
      %393 = vector.shape_cast %392 : vector<2x8x128xbf16> to vector<16x128xbf16>
      %c0_189 = arith.constant 0 : index
      %c0_190 = arith.constant 0 : index
      %394 = vector.load %arg33[%c0_189, %c0_190] : memref<16x128xbf16, #tpu.memory_space<vmem>>, vector<16x128xbf16>
      tpu.vector_store %arg33[%c0_189, %c0_190], %393 {strides = array<i32>} : memref<16x128xbf16, #tpu.memory_space<vmem>>, vector<16x128xbf16>,
      %c0_191 = arith.constant 0 : index
      %c0_192 = arith.constant 0 : index
      %c0_193 = arith.constant 0 : index
      %395 = vector.load %arg28[%c0_191, %c0_192, %c0_193] : memref<1x1x128xf32, #tpu.memory_space<vmem>>, vector<1x1x128xf32>
      %396 = vector.shape_cast %395 : vector<1x1x128xf32> to vector<1x128xf32>
      %397 = vector.shape_cast %396 : vector<1x128xf32> to vector<1x1x128xf32>
      %398 = vector.broadcast %397 : vector<1x1x128xf32> to vector<2x8x128xf32>
      %399 = arith.addf %363, %398 : vector<2x8x128xf32>
      %c0_194 = arith.constant 0 : index
      %c0_195 = arith.constant 0 : index
      %c0_196 = arith.constant 0 : index
      %400 = vector.load %arg32[%c0_194, %c0_195, %c0_196] : memref<2x8x128xf32, #tpu.memory_space<vmem>>, vector<2x8x128xf32>
      tpu.vector_store %arg32[%c0_194, %c0_195, %c0_196], %399 {strides = array<i32>} : memref<2x8x128xf32, #tpu.memory_space<vmem>>, vector<2x8x128xf32>,
    } else {
    }
    %c0 = arith.constant 0 : index
    %c0_4 = arith.constant 0 : index
    %8 = vector.load %arg33[%c0, %c0_4] : memref<16x128xbf16, #tpu.memory_space<vmem>>, vector<16x128xbf16>
    %c0_5 = arith.constant 0 : index
    %c0_6 = arith.constant 0 : index
    %c0_7 = arith.constant 0 : index
    %9 = vector.load %arg25[%c0_5, %c0_6, %c0_7] : memref<1x128x512xbf16, #tpu.memory_space<vmem>>, vector<1x128x512xbf16>
    %10 = vector.shape_cast %9 : vector<1x128x512xbf16> to vector<128x512xbf16>
    %cst = arith.constant dense<0.000000e+00> : vector<16x512xf32>
    %11 = tpu.matmul %8, %10, %cst {dimension_numbers = #tpu.dot_dimension_numbers<[1], [0], [0], [1], [0, 0, 1, 1], [], []>} : vector<16x128xbf16>, vector<128x512xbf16>, vector<16x512xf32> -> vector<16x512xf32>
    %c0_8 = arith.constant 0 : index
    %c0_9 = arith.constant 0 : index
    %c0_10 = arith.constant 0 : index
    %12 = vector.load %arg26[%c0_8, %c0_9, %c0_10] : memref<1x1x512xf32, #tpu.memory_space<vmem>>, vector<1x1x512xf32>
    %13 = vector.shape_cast %12 : vector<1x1x512xf32> to vector<1x512xf32>
    %14 = vector.broadcast %13 : vector<1x512xf32> to vector<16x512xf32>
    %15 = arith.addf %11, %14 : vector<16x512xf32>
    %cst_11 = arith.constant 5.000000e-01 : f32
    %16 = vector.broadcast %cst_11 : f32 to vector<16x512xf32>
    %17 = arith.mulf %16, %15 : vector<16x512xf32>
    %cst_12 = arith.constant 0.707106769 : f32
    %18 = vector.broadcast %cst_12 : f32 to vector<16x512xf32>
    %19 = arith.mulf %15, %18 : vector<16x512xf32>
    %cst_13 = arith.constant 0.000000e+00 : f32
    %20 = vector.broadcast %cst_13 : f32 to vector<16x512xf32>
    %21 = arith.cmpf oge, %19, %20 : vector<16x512xf32>
    %cst_14 = arith.constant 1.000000e+00 : f32
    %cst_15 = arith.constant -1.000000e+00 : f32
    %22 = vector.broadcast %cst_14 : f32 to vector<16x512xf32>
    %23 = vector.broadcast %cst_15 : f32 to vector<16x512xf32>
    %24 = arith.select %21, %22, %23 : vector<16x512xi1>, vector<16x512xf32>
    %25 = math.absf %19 : vector<16x512xf32>
    %cst_16 = arith.constant 0.327591091 : f32
    %26 = vector.broadcast %cst_16 : f32 to vector<16x512xf32>
    %27 = arith.mulf %26, %25 : vector<16x512xf32>
    %cst_17 = arith.constant 1.000000e+00 : f32
    %28 = vector.broadcast %cst_17 : f32 to vector<16x512xf32>
    %29 = arith.addf %28, %27 : vector<16x512xf32>
    %cst_18 = arith.constant 1.000000e+00 : f32
    %30 = vector.broadcast %cst_18 : f32 to vector<16x512xf32>
    %31 = arith.divf %30, %29 : vector<16x512xf32>
    %cst_19 = arith.constant 1.06140542 : f32
    %32 = vector.broadcast %cst_19 : f32 to vector<16x512xf32>
    %33 = arith.mulf %32, %31 : vector<16x512xf32>
    %cst_20 = arith.constant -1.45315206 : f32
    %34 = vector.broadcast %cst_20 : f32 to vector<16x512xf32>
    %35 = arith.addf %33, %34 : vector<16x512xf32>
    %36 = arith.mulf %35, %31 : vector<16x512xf32>
    %cst_21 = arith.constant 1.42141378 : f32
    %37 = vector.broadcast %cst_21 : f32 to vector<16x512xf32>
    %38 = arith.addf %36, %37 : vector<16x512xf32>
    %39 = arith.mulf %38, %31 : vector<16x512xf32>
    %cst_22 = arith.constant -0.284496725 : f32
    %40 = vector.broadcast %cst_22 : f32 to vector<16x512xf32>
    %41 = arith.addf %39, %40 : vector<16x512xf32>
    %42 = arith.mulf %41, %31 : vector<16x512xf32>
    %cst_23 = arith.constant 0.254829586 : f32
    %43 = vector.broadcast %cst_23 : f32 to vector<16x512xf32>
    %44 = arith.addf %42, %43 : vector<16x512xf32>
    %45 = arith.mulf %44, %31 : vector<16x512xf32>
    %cst_24 = arith.constant 0.000000e+00 : f32
    %46 = vector.broadcast %cst_24 : f32 to vector<16x512xf32>
    %47 = arith.subf %46, %25 : vector<16x512xf32>
    %48 = arith.mulf %47, %25 : vector<16x512xf32>
    %49 = math.exp %48 : vector<16x512xf32>
    %50 = arith.mulf %45, %49 : vector<16x512xf32>
    %cst_25 = arith.constant 1.000000e+00 : f32
    %51 = vector.broadcast %cst_25 : f32 to vector<16x512xf32>
    %52 = arith.subf %51, %50 : vector<16x512xf32>
    %53 = arith.mulf %24, %52 : vector<16x512xf32>
    %cst_26 = arith.constant 1.000000e+00 : f32
    %54 = vector.broadcast %cst_26 : f32 to vector<16x512xf32>
    %55 = arith.addf %54, %53 : vector<16x512xf32>
    %56 = arith.mulf %17, %55 : vector<16x512xf32>
    %c0_27 = arith.constant 0 : index
    %c0_28 = arith.constant 0 : index
    %c0_29 = arith.constant 0 : index
    %57 = vector.load %arg32[%c0_27, %c0_28, %c0_29] : memref<2x8x128xf32, #tpu.memory_space<vmem>>, vector<2x8x128xf32>
    %58 = arith.truncf %56 : vector<16x512xf32> to vector<16x512xbf16>
    %c0_30 = arith.constant 0 : index
    %c0_31 = arith.constant 0 : index
    %c0_32 = arith.constant 0 : index
    %59 = vector.load %arg27[%c0_30, %c0_31, %c0_32] : memref<1x512x128xbf16, #tpu.memory_space<vmem>>, vector<1x512x128xbf16>
    %60 = vector.shape_cast %59 : vector<1x512x128xbf16> to vector<512x128xbf16>
    %cst_33 = arith.constant dense<0.000000e+00> : vector<16x128xf32>
    %61 = tpu.matmul %58, %60, %cst_33 {dimension_numbers = #tpu.dot_dimension_numbers<[1], [0], [0], [1], [0, 0, 1, 1], [], []>} : vector<16x512xbf16>, vector<512x128xbf16>, vector<16x128xf32> -> vector<16x128xf32>
    %62 = vector.shape_cast %61 : vector<16x128xf32> to vector<2x8x128xf32>
    %63 = arith.addf %57, %62 : vector<2x8x128xf32>
    %c0_34 = arith.constant 0 : index
    %c0_35 = arith.constant 0 : index
    %c0_36 = arith.constant 0 : index
    %64 = vector.load %arg32[%c0_34, %c0_35, %c0_36] : memref<2x8x128xf32, #tpu.memory_space<vmem>>, vector<2x8x128xf32>
    tpu.vector_store %arg32[%c0_34, %c0_35, %c0_36], %63 {strides = array<i32>} : memref<2x8x128xf32, #tpu.memory_space<vmem>>, vector<2x8x128xf32>,
    %c1_i32 = arith.constant 1 : i32
    %65 = arith.cmpi eq, %arg1, %c1_i32 : i32
    %c0_i32_37 = arith.constant 0 : i32
    %66 = arith.cmpi eq, %arg2, %c0_i32_37 : i32
    %67 = arith.andi %65, %66 : i1
    %68 = arith.extui %67 : i1 to i32
    %c0_i32_38 = arith.constant 0 : i32
    %69 = arith.cmpi ne, %68, %c0_i32_38 : i32
    scf.if %69 {
      %c0_39 = arith.constant 0 : index
      %c0_40 = arith.constant 0 : index
      %c0_41 = arith.constant 0 : index
      %70 = vector.load %arg32[%c0_39, %c0_40, %c0_41] : memref<2x8x128xf32, #tpu.memory_space<vmem>>, vector<2x8x128xf32>
      %c0_42 = arith.constant 0 : index
      %c0_43 = arith.constant 0 : index
      %71 = vector.load %arg29[%c0_42, %c0_43] : memref<1x128xf32, #tpu.memory_space<vmem>>, vector<1x128xf32>
      %c0_44 = arith.constant 0 : index
      %c0_45 = arith.constant 0 : index
      %72 = vector.load %arg30[%c0_44, %c0_45] : memref<1x128xf32, #tpu.memory_space<vmem>>, vector<1x128xf32>
      %cst_46 = arith.constant dense<0.000000e+00> : vector<2x8xf32>
      %73 = vector.multi_reduction <add>, %70, %cst_46 [2] : vector<2x8x128xf32> to vector<2x8xf32>
      %74 = vector.shape_cast %73 : vector<2x8xf32> to vector<2x8x1xf32>
      %cst_47 = arith.constant 1.280000e+02 : f32
      %75 = vector.broadcast %cst_47 : f32 to vector<2x8x1xf32>
      %76 = arith.divf %74, %75 : vector<2x8x1xf32>
      %77 = vector.broadcast %76 : vector<2x8x1xf32> to vector<2x8x128xf32>
      %78 = arith.subf %70, %77 : vector<2x8x128xf32>
      %79 = arith.mulf %78, %78 : vector<2x8x128xf32>
      %cst_48 = arith.constant dense<0.000000e+00> : vector<2x8xf32>
      %80 = vector.multi_reduction <add>, %79, %cst_48 [2] : vector<2x8x128xf32> to vector<2x8xf32>
      %81 = vector.shape_cast %80 : vector<2x8xf32> to vector<2x8x1xf32>
      %cst_49 = arith.constant 1.280000e+02 : f32
      %82 = vector.broadcast %cst_49 : f32 to vector<2x8x1xf32>
      %83 = arith.divf %81, %82 : vector<2x8x1xf32>
      %84 = vector.broadcast %76 : vector<2x8x1xf32> to vector<2x8x128xf32>
      %85 = arith.subf %70, %84 : vector<2x8x128xf32>
      %cst_50 = arith.constant 9.99999974E-6 : f32
      %86 = vector.broadcast %cst_50 : f32 to vector<2x8x1xf32>
      %87 = arith.addf %83, %86 : vector<2x8x1xf32>
      %88 = math.rsqrt %87 : vector<2x8x1xf32>
      %89 = vector.broadcast %88 : vector<2x8x1xf32> to vector<2x8x128xf32>
      %90 = arith.mulf %85, %89 : vector<2x8x128xf32>
      %91 = vector.shape_cast %71 : vector<1x128xf32> to vector<1x1x128xf32>
      %92 = vector.broadcast %91 : vector<1x1x128xf32> to vector<2x8x128xf32>
      %93 = arith.mulf %90, %92 : vector<2x8x128xf32>
      %94 = vector.shape_cast %72 : vector<1x128xf32> to vector<1x1x128xf32>
      %95 = vector.broadcast %94 : vector<1x1x128xf32> to vector<2x8x128xf32>
      %96 = arith.addf %93, %95 : vector<2x8x128xf32>
      %c0_51 = arith.constant 0 : index
      %c0_52 = arith.constant 0 : index
      %c0_53 = arith.constant 0 : index
      %97 = vector.load %arg31[%c0_51, %c0_52, %c0_53] : memref<2x8x128xf32, #tpu.memory_space<vmem>>, vector<2x8x128xf32>
      tpu.vector_store %arg31[%c0_51, %c0_52, %c0_53], %96 {strides = array<i32>} : memref<2x8x128xf32, #tpu.memory_space<vmem>>, vector<2x8x128xf32>,
    } else {
    }
    return
  }
  func.func @transform_0(%arg0: i32, %arg1: i32, %arg2: i32) -> (i32, i32, i32) {
    %c0_i32 = arith.constant 0 : i32
    %c0_i32_0 = arith.constant 0 : i32
    %c0_i32_1 = arith.constant 0 : i32
    return %arg0, %c0_i32, %c0_i32_0 : i32, i32, i32
  }
  func.func @transform_1(%arg0: i32, %arg1: i32, %arg2: i32) -> (i32, i32, i32) {
    %c0_i32 = arith.constant 0 : i32
    %c0_i32_0 = arith.constant 0 : i32
    %c0_i32_1 = arith.constant 0 : i32
    return %arg0, %c0_i32, %c0_i32_0 : i32, i32, i32
  }
  func.func @transform_2(%arg0: i32, %arg1: i32, %arg2: i32) -> (i32, i32, i32) {
    %c0_i32 = arith.constant 0 : i32
    %c0_i32_0 = arith.constant 0 : i32
    %c0_i32_1 = arith.constant 0 : i32
    return %arg1, %c0_i32, %c0_i32_0 : i32, i32, i32
  }
  func.func @transform_3(%arg0: i32, %arg1: i32, %arg2: i32) -> (i32, i32, i32) {
    %c0_i32 = arith.constant 0 : i32
    %c0_i32_0 = arith.constant 0 : i32
    %c0_i32_1 = arith.constant 0 : i32
    return %arg1, %c0_i32, %c0_i32_0 : i32, i32, i32
  }
  func.func @transform_4(%arg0: i32, %arg1: i32, %arg2: i32) -> (i32, i32, i32) {
    %c0_i32 = arith.constant 0 : i32
    %c0_i32_0 = arith.constant 0 : i32
    %c0_i32_1 = arith.constant 0 : i32
    return %arg1, %c0_i32, %c0_i32_0 : i32, i32, i32
  }
  func.func @transform_5(%arg0: i32, %arg1: i32, %arg2: i32) -> (i32, i32, i32) {
    %c0_i32 = arith.constant 0 : i32
    %c0_i32_0 = arith.constant 0 : i32
    %c0_i32_1 = arith.constant 0 : i32
    return %arg1, %c0_i32, %c0_i32_0 : i32, i32, i32
  }
  func.func @transform_6(%arg0: i32, %arg1: i32, %arg2: i32) -> (i32, i32, i32) {
    %c0_i32 = arith.constant 0 : i32
    %c0_i32_0 = arith.constant 0 : i32
    %c0_i32_1 = arith.constant 0 : i32
    return %arg1, %c0_i32, %c0_i32_0 : i32, i32, i32
  }
  func.func @transform_7(%arg0: i32, %arg1: i32, %arg2: i32) -> (i32, i32, i32) {
    %c0_i32 = arith.constant 0 : i32
    %c0_i32_0 = arith.constant 0 : i32
    %c0_i32_1 = arith.constant 0 : i32
    return %arg1, %c0_i32, %c0_i32_0 : i32, i32, i32
  }
  func.func @transform_8(%arg0: i32, %arg1: i32, %arg2: i32) -> (i32, i32, i32) {
    %c0_i32 = arith.constant 0 : i32
    %c0_i32_0 = arith.constant 0 : i32
    %c0_i32_1 = arith.constant 0 : i32
    return %arg1, %c0_i32, %c0_i32_0 : i32, i32, i32
  }
  func.func @transform_9(%arg0: i32, %arg1: i32, %arg2: i32) -> (i32, i32, i32) {
    %c0_i32 = arith.constant 0 : i32
    %c0_i32_0 = arith.constant 0 : i32
    %c0_i32_1 = arith.constant 0 : i32
    return %arg1, %c0_i32, %c0_i32_0 : i32, i32, i32
  }
  func.func @transform_10(%arg0: i32, %arg1: i32, %arg2: i32) -> (i32, i32, i32) {
    %c0_i32 = arith.constant 0 : i32
    %c0_i32_0 = arith.constant 0 : i32
    %c0_i32_1 = arith.constant 0 : i32
    return %arg1, %c0_i32, %c0_i32_0 : i32, i32, i32
  }
  func.func @transform_11(%arg0: i32, %arg1: i32, %arg2: i32) -> (i32, i32, i32) {
    %c0_i32 = arith.constant 0 : i32
    %c0_i32_0 = arith.constant 0 : i32
    %c0_i32_1 = arith.constant 0 : i32
    return %arg1, %c0_i32, %c0_i32_0 : i32, i32, i32
  }
  func.func @transform_12(%arg0: i32, %arg1: i32, %arg2: i32) -> (i32, i32, i32) {
    %c0_i32 = arith.constant 0 : i32
    %c0_i32_0 = arith.constant 0 : i32
    %c0_i32_1 = arith.constant 0 : i32
    return %arg1, %c0_i32, %c0_i32_0 : i32, i32, i32
  }
  func.func @transform_13(%arg0: i32, %arg1: i32, %arg2: i32) -> (i32, i32, i32) {
    %c0_i32 = arith.constant 0 : i32
    %c0_i32_0 = arith.constant 0 : i32
    %c0_i32_1 = arith.constant 0 : i32
    return %arg1, %c0_i32, %c0_i32_0 : i32, i32, i32
  }
  func.func @transform_14(%arg0: i32, %arg1: i32, %arg2: i32) -> (i32, i32, i32) {
    %c0_i32 = arith.constant 0 : i32
    %c0_i32_0 = arith.constant 0 : i32
    %c0_i32_1 = arith.constant 0 : i32
    return %arg1, %c0_i32, %c0_i32_0 : i32, i32, i32
  }
  func.func @transform_15(%arg0: i32, %arg1: i32, %arg2: i32) -> (i32, i32, i32) {
    %c0_i32 = arith.constant 0 : i32
    %c0_i32_0 = arith.constant 0 : i32
    %c0_i32_1 = arith.constant 0 : i32
    return %arg1, %c0_i32, %c0_i32_0 : i32, i32, i32
  }
  func.func @transform_16(%arg0: i32, %arg1: i32, %arg2: i32) -> (i32, i32, i32) {
    %c0_i32 = arith.constant 0 : i32
    %c0_i32_0 = arith.constant 0 : i32
    %c0_i32_1 = arith.constant 0 : i32
    return %arg1, %c0_i32, %c0_i32_0 : i32, i32, i32
  }
  func.func @transform_17(%arg0: i32, %arg1: i32, %arg2: i32) -> (i32, i32, i32) {
    %c0_i32 = arith.constant 0 : i32
    %c0_i32_0 = arith.constant 0 : i32
    %c0_i32_1 = arith.constant 0 : i32
    return %arg1, %c0_i32, %c0_i32_0 : i32, i32, i32
  }
  func.func @transform_18(%arg0: i32, %arg1: i32, %arg2: i32) -> (i32, i32, i32) {
    %c0_i32 = arith.constant 0 : i32
    %c0_i32_0 = arith.constant 0 : i32
    %c0_i32_1 = arith.constant 0 : i32
    return %arg1, %c0_i32, %c0_i32_0 : i32, i32, i32
  }
  func.func @transform_19(%arg0: i32, %arg1: i32, %arg2: i32) -> (i32, i32, i32) {
    %c0_i32 = arith.constant 0 : i32
    %c0_i32_0 = arith.constant 0 : i32
    %c0_i32_1 = arith.constant 0 : i32
    return %arg1, %c0_i32, %c0_i32_0 : i32, i32, i32
  }
  func.func @transform_20(%arg0: i32, %arg1: i32, %arg2: i32) -> (i32, i32, i32) {
    %c0_i32 = arith.constant 0 : i32
    %c0_i32_0 = arith.constant 0 : i32
    %c0_i32_1 = arith.constant 0 : i32
    return %arg1, %c0_i32, %c0_i32_0 : i32, i32, i32
  }
  func.func @transform_21(%arg0: i32, %arg1: i32, %arg2: i32) -> (i32, i32, i32) {
    %c0_i32 = arith.constant 0 : i32
    %c0_i32_0 = arith.constant 0 : i32
    %c0_i32_1 = arith.constant 0 : i32
    return %arg1, %c0_i32, %c0_i32_0 : i32, i32, i32
  }
  func.func @transform_22(%arg0: i32, %arg1: i32, %arg2: i32) -> (i32, i32, i32) {
    %c0_i32 = arith.constant 0 : i32
    %c0_i32_0 = arith.constant 0 : i32
    return %arg1, %c0_i32, %arg2 : i32, i32, i32
  }
  func.func @transform_23(%arg0: i32, %arg1: i32, %arg2: i32) -> (i32, i32, i32) {
    %c0_i32 = arith.constant 0 : i32
    %c0_i32_0 = arith.constant 0 : i32
    return %arg1, %c0_i32, %arg2 : i32, i32, i32
  }
  func.func @transform_24(%arg0: i32, %arg1: i32, %arg2: i32) -> (i32, i32, i32) {
    %c0_i32 = arith.constant 0 : i32
    %c0_i32_0 = arith.constant 0 : i32
    return %arg1, %arg2, %c0_i32 : i32, i32, i32
  }
  func.func @transform_25(%arg0: i32, %arg1: i32, %arg2: i32) -> (i32, i32, i32) {
    %c0_i32 = arith.constant 0 : i32
    %c0_i32_0 = arith.constant 0 : i32
    %c0_i32_1 = arith.constant 0 : i32
    return %arg1, %c0_i32, %c0_i32_0 : i32, i32, i32
  }
  func.func @transform_26(%arg0: i32, %arg1: i32, %arg2: i32) -> (i32, i32) {
    %c0_i32 = arith.constant 0 : i32
    %c0_i32_0 = arith.constant 0 : i32
    %c0_i32_1 = arith.constant 0 : i32
    return %c0_i32, %c0_i32_0 : i32, i32
  }
  func.func @transform_27(%arg0: i32, %arg1: i32, %arg2: i32) -> (i32, i32) {
    %c0_i32 = arith.constant 0 : i32
    %c0_i32_0 = arith.constant 0 : i32
    %c0_i32_1 = arith.constant 0 : i32
    return %c0_i32, %c0_i32_0 : i32, i32
  }
  func.func @transform_28(%arg0: i32, %arg1: i32, %arg2: i32) -> (i32, i32, i32) {
    %c0_i32 = arith.constant 0 : i32
    %c0_i32_0 = arith.constant 0 : i32
    %c0_i32_1 = arith.constant 0 : i32
    return %arg0, %c0_i32, %c0_i32_0 : i32, i32, i32
  }
}

</mosaic_0001>

<bundles_post_ra>
// kernel: decoder_forward.1
= control target key start
LH: loop header
LB: loop body
LE: loop exit
PB: predicated region body
PF: predicated region fallthrough
CT: control target
= control target key end

     0   :  { %s9067_s0 = inlined_call_operand.vmem [shape: bf16[2,8,128], index: 0, kind: input, shape index: {}]   ;;  %s9068_s1 = inlined_call_operand.vmem [shape: bf16[2,16,128], index: 1, kind: input, shape index: {}]   ;;  %s9069_s2 = inlined_call_operand.vmem [shape: f32[2,1,128], index: 2, kind: input, shape index: {}]   ;;  %s9070_s3 = inlined_call_operand.vmem [shape: f32[2,1,128], index: 3, kind: input, shape index: {}]   ;;  %s9071_s4 = inlined_call_operand.vmem [shape: bf16[2,128,128], index: 4, kind: input, shape index: {}]   ;;  %s9072_s5 = inlined_call_operand.hbm [shape: f32[2,1,128], index: 5, kind: input, shape index: {}]   ;;  %s9073_s6 = inlined_call_operand.vmem [shape: bf16[2,128,128], index: 6, kind: input, shape index: {}]   ;;  %s9074_s7 = inlined_call_operand.hbm [shape: bf16[2,128,128], index: 7, kind: input, shape index: {}]   ;;  %s9075_s8 = inlined_call_operand.hbm [shape: f32[2,1,128], index: 8, kind: input, shape index: {}]   ;;  %s9076_s9 = inlined_call_operand.hbm [shape: bf16[2,128,128], index: 9, kind: input, shape index: {}]   ;;  %s9077_s10 = inlined_call_operand.hbm [shape: f32[2,1,128], index: 10, kind: input, shape index: {}]   ;;  %s9078_s11 = inlined_call_operand.vmem [shape: f32[2,1,128], index: 11, kind: input, shape index: {}]   ;;  %s9079_s12 = inlined_call_operand.vmem [shape: f32[2,1,128], index: 12, kind: input, shape index: {}]   ;;  %s9080_s13 = inlined_call_operand.hbm [shape: bf16[2,128,128], index: 13, kind: input, shape index: {}]   ;;  %s9081_s14 = inlined_call_operand.vmem [shape: f32[2,1,128], index: 14, kind: input, shape index: {}]   ;;  %s9082_s15 = inlined_call_operand.hbm [shape: bf16[2,128,128], index: 15, kind: input, shape index: {}]   ;;  %s9083_s16 = inlined_call_operand.hbm [shape: bf16[2,128,128], index: 16, kind: input, shape index: {}]   ;;  %s9084_s17 = inlined_call_operand.vmem [shape: f32[2,1,128], index: 17, kind: input, shape index: {}]   ;;  %s9085_s18 = inlined_call_operand.hbm [shape: bf16[2,128,128], index: 18, kind: input, shape index: {}]   ;;  %s9086_s19 = inlined_call_operand.vmem [shape: f32[2,1,128], index: 19, kind: input, shape index: {}]   ;;  %s9087_s20 = inlined_call_operand.vmem [shape: f32[2,1,128], index: 20, kind: input, shape index: {}]   ;;  %s9088_s21 = inlined_call_operand.vmem [shape: f32[2,1,128], index: 21, kind: input, shape index: {}]   ;;  %s9089_s22 = inlined_call_operand.hbm [shape: bf16[2,128,512], index: 22, kind: input, shape index: {}]   ;;  %s9090_s23 = inlined_call_operand.vmem [shape: f32[2,1,512], index: 23, kind: input, shape index: {}]   ;;  %s9091_s24 = inlined_call_operand.hbm [shape: bf16[2,512,128], index: 24, kind: input, shape index: {}]   ;;  %s9092_s25 = inlined_call_operand.vmem [shape: f32[2,1,128], index: 25, kind: input, shape index: {}]   ;;  %s9093_s26 = inlined_call_operand.vmem [shape: f32[1,128], index: 26, kind: input, shape index: {}]   ;;  %s9094_s27 = inlined_call_operand.vmem [shape: f32[1,128], index: 27, kind: input, shape index: {}]   ;;  %s9095_s28 = inlined_call_operand.hbm [shape: f32[2,8,128], index: 28, kind: output, shape index: {}]  }
   0x1   :  { %9135 = sst [smem:[#allocation45_spill]] %s9067_s0 }
   0x2   :  { %9136 = sst [smem:[#allocation46_spill]] %s9068_s1 }
   0x3   :  { %9137 = sst [smem:[#allocation47_spill]] %s9069_s2 }
   0x4   :  { %9138 = sst [smem:[#allocation48_spill]] %s9070_s3 }
   0x5   :  { %9139 = sst [smem:[#allocation49_spill]] %s9071_s4 }
   0x6   :  { %9140 = sst [smem:[#allocation50_spill]] %s9072_s5 }
   0x7   :  { %9141 = sst [smem:[#allocation51_spill]] %s9073_s6 }
   0x8   :  { %9142 = sst [smem:[#allocation52_spill]] %s9074_s7 }
   0x9   :  { %9143 = sst [smem:[#allocation53_spill]] %s9075_s8 }
   0xa   :  { %9144 = sst [smem:[#allocation54_spill]] %s9076_s9 }
   0xb   :  { %9145 = sst [smem:[#allocation55_spill]] %s9077_s10 }
   0xc   :  { %9146 = sst [smem:[#allocation56_spill]] %s9078_s11 }
   0xd   :  { %9147 = sst [smem:[#allocation57_spill]] %s9079_s12 }
   0xe   :  { %9148 = sst [smem:[#allocation58_spill]] %s9080_s13 }
   0xf   :  { %9149 = sst [smem:[#allocation59_spill]] %s9081_s14 }
  0x10   :  { %9150 = sst [smem:[#allocation60_spill]] %s9082_s15 }
  0x11   :  { %9151 = sst [smem:[#allocation61_spill]] %s9083_s16 }
  0x12   :  { %9152 = sst [smem:[#allocation62_spill]] %s9084_s17 }
  0x13   :  { %9153 = sst [smem:[#allocation63_spill]] %s9085_s18 }
  0x14   :  { %9154 = sst [smem:[#allocation64_spill]] %s9086_s19 }
  0x15   :  { %9155 = sst [smem:[#allocation65_spill]] %s9087_s20 }
  0x16   :  { %9156 = sst [smem:[#allocation66_spill]] %s9088_s21 }
  0x17   :  { %9157 = sst [smem:[#allocation67_spill]] %s9089_s22 }
  0x18   :  { %9158 = sst [smem:[#allocation68_spill]] %s9090_s23 }
  0x19   :  { %9159 = sst [smem:[#allocation69_spill]] %s9091_s24 }
  0x1a   :  { %9160 = sst [smem:[#allocation70_spill]] %s9092_s25 }
  0x1b   :  { %9161 = sst [smem:[#allocation71_spill]] %s9093_s26 }
  0x1c   :  { %9162 = sst [smem:[#allocation72_spill]] %s9094_s27 }
  0x1d   :  { %9163 = sst [smem:[#allocation73_spill]] %s9095_s28 }
  0x1e   :  { %33 = vsyncpa [#allocation6], 0 }
  0x1f   :  { %35 = vsyncpa [#allocation6 + $0x1], 0 }
  0x20   :  { %36 = vsyncpa [#allocation9], 0 }
  0x21   :  { %38 = vsyncpa [#allocation9 + $0x1], 0 }
  0x22   :  { %39 = vsyncpa [#allocation12], 0 }
  0x23   :  { %41 = vsyncpa [#allocation12 + $0x1], 0 }
  0x24   :  { %42 = vsyncpa [#allocation15], 0 }
  0x25   :  { %44 = vsyncpa [#allocation15 + $0x1], 0 }
  0x26   :  { %45 = vsyncpa [#allocation18], 0 }
  0x27   :  { %47 = vsyncpa [#allocation18 + $0x1], 0 }
  0x28   :  { %48 = vsyncpa [#allocation21], 0 }
  0x29   :  { %50 = vsyncpa [#allocation21 + $0x1], 0 }
  0x2a   :  { %51 = vsyncpa [#allocation7], 0  ;;  %s7669_s8 = smov 0   ;;  %s7671_s5 = smov 0  }
  0x2b   :  { %s7673_s9 = smov 0   ;;  %s7675_s30 = smov 0  }
  0x2c   :  { %s7677_s3 = smov 0   ;;  %s7679_s6 = smov 0  }
  0x2d LB: > { %9164 = sst [smem:[#allocation31_spill]] %s7481_s5  ;;  %s7698_s10 = sadd.s32 4294967295, %s7497_s6   ;;  %s7497_s6 = sphi %s7679_s6, %s57_s6   ;;  %s7493_s3 = sphi %s7677_s3, %s9262_s3   ;;  %s7489_s30 = sphi %s7675_s30, %s9261_s30   ;;  %s7485_s9 = sphi %s7673_s9, %s9260_s9   ;;  %s7481_s5 = sphi %s7671_s5, %s9259_s5   ;;  %s7477_s8 = sphi %s7669_s8, %s9258_s8  }
  0x2e   : > { %9165 = sst [smem:[#allocation32_spill]] %s7485_s9  ;;  %s72_s0 = sadd.s32 1, %s7493_s3 }
  0x2f   : > { %9166 = sst [smem:[#allocation33_spill]] %s7489_s30  ;;  %p74_p0 = scmp.ge.s32.totalorder %s72_s0, 2 }
  0x30   : > { %9167 = sst [smem:[#allocation34_spill]] %s7493_s3  ;;  %s213_s11 = sadd.s32 1, %s7485_s9 }
  0x31   : > { %9168 = sst [smem:[#allocation35_spill]] %s7497_s6  ;;  %p220_p1 = scmp.ne.s32.totalorder %s7485_s9, %s7481_s5 }
  0x32   : > { %9169 = sst [smem:[#allocation36_spill]] %s7698_s10  ;;  %p221_p2 = scmp.eq.s32.totalorder %s7497_s6, 0 }
  0x33   : > { %s9264_s0 = smov (%p74_p0, %s72_s0), 0  ;;  %p226_p4 = scmp.ne.s32.totalorder %s7481_s5, %s7477_s8 }
  0x34   : > { %9170 = sst [smem:[#allocation37_spill]] %s9264_s0  ;;  %p222_p3 = por %p221_p2, %p220_p1 }
  0x35   : > { %s210_s29 = ssub.s32 %s7493_s3, %s9264_s0  ;;  %p227_p5 = scmp.eq.s32.totalorder %s7698_s10, 0 }
  0x36   : > { %p211_p6 = scmp.eq.s32.totalorder %s210_s29, 0  ;;  %p6740_p8 = scmp.lt.s32.totalorder %s7497_s6, 2 }
  0x37   : > { %p7711_p7 = por %p227_p5, %p226_p4  ;;  %s7720_s12 = sand.u32 1, %s7485_s9  }
  0x38   : > { %s7717_s7 = scalar_select %p211_p6, %s7485_s9, %s213_s11  }
  0x39   : > { %s9171_s2 = scalar_select %p7711_p7, 1, 0 }
  0x3a   : > { %9173 = sst [smem:[#allocation39_spill]] %s7717_s7  ;;  %p7722_p9 = pnand %p6740_p8, %p222_p3 }
  0x3b   : > { %9172 = sst [smem:[#allocation38_spill]] %s9171_s2  ;;  %s7727_s4 = sand.u32 1, %s7497_s6  }
  0x3c   : > { %s9174_s1 = scalar_select %p7722_p9, 1, 0 }
  0x3d   : > { %s7730_s8 = sshll.u32 %s7720_s12, 6  ;;  %s7733_s29 = sshll.u32 %s7493_s3, 10 }
  0x3e   : > { %s9175_s7 = sld [smem:[#allocation52_spill]]  ;;  %s918_s28 = scalar_lea.vmem [#allocation8], %s7730_s8 }
  0x3f   : > { %s925_s27 = sshll.u32 %s918_s28, 4  ;;  %p7750_p12 = pneg %p7722_p9  ;;  %s7742_s27 = int_to_ptr.vmem [resolvable:$true] %s925_s27 }
  0x44   : > { %s7739_s9 = scalar_lea.hbm %s9175_s7, %s7733_s29  ;;  %s7072_s21 = scalar_lea.hbm %s9175_s7, 2048 }
  0x45   : > { %s7067_s23 = scalar_lea.hbm %s7739_s9, 1024  ;;  %p7073_p1 = scmp.lt.u32.totalorder %s7739_s9, %s9175_s7 }
  0x46   : > { %p7068_p11 = scmp.ne.s32.totalorder %s7739_s9, %s7067_s23  ;;  %p7074_p2 = scmp.lt.u32.totalorder %s7072_s21, %s7067_s23 }
  0x47   : > { %p7076_p4 = scmp.lt.u32.totalorder %s7067_s23, %s7739_s9 }
  0x48   : > { %p7070_p13 = pnand %p7750_p12, %p7068_p11  ;;  %p7075_p3 = por %p7074_p2, %p7073_p1 }
  0x4a   : > { %p7071_p0 = pneg %p7070_p13  ;;  %p7077_p5 = por %p7076_p4, %p7075_p3 }
  0x4c   : > { %p7078_p6 = pnand %p7077_p5, %p7071_p0 }
  0x4e   : > { %7081 = shalt.err (!%p7078_p6)
}
  0x4f   : > { %s7082_s26 = scalar_lea.vmem %s7742_s27, 1024  ;;  %s7499_s0 = smov [#allocation8]  }
  0x50   : > { %p7083_p8 = scmp.ne.s32.totalorder %s7742_s27, %s7082_s26  ;;  %s7087_s11 = sshll.u32 %s7499_s0, 4  ;;  %s7088_s11 = int_to_ptr.vmem [resolvable:$false] %s7087_s11 }
  0x51   : > { %s7089_s20 = scalar_lea.vmem %s7088_s11, 2048  ;;  %p7090_p10 = scmp.lt.s32.totalorder %s7742_s27, %s7088_s11 }
  0x52   : > { %p7085_p11 = pnand %p7083_p8, %p7750_p12  ;;  %p7091_p7 = scmp.lt.s32.totalorder %s7089_s20, %s7082_s26 }
  0x54   : > { %p7086_p13 = pneg %p7085_p11  ;;  %p7092_p1 = por %p7091_p7, %p7090_p10 }
  0x56   : > { %p7093_p2 = pnand %p7092_p1, %p7086_p13 }
  0x58   : > { %7096 = shalt.err (!%p7093_p2)
}
  0x59   : > { %s9107_s21 = smov 64   ;;  %s9109_s23 = smov 4  }
  0x5a   : > { %s9177_s26 = scalar_lea.sflag [#allocation9], %s7727_s4  ;;  %p1178_p7 = scmp.lt.s32.totalorder %s7497_s6, 3 }
  0x5b   : > { %6712 = dma.hbm_to_vmem [thread:$0]  (!%p7722_p9), %s7739_s9, 1024, %s7742_s27, %s9177_s26, %s9107_s21, %s9107_s21, %s9109_s23  }
  0x5c   : > { %s9178_s11 = sld [smem:[#allocation54_spill]]  ;;  %p9179_p10 = scmp.ge.s32.totalorder %s7497_s6, 1 }
  0x5d   : > { %s956_s19 = scalar_lea.vmem [#allocation11], %s7730_s8  ;;  %s9113_s27 = scalar_lea.sflag [#allocation12], %s7727_s4 }
  0x5e   : > { %p7787_p0 = pnand %p9179_p10, %p1178_p7  ;;  %s963_s17 = sshll.u32 %s956_s19, 4  ;;  %s7792_s17 = int_to_ptr.vmem [resolvable:$true] %s963_s17 }
  0x60   : > { %s9180_s7 = scalar_select %p7787_p0, 1, 0 }
  0x62   : > { %s7783_s20 = scalar_lea.hbm %s9178_s11, %s7733_s29  ;;  %9181 = sst [smem:[#allocation40_spill]] %s9180_s7 }
  0x63   : > { %s7097_s9 = scalar_lea.hbm %s7783_s20, 1024  ;;  %s7102_s0 = scalar_lea.hbm %s9178_s11, 2048 }
  0x64   : > { %p7098_p3 = scmp.ne.s32.totalorder %s7783_s20, %s7097_s9  ;;  %p7103_p6 = scmp.lt.u32.totalorder %s7783_s20, %s9178_s11 }
  0x65   : > { %p7104_p8 = scmp.lt.u32.totalorder %s7102_s0, %s7097_s9  ;;  %p7106_p13 = scmp.lt.u32.totalorder %s7097_s9, %s7783_s20 }
  0x66   : > { %p7100_p4 = pnand %p7098_p3, %p7750_p12 }
  0x67   : > { %p7105_p11 = por %p7104_p8, %p7103_p6 }
  0x68   : > { %p7101_p5 = pneg %p7100_p4 }
  0x69   : > { %p7107_p1 = por %p7106_p13, %p7105_p11 }
  0x6b   : > { %p7108_p2 = pnand %p7107_p1, %p7101_p5 }
  0x6d   : > { %7111 = shalt.err (!%p7108_p2)
}
  0x6e   : > { %s7112_s19 = scalar_lea.vmem %s7792_s17, 1024  ;;  %s7502_s26 = smov [#allocation11]  }
  0x6f   : > { %p7113_p7 = scmp.ne.s32.totalorder %s7792_s17, %s7112_s19  ;;  %s7117_s28 = sshll.u32 %s7502_s26, 4  ;;  %s7118_s28 = int_to_ptr.vmem [resolvable:$false] %s7117_s28 }
  0x70   : > { %s7119_s21 = scalar_lea.vmem %s7118_s28, 2048  ;;  %p7120_p4 = scmp.lt.s32.totalorder %s7792_s17, %s7118_s28 }
  0x71   : > { %p7115_p10 = pnand %p7113_p7, %p7750_p12  ;;  %p7121_p0 = scmp.lt.s32.totalorder %s7119_s21, %s7112_s19 }
  0x73   : > { %p7116_p3 = pneg %p7115_p10  ;;  %p7122_p6 = por %p7121_p0, %p7120_p4 }
  0x75   : > { %p7123_p8 = pnand %p7122_p6, %p7116_p3 }
  0x77   : > { %7126 = shalt.err (!%p7123_p8)
}
  0x78   : > { %s9182_s23 = smov 4   ;;  %s9183_s9 = smov 64  }
  0x79   : > { %6718 = dma.hbm_to_vmem [thread:$0]  (!%p7722_p9), %s7783_s20, 1024, %s7792_s17, %s9113_s27, %s9183_s9, %s9183_s9, %s9182_s23  }
  0x7a   : > { %s9184_s13 = sld [smem:[#allocation58_spill]]  ;;  %s1006_s28 = scalar_lea.vmem [#allocation14], %s7730_s8 }
  0x7b   : > { %s1013_s21 = sshll.u32 %s1006_s28, 4  ;;  %s9114_s11 = scalar_lea.sflag [#allocation15], %s7727_s4  ;;  %s7828_s21 = int_to_ptr.vmem [resolvable:$true] %s1013_s21 }
  0x80   : > { %s7825_s19 = scalar_lea.hbm %s9184_s13, %s7733_s29  ;;  %s7132_s0 = scalar_lea.hbm %s9184_s13, 2048 }
  0x81   : > { %s7127_s6 = scalar_lea.hbm %s7825_s19, 1024  ;;  %p7133_p13 = scmp.lt.u32.totalorder %s7825_s19, %s9184_s13 }
  0x82   : > { %p7128_p0 = scmp.ne.s32.totalorder %s7825_s19, %s7127_s6  ;;  %p7134_p1 = scmp.lt.u32.totalorder %s7132_s0, %s7127_s6 }
  0x83   : > { %p7136_p7 = scmp.lt.u32.totalorder %s7127_s6, %s7825_s19 }
  0x84   : > { %p7130_p5 = pnand %p7128_p0, %p7750_p12  ;;  %p7135_p2 = por %p7134_p1, %p7133_p13 }
  0x86   : > { %p7131_p11 = pneg %p7130_p5  ;;  %p7137_p10 = por %p7136_p7, %p7135_p2 }
  0x88   : > { %p7138_p3 = pnand %p7137_p10, %p7131_p11 }
  0x8a   : > { %7141 = shalt.err (!%p7138_p3)
}
  0x8b   : > { %s7142_s28 = scalar_lea.vmem %s7828_s21, 1024  ;;  %s7503_s17 = smov [#allocation14]  }
  0x8c   : > { %p7143_p4 = scmp.ne.s32.totalorder %s7828_s21, %s7142_s28  ;;  %s7147_s20 = sshll.u32 %s7503_s17, 4  ;;  %s7148_s20 = int_to_ptr.vmem [resolvable:$false] %s7147_s20 }
  0x8d   : > { %s7149_s27 = scalar_lea.vmem %s7148_s20, 2048  ;;  %p7150_p0 = scmp.lt.s32.totalorder %s7828_s21, %s7148_s20 }
  0x8e   : > { %p7145_p6 = pnand %p7143_p4, %p7750_p12  ;;  %p7151_p5 = scmp.lt.s32.totalorder %s7149_s27, %s7142_s28 }
  0x90   : > { %p7146_p8 = pneg %p7145_p6  ;;  %p7152_p13 = por %p7151_p5, %p7150_p0 }
  0x92   : > { %p7153_p1 = pnand %p7152_p13, %p7146_p8 }
  0x94   : > { %7156 = shalt.err (!%p7153_p1)
}
  0x95   : > { %6724 = dma.hbm_to_vmem [thread:$0]  (!%p7722_p9), %s7825_s19, 1024, %s7828_s21, %s9114_s11, %s9183_s9, %s9183_s9, %s9182_s23  }
  0x96   : > { %s9185_s16 = sld [smem:[#allocation61_spill]]  ;;  %s1054_s28 = scalar_lea.vmem [#allocation17], %s7730_s8 }
  0x97   : > { %s1061_s17 = sshll.u32 %s1054_s28, 4  ;;  %s9115_s20 = scalar_lea.sflag [#allocation18], %s7727_s4  ;;  %s7864_s17 = int_to_ptr.vmem [resolvable:$true] %s1061_s17 }
  0x9c   : > { %s7861_s26 = scalar_lea.hbm %s9185_s16, %s7733_s29  ;;  %s7162_s6 = scalar_lea.hbm %s9185_s16, 2048 }
  0x9d   : > { %s7157_s27 = scalar_lea.hbm %s7861_s26, 1024  ;;  %p7163_p10 = scmp.lt.u32.totalorder %s7861_s26, %s9185_s16 }
  0x9e   : > { %p7158_p11 = scmp.ne.s32.totalorder %s7861_s26, %s7157_s27  ;;  %p7164_p3 = scmp.lt.u32.totalorder %s7162_s6, %s7157_s27 }
  0x9f   : > { %p7166_p6 = scmp.lt.u32.totalorder %s7157_s27, %s7861_s26 }
  0xa0   : > { %p7160_p2 = pnand %p7158_p11, %p7750_p12  ;;  %p7165_p4 = por %p7164_p3, %p7163_p10 }
  0xa2   : > { %p7161_p7 = pneg %p7160_p2  ;;  %p7167_p8 = por %p7166_p6, %p7165_p4 }
  0xa4   : > { %p7168_p0 = pnand %p7167_p8, %p7161_p7 }
  0xa6   : > { %7171 = shalt.err (!%p7168_p0)
}
  0xa7   : > { %s7172_s28 = scalar_lea.vmem %s7864_s17, 1024  ;;  %s7504_s19 = smov [#allocation17]  }
  0xa8   : > { %p7173_p5 = scmp.ne.s32.totalorder %s7864_s17, %s7172_s28  ;;  %s7177_s21 = sshll.u32 %s7504_s19, 4  ;;  %s7178_s21 = int_to_ptr.vmem [resolvable:$false] %s7177_s21 }
  0xa9   : > { %s7179_s11 = scalar_lea.vmem %s7178_s21, 2048  ;;  %p7180_p11 = scmp.lt.s32.totalorder %s7864_s17, %s7178_s21 }
  0xaa   : > { %p7175_p13 = pnand %p7173_p5, %p7750_p12  ;;  %p7181_p2 = scmp.lt.s32.totalorder %s7179_s11, %s7172_s28 }
  0xac   : > { %p7176_p1 = pneg %p7175_p13  ;;  %p7182_p10 = por %p7181_p2, %p7180_p11 }
  0xae   : > { %p7183_p3 = pnand %p7182_p10, %p7176_p1 }
  0xb0   : > { %7186 = shalt.err (!%p7183_p3)
}
  0xb1   : > { %6730 = dma.hbm_to_vmem [thread:$0]  (!%p7722_p9), %s7861_s26, 1024, %s7864_s17, %s9115_s20, %s9183_s9, %s9183_s9, %s9182_s23  }
  0xb2   : > { %s5879_s27 = sshll.u32 %s7720_s12, 8  ;;  %s6113_s6 = sshll.u32 %s7493_s3, 12 }
  0xb3   : > { %s9186_s22 = sld [smem:[#allocation67_spill]]  ;;  %s1120_s21 = scalar_lea.vmem [#allocation20], %s5879_s27 }
  0xb4   : > { %s1129_s11 = sshll.u32 %s1120_s21, 4  ;;  %s9126_s13 = scalar_lea.sflag [#allocation21], %s7727_s4  ;;  %s7904_s11 = int_to_ptr.vmem [resolvable:$true] %s1129_s11 }
  0xb9   : > { %s7900_s19 = scalar_lea.hbm %s9186_s22, %s6113_s6  ;;  %s7192_s0 = scalar_lea.hbm %s9186_s22, 8192 }
  0xba   : > { %s7187_s16 = scalar_lea.hbm %s7900_s19, 4096  ;;  %p7193_p8 = scmp.lt.u32.totalorder %s7900_s19, %s9186_s22 }
  0xbb   : > { %p7188_p7 = scmp.ne.s32.totalorder %s7900_s19, %s7187_s16  ;;  %p7194_p0 = scmp.lt.u32.totalorder %s7192_s0, %s7187_s16 }
  0xbc   : > { %p7196_p13 = scmp.lt.u32.totalorder %s7187_s16, %s7900_s19 }
  0xbd   : > { %p7190_p4 = pnand %p7188_p7, %p7750_p12  ;;  %p7195_p5 = por %p7194_p0, %p7193_p8 }
  0xbf   : > { %p7191_p6 = pneg %p7190_p4  ;;  %p7197_p1 = por %p7196_p13, %p7195_p5 }
  0xc1   : > { %p7198_p11 = pnand %p7197_p1, %p7191_p6 }
  0xc3   : > { %7201 = shalt.err (!%p7198_p11)
}
  0xc4   : > { %s7202_s21 = scalar_lea.vmem %s7904_s11, 4096  ;;  %s7505_s26 = smov [#allocation20]  }
  0xc5   : > { %p7203_p2 = scmp.ne.s32.totalorder %s7904_s11, %s7202_s21  ;;  %s7207_s17 = sshll.u32 %s7505_s26, 4  ;;  %s7208_s17 = int_to_ptr.vmem [resolvable:$false] %s7207_s17 }
  0xc6   : > { %s7209_s20 = scalar_lea.vmem %s7208_s17, 8192  ;;  %p7210_p7 = scmp.lt.s32.totalorder %s7904_s11, %s7208_s17 }
  0xc7   : > { %p7205_p10 = pnand %p7203_p2, %p7750_p12  ;;  %p7211_p4 = scmp.lt.s32.totalorder %s7209_s20, %s7202_s21 }
  0xc9   : > { %p7206_p3 = pneg %p7205_p10  ;;  %p7212_p8 = por %p7211_p4, %p7210_p7 }
  0xcb   : > { %p7213_p0 = pnand %p7212_p8, %p7206_p3 }
  0xcd   : > { %7216 = shalt.err (!%p7213_p0)
}
  0xce   : > { %s7506_s16 = smov 256   ;;  %s7507_s0 = smov 16  }
  0xcf   : > { %6736 = dma.hbm_to_vmem [thread:$0]  (!%p7722_p9), %s7900_s19, 4096, %s7904_s11, %s9126_s13, %s7506_s16, %s7506_s16, %s7507_s0  }
  0xd0   : > { %s9187_s24 = sld [smem:[#allocation69_spill]]  ;;  %s7939_s17 = scalar_lea.vmem [#allocation22], %s5879_s27 }
  0xd1   : > { %s7943_s22 = sshll.u32 %s7493_s3, 4  ;;  %s892_s14 = scalar_lea.vmem [#allocation5], %s7720_s12 }
  0xd2   : > { %s899_s30 = sshll.u32 %s892_s14, 4  ;;  %s9188_s5 = sld [smem:[#allocation50_spill]]  ;;  %s900_s30 = int_to_ptr.vmem [resolvable:$true] %s899_s30 }
  0xd6   : > { %s7935_s26 = scalar_lea.hbm %s9187_s24, %s6113_s6  ;;  %s890_s6 = scalar_lea.sflag [#allocation6], %s7720_s12 }
  0xd8   : > { %s9189_s7 = smov %s9188_s5  ;;  %s7950_s19 = scalar_lea.hbm %s9188_s5, %s7943_s22 }
  0xd9   : > { %s7217_s27 = scalar_lea.hbm %s7950_s19, 16  ;;  %s7222_s14 = scalar_lea.hbm %s9189_s7, 32 }
  0xda   : > { %p7218_p6 = scmp.ne.s32.totalorder %s7950_s19, %s7217_s27  ;;  %p7223_p1 = scmp.lt.u32.totalorder %s7950_s19, %s9189_s7 }
  0xdb   : > { %p7224_p11 = scmp.lt.u32.totalorder %s7222_s14, %s7217_s27  ;;  %p7226_p10 = scmp.lt.u32.totalorder %s7217_s27, %s7950_s19 }
  0xdc   : > { %p7220_p5 = pnand %p7218_p6, %p7750_p12 }
  0xdd   : > { %p7225_p2 = por %p7224_p11, %p7223_p1 }
  0xde   : > { %p7221_p13 = pneg %p7220_p5 }
  0xdf   : > { %p7227_p3 = por %p7226_p10, %p7225_p2 }
  0xe1   : > { %p7228_p7 = pnand %p7227_p3, %p7221_p13 }
  0xe3   : > { %7231 = shalt.err (!%p7228_p7)
}
  0xe4   : > { %s7232_s5 = scalar_lea.vmem %s900_s30, 16  ;;  %s7508_s10 = smov [#allocation5]  }
  0xe5   : > { %p7233_p4 = scmp.ne.s32.totalorder %s900_s30, %s7232_s5  ;;  %s7237_s2 = sshll.u32 %s7508_s10, 4  ;;  %s7238_s2 = int_to_ptr.vmem [resolvable:$false] %s7237_s2 }
  0xe6   : > { %s7239_s21 = scalar_lea.vmem %s7238_s2, 32  ;;  %p7240_p6 = scmp.lt.s32.totalorder %s900_s30, %s7238_s2 }
  0xe7   : > { %p7235_p8 = pnand %p7233_p4, %p7750_p12  ;;  %p7241_p5 = scmp.lt.s32.totalorder %s7239_s21, %s7232_s5 }
  0xe9   : > { %p7236_p0 = pneg %p7235_p8  ;;  %p7242_p9 = por %p7241_p5, %p7240_p6 }
  0xeb   : > { %p7243_p1 = pnand %p7242_p9, %p7236_p0 }
  0xed   : > { %7246 = shalt.err (!%p7243_p1)
}
  0xee   : > { %p9190_p11 = scmp.ne.s32.totalorder %s9174_s1, 0  ;;  %s9191_s16 = sld [smem:[#allocation53_spill]] }
  0xef   : > { %s938_s0 = scalar_lea.vmem [#allocation10], %s7720_s12  ;;  %s9192_s2 = sld [smem:[#allocation55_spill]] }
  0xf0   : > { %6709 = dma.hbm_to_vmem [thread:$0]  (!%p9190_p11), %s7950_s19, 16, %s900_s30, %s890_s6  }
  0xf1   : > { %s945_s28 = sshll.u32 %s938_s0, 4  ;;  %s946_s28 = int_to_ptr.vmem [resolvable:$true] %s945_s28 }
  0xf4   : > { %s7974_s14 = scalar_lea.hbm %s9191_s16, %s7943_s22  ;;  %s7252_s6 = scalar_lea.hbm %s9191_s16, 32 }
  0xf5   : > { %s7981_s21 = scalar_lea.hbm %s9192_s2, %s7943_s22  ;;  %s7247_s13 = scalar_lea.hbm %s7974_s14, 16 }
  0xf6   : > { %p7248_p9 = scmp.ne.s32.totalorder %s7974_s14, %s7247_s13  ;;  %p7253_p10 = scmp.lt.u32.totalorder %s7974_s14, %s9191_s16 }
  0xf7   : > { %p7254_p3 = scmp.lt.u32.totalorder %s7252_s6, %s7247_s13  ;;  %p7256_p4 = scmp.lt.u32.totalorder %s7247_s13, %s7974_s14 }
  0xf8   : > { %p7250_p13 = pnand %p7248_p9, %p7750_p12 }
  0xf9   : > { %p7255_p7 = por %p7254_p3, %p7253_p10 }
  0xfa   : > { %p7251_p2 = pneg %p7250_p13 }
  0xfb   : > { %p7257_p8 = por %p7256_p4, %p7255_p7 }
  0xfd   : > { %p7258_p0 = pnand %p7257_p8, %p7251_p2 }
  0xff   : > { %7261 = shalt.err (!%p7258_p0)
}
 0x100   : > { %s7262_s22 = scalar_lea.vmem %s946_s28, 16  ;;  %s7509_s0 = smov [#allocation10]  }
 0x101   : > { %p7263_p6 = scmp.ne.s32.totalorder %s946_s28, %s7262_s22  ;;  %s7267_s5 = sshll.u32 %s7509_s0, 4  ;;  %s7268_s5 = int_to_ptr.vmem [resolvable:$false] %s7267_s5 }
 0x102   : > { %s7269_s10 = scalar_lea.vmem %s7268_s5, 32  ;;  %p7270_p9 = scmp.lt.s32.totalorder %s946_s28, %s7268_s5 }
 0x103   : > { %p7265_p5 = pnand %p7263_p6, %p7750_p12  ;;  %p7271_p13 = scmp.lt.s32.totalorder %s7269_s10, %s7262_s22 }
 0x105   : > { %p7266_p1 = pneg %p7265_p5  ;;  %p7272_p11 = por %p7271_p13, %p7270_p9 }
 0x107   : > { %p7273_p3 = pnand %p7272_p11, %p7266_p1 }
 0x109   : > { %7276 = shalt.err (!%p7273_p3)
}
 0x10a   : > { %p9193_p10 = scmp.ne.s32.totalorder %s9174_s1, 0  ;;  %s9194_s13 = scalar_lea.sflag [#allocation9], %s7727_s4 }
 0x10b   : > { %s976_s30 = scalar_lea.vmem [#allocation13], %s7720_s12  ;;  %s9195_s15 = sld [smem:[#allocation60_spill]] }
 0x10c   : > { %6715 = dma.hbm_to_vmem [thread:$0]  (!%p9193_p10), %s7974_s14, 16, %s946_s28, %s9194_s13  }
 0x10d   : > { %s983_s19 = sshll.u32 %s976_s30, 4  ;;  %s7277_s22 = scalar_lea.hbm %s7981_s21, 16  ;;  %s984_s19 = int_to_ptr.vmem [resolvable:$true] %s983_s19 }
 0x10e   : > { %p7278_p11 = scmp.ne.s32.totalorder %s7981_s21, %s7277_s22  ;;  %s7282_s10 = scalar_lea.hbm %s9192_s2, 32 }
 0x10f   : > { %p7283_p4 = scmp.lt.u32.totalorder %s7981_s21, %s9192_s2  ;;  %p7284_p8 = scmp.lt.u32.totalorder %s7282_s10, %s7277_s22 }
 0x110   : > { %p7280_p2 = pnand %p7278_p11, %p7750_p12  ;;  %p7286_p6 = scmp.lt.u32.totalorder %s7277_s22, %s7981_s21 }
 0x111   : > { %s8007_s11 = scalar_lea.hbm %s9195_s15, %s7733_s29  ;;  %p7285_p0 = por %p7284_p8, %p7283_p4 }
 0x112   : > { %p7281_p7 = pneg %p7280_p2 }
 0x113   : > { %p7287_p5 = por %p7286_p6, %p7285_p0 }
 0x115   : > { %p7288_p1 = pnand %p7287_p5, %p7281_p7 }
 0x117   : > { %7291 = shalt.err (!%p7288_p1)
}
 0x118   : > { %s7292_s12 = scalar_lea.vmem %s984_s19, 16  ;;  %s7510_s14 = smov [#allocation13]  }
 0x119   : > { %p7293_p9 = scmp.ne.s32.totalorder %s984_s19, %s7292_s12  ;;  %s7297_s28 = sshll.u32 %s7510_s14, 4  ;;  %s7298_s28 = int_to_ptr.vmem [resolvable:$false] %s7297_s28 }
 0x11a   : > { %s7299_s13 = scalar_lea.vmem %s7298_s28, 32  ;;  %p7300_p11 = scmp.lt.s32.totalorder %s984_s19, %s7298_s28 }
 0x11b   : > { %p7295_p13 = pnand %p7293_p9, %p7750_p12  ;;  %p7301_p2 = scmp.lt.s32.totalorder %s7299_s13, %s7292_s12 }
 0x11d   : > { %p7296_p3 = pneg %p7295_p13  ;;  %p7302_p10 = por %p7301_p2, %p7300_p11 }
 0x11f   : > { %p7303_p4 = pnand %p7302_p10, %p7296_p3 }
 0x121   : > { %7306 = shalt.err (!%p7303_p4)
}
 0x122   : > { %p9196_p8 = scmp.ne.s32.totalorder %s9174_s1, 0  ;;  %s9197_s7 = scalar_lea.sflag [#allocation12], %s7727_s4 }
 0x123   : > { %s1033_s20 = scalar_lea.vmem [#allocation16], %s7730_s8  ;;  %s9198_s18 = sld [smem:[#allocation63_spill]] }
 0x124   : > { %6721 = dma.hbm_to_vmem [thread:$0]  (!%p9196_p8), %s7981_s21, 16, %s984_s19, %s9197_s7  }
 0x125   : > { %s1040_s30 = sshll.u32 %s1033_s20, 4  ;;  %s7307_s0 = scalar_lea.hbm %s8007_s11, 1024  ;;  %s8029_s30 = int_to_ptr.vmem [resolvable:$true] %s1040_s30 }
 0x126   : > { %p7308_p10 = scmp.ne.s32.totalorder %s8007_s11, %s7307_s0  ;;  %s7312_s12 = scalar_lea.hbm %s9195_s15, 2048 }
 0x127   : > { %p7313_p6 = scmp.lt.u32.totalorder %s8007_s11, %s9195_s15  ;;  %p7314_p5 = scmp.lt.u32.totalorder %s7312_s12, %s7307_s0 }
 0x128   : > { %p7310_p7 = pnand %p7308_p10, %p7750_p12  ;;  %p7316_p9 = scmp.lt.u32.totalorder %s7307_s0, %s8007_s11 }
 0x129   : > { %s8035_s22 = scalar_lea.hbm %s9198_s18, %s7733_s29  ;;  %p7315_p1 = por %p7314_p5, %p7313_p6 }
 0x12a   : > { %p7311_p0 = pneg %p7310_p7 }
 0x12b   : > { %p7317_p13 = por %p7316_p9, %p7315_p1 }
 0x12d   : > { %p7318_p3 = pnand %p7317_p13, %p7311_p0 }
 0x12f   : > { %7321 = shalt.err (!%p7318_p3)
}
 0x130   : > { %s7322_s29 = scalar_lea.vmem %s8029_s30, 1024  ;;  %s7511_s19 = smov [#allocation16]  }
 0x131   : > { %p7323_p11 = scmp.ne.s32.totalorder %s8029_s30, %s7322_s29  ;;  %s7327_s28 = sshll.u32 %s7511_s19, 4  ;;  %s7328_s28 = int_to_ptr.vmem [resolvable:$false] %s7327_s28 }
 0x132   : > { %s7329_s13 = scalar_lea.vmem %s7328_s28, 2048  ;;  %p7330_p10 = scmp.lt.s32.totalorder %s8029_s30, %s7328_s28 }
 0x133   : > { %p7325_p2 = pnand %p7323_p11, %p7750_p12  ;;  %p7331_p7 = scmp.lt.s32.totalorder %s7329_s13, %s7322_s29 }
 0x135   : > { %p7326_p4 = pneg %p7325_p2  ;;  %p7332_p6 = por %p7331_p7, %p7330_p10 }
 0x137   : > { %p7333_p5 = pnand %p7332_p6, %p7326_p4 }
 0x139   : > { %7336 = shalt.err (!%p7333_p5)
}
 0x13a   : > { %s9199_s7 = scalar_lea.sflag [#allocation15], %s7727_s4  ;;  %s9200_s20 = sshll.u32 %s7939_s17, 4  ;;  %s8065_s20 = int_to_ptr.vmem [resolvable:$true] %s9200_s20 }
 0x13b   : > { %6727 = dma.hbm_to_vmem [thread:$0]  (!%p9196_p8), %s8007_s11, 1024, %s8029_s30, %s9199_s7, %s9183_s9, %s9183_s9, %s9182_s23  }
 0x13c   : > { %s1081_s6 = scalar_lea.vmem [#allocation19], %s7730_s8  ;;  %s7337_s0 = scalar_lea.hbm %s8035_s22, 1024 }
 0x13d   : > { %s1088_s27 = sshll.u32 %s1081_s6, 4  ;;  %p7338_p0 = scmp.ne.s32.totalorder %s8035_s22, %s7337_s0  ;;  %s8068_s27 = int_to_ptr.vmem [resolvable:$true] %s1088_s27 }
 0x13e   : > { %s7342_s12 = scalar_lea.hbm %s9198_s18, 2048  ;;  %p7343_p13 = scmp.lt.u32.totalorder %s8035_s22, %s9198_s18 }
 0x13f   : > { %p7340_p1 = pnand %p7338_p0, %p7750_p12  ;;  %p7344_p3 = scmp.lt.u32.totalorder %s7342_s12, %s7337_s0 }
 0x140   : > { %p7346_p2 = scmp.lt.u32.totalorder %s7337_s0, %s8035_s22 }
 0x141   : > { %p7341_p9 = pneg %p7340_p1  ;;  %p7345_p11 = por %p7344_p3, %p7343_p13 }
 0x143   : > { %p7347_p4 = por %p7346_p2, %p7345_p11 }
 0x145   : > { %p7348_p10 = pnand %p7347_p4, %p7341_p9 }
 0x147   : > { %7351 = shalt.err (!%p7348_p10)
}
 0x148   : > { %s7352_s8 = scalar_lea.vmem %s8068_s27, 1024  ;;  %s7512_s17 = smov [#allocation19]  }
 0x149   : > { %p7353_p7 = scmp.ne.s32.totalorder %s8068_s27, %s7352_s8  ;;  %s7357_s11 = sshll.u32 %s7512_s17, 4  ;;  %s7358_s11 = int_to_ptr.vmem [resolvable:$false] %s7357_s11 }
 0x14a   : > { %s7359_s30 = scalar_lea.vmem %s7358_s11, 2048  ;;  %p7360_p0 = scmp.lt.s32.totalorder %s8068_s27, %s7358_s11 }
 0x14b   : > { %p7355_p6 = pnand %p7353_p7, %p7750_p12  ;;  %p7361_p1 = scmp.lt.s32.totalorder %s7359_s30, %s7352_s8 }
 0x14d   : > { %p7356_p5 = pneg %p7355_p6  ;;  %p7362_p13 = por %p7361_p1, %p7360_p0 }
 0x14f   : > { %p7363_p3 = pnand %p7362_p13, %p7356_p5 }
 0x151   : > { %7366 = shalt.err (!%p7363_p3)
}
 0x152   : > { %s9201_s29 = scalar_lea.sflag [#allocation18], %s7727_s4  ;;  %s7367_s19 = scalar_lea.hbm %s7935_s26, 4096 }
 0x153   : > { %6733 = dma.hbm_to_vmem [thread:$0]  (!%p9196_p8), %s8035_s22, 1024, %s8068_s27, %s9201_s29, %s9183_s9, %s9183_s9, %s9182_s23  }
 0x154   : > { %p7368_p9 = scmp.ne.s32.totalorder %s7935_s26, %s7367_s19  ;;  %s7372_s7 = scalar_lea.hbm %s9187_s24, 8192 }
 0x155   : > { %p7373_p4 = scmp.lt.u32.totalorder %s7935_s26, %s9187_s24  ;;  %p7374_p10 = scmp.lt.u32.totalorder %s7372_s7, %s7367_s19 }
 0x156   : > { %p7370_p11 = pnand %p7368_p9, %p7750_p12  ;;  %p7376_p6 = scmp.lt.u32.totalorder %s7367_s19, %s7935_s26 }
 0x157   : > { %p7375_p7 = por %p7374_p10, %p7373_p4 }
 0x158   : > { %p7371_p2 = pneg %p7370_p11 }
 0x159   : > { %p7377_p5 = por %p7376_p6, %p7375_p7 }
 0x15b   : > { %p7378_p0 = pnand %p7377_p5, %p7371_p2 }
 0x15d   : > { %7381 = shalt.err (!%p7378_p0)
}
 0x15e   : > { %s7382_s22 = scalar_lea.vmem %s8065_s20, 4096  ;;  %s7513_s27 = smov [#allocation22]  }
 0x15f   : > { %p7383_p1 = scmp.ne.s32.totalorder %s8065_s20, %s7382_s22  ;;  %s7387_s5 = sshll.u32 %s7513_s27, 4  ;;  %s7388_s5 = int_to_ptr.vmem [resolvable:$false] %s7387_s5 }
 0x160   : > { %s7389_s10 = scalar_lea.vmem %s7388_s5, 8192  ;;  %p7390_p9 = scmp.lt.s32.totalorder %s8065_s20, %s7388_s5 }
 0x161   : > { %p7385_p13 = pnand %p7383_p1, %p7750_p12  ;;  %p7391_p11 = scmp.lt.s32.totalorder %s7389_s10, %s7382_s22 }
 0x163   : > { %p7386_p3 = pneg %p7385_p13  ;;  %p7392_p4 = por %p7391_p11, %p7390_p9 }
 0x165   : > { %p7393_p10 = pnand %p7392_p4, %p7386_p3 }
 0x167   : > { %7396 = shalt.err (!%p7393_p10)
}
 0x168   : > { %s9202_s12 = scalar_lea.sflag [#allocation21], %s7727_s4  ;;  %s9203_s25 = sld [smem:[#allocation40_spill]] }
 0x169   : > { %6739 = dma.hbm_to_vmem [thread:$0]  (!%p9196_p8), %s7935_s26, 4096, %s8065_s20, %s9202_s12, %s9183_s9, %s9183_s9, %s9182_s23  }
 0x16e   : > { %p9204_p12 = scmp.ne.s32.totalorder %s9203_s25, 0 }
 0x170   : > { %1182 = sbr.rel (%p9204_p12) target bundleno = 8100 (0x1fa4), region = 132 }
 0x177   : > { %s9205_s14 = sld [smem:[#allocation31_spill]] }
 0x178   : > { %s9206_s21 = sld [smem:[#allocation38_spill]] }
 0x17d   : > { %s8125_s8 = sand.u32 1, %s9205_s14  }
 0x17e   : > { %s1185_s17 = scalar_lea.sflag [#allocation6], %s8125_s8  ;;  %p9207_p2 = scmp.ne.s32.totalorder %s9206_s21, 0 }
 0x180   : > { %7448 = dma.done.wait (%p9207_p2), %s1185_s17, 16  }
 0x181   : > { %7450 = vsyncadd (%p9207_p2), %s1185_s17, 4294967280  ;;  %s9208_s1 = sld [smem:[#allocation36_spill]]  ;;  %s5886_s23 = sshll.u32 %s8125_s8, 6 }
 0x182   : > { %s8135_s26 = scalar_lea.vmem [#allocation8], %s5886_s23 }
 0x187   : > { %s1192_s4 = sand.u32 1, %s9208_s1  }
 0x188   : > { %s1193_s9 = scalar_lea.sflag [#allocation9], %s1192_s4 }
 0x189   : > { %7452 = dma.done.wait (%p9207_p2), %s1193_s9, 1040  }
 0x18a   : > { %7454 = vsyncadd (%p9207_p2), %s1193_s9, 4294966256  ;;  %s1210_s30 = scalar_lea.sflag [#allocation12], %s1192_s4  ;;  %s8142_s29 = scalar_lea.vmem [#allocation11], %s5886_s23 }
 0x18b   : > { %7456 = dma.done.wait (%p9207_p2), %s1210_s30, 1040  }
 0x18c   : > { %7458 = vsyncadd (%p9207_p2), %s1210_s30, 4294966256  ;;  %s1227_s28 = scalar_lea.sflag [#allocation15], %s1192_s4  ;;  %s8149_s13 = scalar_lea.vmem [#allocation14], %s5886_s23 }
 0x18d   : > { %9209 = sst [smem:[#allocation41_spill]] %s8149_s13 }
 0x18e   : > { %7460 = dma.done.wait (%p9207_p2), %s1227_s28, 2048  }
 0x18f   : > { %7462 = vsyncadd (%p9207_p2), %s1227_s28, 4294965248  ;;  %s8155_s7 = scalar_lea.vmem [#allocation16], %s5886_s23  ;;  %s1245_s6 = scalar_lea.sflag [#allocation18], %s1192_s4 }
 0x190   : > { %s8157_s0 = scalar_lea.vmem [#allocation17], %s5886_s23 }
 0x191   : > { %9210 = sst [smem:[#allocation42_spill]] %s8157_s0 }
 0x192   : > { %7464 = dma.done.wait (%p9207_p2), %s1245_s6, 2048  }
 0x193   : > { %7466 = vsyncadd (%p9207_p2), %s1245_s6, 4294965248  ;;  %s5892_s22 = sshll.u32 %s8125_s8, 8  ;;  %s8164_s27 = scalar_lea.vmem [#allocation19], %s5886_s23 }
 0x194   : > { %9211 = sst [smem:[#allocation43_spill]] %s8164_s27  ;;  %s1263_s5 = scalar_lea.sflag [#allocation21], %s1192_s4 }
 0x195   : > { %s8166_s10 = scalar_lea.vmem [#allocation20], %s5892_s22 }
 0x196   : > { %9212 = sst [smem:[#allocation44_spill]] %s8166_s10 }
 0x197   : > { %7468 = dma.done.wait (%p9207_p2), %s1263_s5, 8192  }
 0x198   : > { %7470 = vsyncadd (%p9207_p2), %s1263_s5, 4294959104  ;;  %s9213_s12 = sld [smem:[#allocation33_spill]]  ;;  %s9217_s11 = sld [smem:[#allocation49_spill]] }
 0x199   : > { %s9218_s18 = sld [smem:[#allocation51_spill]]  ;;  %s9221_s14 = sld [smem:[#allocation62_spill]] }
 0x19a   : > { %s9222_s19 = sld [smem:[#allocation64_spill]]  ;;  %s9224_s21 = sld [smem:[#allocation66_spill]] }
 0x19b   : > { %s9225_s30 = sld [smem:[#allocation70_spill]]  ;;  %s9226_s5 = sld [smem:[#allocation68_spill]] }
 0x19c   : > { %s8234_s20 = scalar_lea.vmem [#allocation22], %s5892_s22 }
 0x19e   : > { %p1462_p8 = scmp.lt.s32.totalorder %s9213_s12, 1  ;;  %p1515_p7 = scmp.eq.s32.totalorder %s9213_s12, 0 }
 0x1a0   : > { %s8175_s25 = scalar_select %p1462_p8, %s9213_s12, 1 }
 0x1a2   : > { %s6115_s28 = sshll.u32 %s8175_s25, 6  ;;  %s1489_s17 = scalar_lea.vmem %s9221_s14, %s8175_s25 }
 0x1a3   : > { %s8193_s2 = scalar_lea.vmem %s9217_s11, %s6115_s28  ;;  %s8198_s24 = scalar_lea.vmem %s9218_s18, %s6115_s28 }
 0x1a4   : > { %s1492_s27 = scalar_lea.vmem %s9222_s19, %s8175_s25  ;;  %s9223_s18 = sld [smem:[#allocation65_spill]] }
 0x1a5   : > { %s1498_s3 = scalar_lea.vmem %s9224_s21, %s8175_s25  ;;  %s5898_s1 = sshll.u32 %s8175_s25, 2 }
 0x1a6   : > { %s1512_s9 = scalar_lea.vmem %s9225_s30, %s8175_s25  ;;  %s8232_s14 = scalar_lea.vmem %s9226_s5, %s5898_s1 }
 0x1a7   : > { %1520 = sbr.rel (!%p1515_p7) target bundleno = 433 (0x1b1), region = 180  ;;  %s9227_s19 = sld [smem:[#allocation45_spill]] (%p1515_p7) }
 0x1aa   : > { %s1495_s16 = scalar_lea.vmem %s9223_s18, %s8175_s25 }
 0x1ad   : > { %v6143_v0 = vld [vmem:[%s9227_s19] sm:$0xff] (%p1515_p7)  }
 0x1ae   : > { %v6144_v1 = vunpack.c.l.bf16 %v6143_v0  ;;  %v6145_v2 = vunpack.c.h.bf16 %v6143_v0 }
 0x1b0   : > { %1525 = vst [vmem:[#allocation2] sm:$0xff] %v6144_v1  ;;  %1526 = vst [vmem:[#allocation2 + $0x8] sm:$0xff] %v6145_v2 }
 0x1b1 PF: > { %v6805_v5 = vld [vmem:[%s8193_s2] sm:$0xff]   ;;  %v6807_v7 = vld [vmem:[%s8193_s2 + $0x8] sm:$0xff]   ;;  %v7514_v8 = vmov 0.0   ;;  %v6809_v18 = vld [vmem:[%s8193_s2 + $0x10] sm:$0xff]   ;;  %vm7515_vm0 = vmmov 0   ;;  %s9228_s13 = sld [smem:[#allocation47_spill]] }
 0x1b2   : > { %v6806_v6 = vld [vmem:[%s8198_s24] sm:$0xff]   ;;  %6328 = vmatprep.subr.bf16.mxu0 %v7514_v8  ;;  %6348 = vmatprep.subr.bf16.mxu1 %v7514_v8  ;;  %v6808_v17 = vld [vmem:[%s8198_s24 + $0x8] sm:$0xff]   ;;  %v6810_v19 = vld [vmem:[%s8198_s24 + $0x10] sm:$0xff]   ;;  %s9230_s4 = sld [smem:[#allocation48_spill]]  ;;  %vm1951_vm1 = vcmask 261120   ;;  %s9232_s18 = scalar_lea.vmem [#allocation5], %s8125_s8 }
 0x1b3   : > { %6329 = vmatpush3.bf16.msra.mxu0 %v6805_v5  ;;  %6349 = vmatpush3.bf16.msra.mxu1 %v6806_v6  ;;  %v6811_v20 = vld [vmem:[%s8193_s2 + $0x18] sm:$0xff]   ;;  %v6813_v22 = vld [vmem:[%s8193_s2 + $0x20] sm:$0xff]   ;;  %v6815_v24 = vld [vmem:[%s8193_s2 + $0x28] sm:$0xff]   ;;  %vm2072_vm2 = vcmask 1043456   ;;  %vm2044_vm4 = vcmask 64512   ;;  %s7516_s28 = smov 96  }
 0x1b4   : > { %6330 = vmatprep.subr.bf16.mxu0 %v7514_v8  ;;  %6350 = vmatprep.subr.bf16.mxu1 %v7514_v8  ;;  %v6812_v21 = vld [vmem:[%s8198_s24 + $0x18] sm:$0xff]   ;;  %v6814_v23 = vld [vmem:[%s8198_s24 + $0x20] sm:$0xff]   ;;  %v6816_v25 = vld [vmem:[%s8198_s24 + $0x28] sm:$0xff]   ;;  %vm2164_vm5 = vcmask 257024   ;;  %s7517_s21 = smov 64   ;;  %s7518_s1 = smov 32  }
 0x1b5   : > { %6344 = vmatprep.mubr.msk.bf16.mxu0 %vm7515_vm0, %v7514_v8  ;;  %6364 = vmatprep.mubr.msk.bf16.mxu1 %vm7515_vm0, %v7514_v8  ;;  %v6817_v26 = vld [vmem:[%s8193_s2 + $0x30] sm:$0xff]   ;;  %v6819_v28 = vld [vmem:[%s8193_s2 + $0x38] sm:$0xff]   ;;  %v6822_v48 = vld [vmem:[%s8135_s26 + $0x8] sm:$0xff]   ;;  %vm2401_vm6 = vcmask 519424   ;;  %vm2638_vm7 = vcmask 781824   ;;  %vm2875_vm8 = vcmask 1044224  }
 0x1b6   : > { %v6818_v27 = vld [vmem:[%s8198_s24 + $0x30] sm:$0xff]   ;;  %v6820_v29 = vld [vmem:[%s8198_s24 + $0x38] sm:$0xff]   ;;  %v6826_v52 = vld [vmem:[%s8135_s26 + $0x28] sm:$0xff]   ;;  %s9235_s23 = sld [smem:[#allocation41_spill]]  ;;  %s9236_s6 = sld [smem:[#allocation46_spill]]  ;;  %vm3511_vm9 = vcmask 130048  }
 0x1b7   : > { %v1530_v3 = vld [vmem:[#allocation2] sm:$0xff]  ;;  %v1531_v4 = vld [vmem:[#allocation2 + $0x8] sm:$0xff]  ;;  %6331 = vmatpush3.bf16.msra.mxu0 %v6807_v7  ;;  %6351 = vmatpush3.bf16.msra.mxu1 %v6808_v17  ;;  %s9229_s22 = scalar_lea.vmem %s9228_s13, %s8175_s25  ;;  %v6824_v50 = vld [vmem:[%s8135_s26 + $0x18] sm:$0xff]   ;;  %s9238_s5 = sld [smem:[#allocation42_spill]] }
 0x1b8   : > { %1534 = vadd.xlane.f32.xlu0 %v1530_v3  ;;  %6332 = vmatprep.subr.bf16.mxu0 %v7514_v8  ;;  %v5900_v38 = vld [vmem:[%s9229_s22] ss:$0 sm:$0xff]  ;;  %s9231_s15 = scalar_lea.vmem %s9230_s4, %s8175_s25  ;;  %v6823_v49 = vld [vmem:[%s8135_s26 + $0x10] sm:$0xff]   ;;  %v6828_v54 = vld [vmem:[%s8135_s26 + $0x38] sm:$0xff]   ;;  %s9239_s2 = sld [smem:[#allocation56_spill]] }
 0x1b9   : > { %6352 = vmatprep.subr.bf16.mxu1 %v7514_v8  ;;  %v5901_v42 = vld [vmem:[%s9231_s15] ss:$0 sm:$0xff]  ;;  %v6827_v53 = vld [vmem:[%s8135_s26 + $0x30] sm:$0xff]   ;;  %s9241_s12 = sld [smem:[#allocation57_spill]] }
 0x1ba   : > { %v6821_v46 = vld [vmem:[%s8135_s26] sm:$0xff]  }
 0x1bb   : > { %6333 = vmatpush3.bf16.msra.mxu0 %v6809_v18  ;;  %6353 = vmatpush3.bf16.msra.mxu1 %v6810_v19  ;;  %v6825_v51 = vld [vmem:[%s8135_s26 + $0x20] sm:$0xff]   ;;  %s9233_s26 = scalar_lea.vmem [#allocation10], %s8125_s8  ;;  %v1945_v18 = vlaneseq }
 0x1bc   : > { %1536 = vadd.xlane.f32.xlu0 %v1531_v4  ;;  %6334 = vmatprep.subr.bf16.mxu0 %v7514_v8  ;;  %v5902_v60 = vld [vmem:[%s9232_s18] ss:$0 sm:$0xff]  ;;  %s9237_s0 = smov %s9236_s6 }
 0x1bd   : > { %6354 = vmatprep.subr.bf16.mxu1 %v7514_v8  ;;  %v8342_v19 = vshrl.u32 %v1945_v18, 7 }
 0x1be   : > { %s9240_s13 = scalar_lea.vmem %s9239_s2, %s8175_s25 }
 0x1bf   : > { %6335 = vmatpush3.bf16.msra.mxu0 %v6811_v20  ;;  %6355 = vmatpush3.bf16.msra.mxu1 %v6812_v21  ;;  %v1948_v20 = vand.u32 127, %v1945_v18  ;;  %s9242_s4 = scalar_lea.vmem %s9241_s12, %s8175_s25 }
 0x1c0   : > { %6336 = vmatprep.subr.bf16.mxu0 %v7514_v8  ;;  %6356 = vmatprep.subr.bf16.mxu1 %v7514_v8 }
 0x1c1   : > { %vm1949_vm3 = vcmp.gt.s32.totalorder %v1948_v20, %v8342_v19 }
 0x1c2   : > { %v8346_v21 = vsel %vm1949_vm3, -1e+30, %v7514_v8 }
 0x1c3   : > { %6337 = vmatpush3.bf16.msra.mxu0 %v6813_v22  ;;  %6357 = vmatpush3.bf16.msra.mxu1 %v6814_v23 }
 0x1c4   : > { %6338 = vmatprep.subr.bf16.mxu0 %v7514_v8  ;;  %6358 = vmatprep.subr.bf16.mxu1 %v7514_v8 }
 0x1c7   : > { %6339 = vmatpush3.bf16.msra.mxu0 %v6815_v24  ;;  %6359 = vmatpush3.bf16.msra.mxu1 %v6816_v25 }
 0x1c8   : > { %6340 = vmatprep.subr.bf16.mxu0 %v7514_v8  ;;  %6360 = vmatprep.subr.bf16.mxu1 %v7514_v8 }
 0x1cb   : > { %6341 = vmatpush3.bf16.msra.mxu0 %v6817_v26  ;;  %6361 = vmatpush3.bf16.msra.mxu1 %v6818_v27 }
 0x1cc   : > { %6342 = vmatprep.subr.bf16.mxu0 %v7514_v8  ;;  %6362 = vmatprep.subr.bf16.mxu1 %v7514_v8 }
 0x1cf   : > { %6343 = vmatpush3.bf16.msra.mxu0 %v6819_v28  ;;  %6363 = vmatpush3.bf16.msra.mxu1 %v6820_v29 }
 0x1d0   : > { %6368 = vmatprep.subr.bf16.mxu0 %v7514_v8  ;;  %6388 = vmatprep.subr.bf16.mxu1 %v7514_v8 }
 0x245   : > { %v1535_v9 = vpop.xlane.xlu0 %1534 }
 0x246   : > { %v1539_v10 = vmul.f32 0.0078125, %v1535_v9  ;;  %v5920_v9 = vld [vmem:[%s9233_s26] ss:$0 sm:$0xff]  ;;  %s9243_s26 = sld [smem:[#allocation59_spill]] }
 0x248   : > { %v1541_v11 = vsub.f32 %v1530_v3, %v1539_v10 }
 0x249   : > { %v1537_v12 = vpop.xlane.xlu0 %1536 }
 0x24a   : > { %v1540_v13 = vmul.f32 0.0078125, %v1537_v12  ;;  %v1543_v14 = vmul.f32 %v1541_v11, %v1541_v11 }
 0x24c   : > { %v1542_v15 = vsub.f32 %v1531_v4, %v1540_v13  ;;  %1545 = vadd.xlane.f32.xlu1 %v1543_v14 }
 0x24e   : > { %v1544_v16 = vmul.f32 %v1542_v15, %v1542_v15 }
 0x250   : > { %1547 = vadd.xlane.f32.xlu1 %v1544_v16 }
 0x2d9   : > { %v1546_v30 = vpop.xlane.xlu1 %1545 }
 0x2da   : > { %v1549_v31 = vmul.f32 0.0078125, %v1546_v30 }
 0x2dc   : > { %v1551_v32 = vadd.f32 1e-05, %v1549_v31 }
 0x2dd   : > { %v1548_v33 = vpop.xlane.xlu1 %1547 }
 0x2de   : > { %6953 = vrsqrt.f32 %v1551_v32  ;;  %v1550_v34 = vmul.f32 0.0078125, %v1548_v33 }
 0x2e0   : > { %v1552_v35 = vadd.f32 1e-05, %v1550_v34 }
 0x2e2   : > { %6955 = vrsqrt.f32 %v1552_v35 }
 0x2e8   : > { %v6954_v36 = vpop.eup %6953 }
 0x2e9   : > { %v1555_v37 = vmul.f32 %v6954_v36, %v1541_v11 }
 0x2eb   : > { %v1563_v41 = vmul.f32 %v5900_v38, %v1555_v37 }
 0x2ec   : > { %v6956_v39 = vpop.eup %6955 }
 0x2ed   : > { %v1556_v40 = vmul.f32 %v6956_v39, %v1542_v15  ;;  %v1571_v44 = vadd.f32 %v5901_v42, %v1563_v41 }
 0x2ef   : > { %v1564_v43 = vmul.f32 %v5900_v38, %v1556_v40 }
 0x2f1   : > { %v1572_v45 = vadd.f32 %v5901_v42, %v1564_v43 }
 0x2f3   : > { %v6118_v47 = vpack.c.bf16 %v1572_v45, %v1571_v44 }
 0x2f5   : > { %6345 = vmatmul.mubr.bf16.vlgmr.msra.gmra.mrb[0].mxu0 %v6118_v47  ;;  %6365 = vmatmul.mubr.bf16.vlgmr.msra.gmra.mrb[0].mxu1 %v6118_v47 }
 0x2f6   : > { %6369 = vmatpush3.bf16.msra.mxu0 %v6821_v46  ;;  %6384 = vmatprep.mubr.msk.bf16.mxu0 %vm7515_vm0, %v7514_v8 }
 0x2f7   : > { %6370 = vmatprep.subr.bf16.mxu0 %v7514_v8  ;;  %6390 = vmatprep.mubr.msk.bf16.mxu1 %vm7515_vm0, %v7514_v8 }
 0x2fa   : > { %6371 = vmatpush3.bf16.msra.mxu0 %v6822_v48 }
 0x2fb   : > { %6372 = vmatprep.subr.bf16.mxu0 %v7514_v8 }
 0x2fe   : > { %6373 = vmatpush3.bf16.msra.mxu0 %v6823_v49 }
 0x2ff   : > { %6374 = vmatprep.subr.bf16.mxu0 %v7514_v8 }
 0x302   : > { %6375 = vmatpush3.bf16.msra.mxu0 %v6824_v50 }
 0x303   : > { %6376 = vmatprep.subr.bf16.mxu0 %v7514_v8 }
 0x306   : > { %6377 = vmatpush3.bf16.msra.mxu0 %v6825_v51 }
 0x307   : > { %6378 = vmatprep.subr.bf16.mxu0 %v7514_v8 }
 0x30a   : > { %6379 = vmatpush3.bf16.msra.mxu0 %v6826_v52 }
 0x30b   : > { %6380 = vmatprep.subr.bf16.mxu0 %v7514_v8 }
 0x30e   : > { %6381 = vmatpush3.bf16.msra.mxu0 %v6827_v53 }
 0x30f   : > { %6382 = vmatprep.subr.bf16.mxu0 %v7514_v8 }
 0x312   : > { %6383 = vmatpush3.bf16.msra.mxu0 %v6828_v54 }
 0x313   : > { %6436 = vmatprep.subr.bf16.mxu0 %v7514_v8 }
 0x315   : > { %6385 = vmatmul.mubr.bf16.vlgmr.msra.gmra.mrb[4].mxu0 %v6118_v47 }
 0x316   : > { %6438 = vmatprep.mubr.msk.bf16.mxu0 %vm7515_vm0, %v7514_v8 }
 0x3c8   : > { %v1736_v55 = vpop.f32.mrb[0].mxu0  ;;  %v1825_v56 = vpop.f32.mrb[0].mxu1 }
 0x3c9   : > { %v8311_v57 = vpack.c.bf16 %v1825_v56, %v1825_v56  ;;  %v6346_v58 = vpop.f32.mrb[1].mxu0  ;;  %v6366_v59 = vpop.f32.mrb[1].mxu1  ;;  %v1737_v2 = vadd.f32 %v5902_v60, %v1736_v55 }
 0x3ca   : > { %v1739_v61 = vpop.f32.mrb[2].mxu0  ;;  %v1828_v62 = vpop.f32.mrb[2].mxu1 }
 0x3cb   : > { %v6347_v63 = vpop.f32.mrb[3].mxu0  ;;  %v6367_v0 = vpop.f32.mrb[3].mxu1  ;;  %v1956_v1 = vsel %vm1951_vm1, %v8311_v57, 0  ;;  %v8318_v3 = vpack.c.bf16 %v1828_v62, %v1828_v62  ;;  %v8320_v4 = vpack.c.bf16 %v1737_v2, %v1737_v2  ;;  %v1740_v6 = vadd.f32 %v5902_v60, %v1739_v61 }
 0x3cc   : > { %6389 = vmatpush3.bf16.xpose.msra.mxu1 %v1956_v1 }
 0x3cd   : > { %6394 = vmatprep.subr.bf16.mxu1 %v7514_v8  ;;  %v2002_v5 = vsel %vm1951_vm1, %v8318_v3, 0  ;;  %v8329_v7 = vpack.c.bf16 %v1740_v6, %v1740_v6 }
 0x3d3   : > { %6391 = vmatmul.mubr.msk.bf16.vlgmr.msra.gmra.mrb[4].mxu1 %vm1951_vm1, %v8320_v4 }
 0x3d4   : > { %6395 = vmatpush3.bf16.xpose.msra.mxu1 %v2002_v5  ;;  %6396 = vmatprep.mubr.msk.bf16.mxu1 %vm7515_vm0, %v7514_v8 }
 0x3d5   : > { %6400 = vmatprep.subr.bf16.mxu1 %v7514_v8 }
 0x3db   : > { %6397 = vmatmul.mubr.msk.bf16.vlgmr.msra.gmra.mrb[8].mxu1 %vm1951_vm1, %v8329_v7 }
 0x3dc   : > { %6402 = vmatprep.mubr.msk.bf16.mxu1 %vm7515_vm0, %v7514_v8 }
 0x3e8   : > { %v1920_v10 = vpop.f32.mrb[4].mxu0 }
 0x3e9   : > { %v1921_v11 = vadd.f32 %v5920_v9, %v1920_v10  ;;  %v6386_v12 = vpop.f32.mrb[5].mxu0 }
 0x3ea   : > { %v1923_v13 = vpop.f32.mrb[6].mxu0 }
 0x3eb   : > { %v8337_v14 = vpack.c.bf16 %v1921_v11, %v1921_v11  ;;  %v1924_v15 = vadd.f32 %v5920_v9, %v1923_v13  ;;  %v6387_v16 = vpop.f32.mrb[7].mxu0 }
 0x3ed   : > { %v2074_v17 = vsel %vm2072_vm2, %v8337_v14, 0  ;;  %v8362_v47 = vpack.c.bf16 %v1924_v15, %v1924_v15 }
 0x3ee   : > { %6401 = vmatpush3.bf16.msra.mxu1 %v2074_v17 }
 0x3ef   : > { %6406 = vmatprep.subr.bf16.mxu1 %v7514_v8  ;;  %v2120_v50 = vsel %vm2072_vm2, %v8362_v47, 0 }
 0x4a6   : > { %v1992_v22 = vpop.f32.mrb[4].mxu1 }
 0x4a7   : > { %v1993_v23 = vadd.f32 %v1992_v22, %v8346_v21  ;;  %v6392_v24 = vpop.f32.mrb[5].mxu1 }
 0x4a8   : > { %v1995_v25 = vpop.f32.mrb[6].mxu1 }
 0x4a9   : > { %v6393_v26 = vpop.f32.mrb[7].mxu1  ;;  %v2045_v27 = vsel %vm2044_vm4, %v1993_v23, -inf }
 0x4aa   : > { %2046 = vmax.xlane.f32.xlu0 %v2045_v27 }
 0x4ae   : > { %v2038_v28 = vpop.f32.mrb[8].mxu1 }
 0x4af   : > { %v2039_v29 = vadd.f32 %v2038_v28, %v8346_v21  ;;  %v6398_v30 = vpop.f32.mrb[9].mxu1 }
 0x4b0   : > { %v2041_v31 = vpop.f32.mrb[10].mxu1 }
 0x4b1   : > { %v6399_v32 = vpop.f32.mrb[11].mxu1  ;;  %v2048_v33 = vsel %vm2044_vm4, %v2039_v29, -inf }
 0x4b2   : > { %2049 = vmax.xlane.f32.xlu1 %v2048_v33 }
 0x537   : > { %v2047_v34 = vpop.xlane.xlu0 %2046 }
 0x538   : > { %v2051_v35 = vsub.f32 %v1993_v23, %v2047_v34 }
 0x53a   : > { %v2053_v36 = vmul.f32 1.442695, %v2051_v35 }
 0x53c   : > { %6957 = vpow2.f32 %v2053_v36 }
 0x53f   : > { %v2050_v37 = vpop.xlane.xlu1 %2049 }
 0x540   : > { %v2052_v38 = vsub.f32 %v2039_v29, %v2050_v37 }
 0x542   : > { %v2055_v39 = vmul.f32 1.442695, %v2052_v38 }
 0x544   : > { %6959 = vpow2.f32 %v2055_v39 }
 0x546   : > { %v6958_v40 = vpop.eup %6957 }
 0x547   : > { %v2057_v41 = vsel %vm2044_vm4, %v6958_v40, 0.0 }
 0x548   : > { %2058 = vadd.xlane.f32.xlu0 %v2057_v41 }
 0x54e   : > { %v6960_v42 = vpop.eup %6959 }
 0x54f   : > { %v2060_v43 = vsel %vm2044_vm4, %v6960_v42, 0.0 }
 0x550   : > { %2061 = vadd.xlane.f32.xlu1 %v2060_v43 }
 0x55e   : > { %2169 = vrot.lane.b32.xlu0 %v8311_v57, %s7516_s28 }
 0x561   : > { %2167 = vrot.lane.b32.xlu1 %v8320_v4, %s7516_s28 }
 0x565   : > { %2219 = vrot.lane.b32.xlu1 %v8318_v3, %s7516_s28 }
 0x569   : > { %2217 = vrot.lane.b32.xlu1 %v8329_v7, %s7516_s28 }
 0x5d5   : > { %v2059_v44 = vpop.xlane.xlu0 %2058 }
 0x5d6   : > { %6961 = vrcp.f32 %v2059_v44 }
 0x5d9   : > { %v2170_v53 = vpop.permute.xlu0 %2169 }
 0x5da   : > { %v2175_v56 = vsel %vm1951_vm1, %v2170_v53, 0 }
 0x5dd   : > { %v2062_v45 = vpop.xlane.xlu1 %2061 }
 0x5de   : > { %6963 = vrcp.f32 %v2062_v45 }
 0x5e0   : > { %v6962_v46 = vpop.eup %6961 }
 0x5e1   : > { %v2065_v48 = vmul.f32 %v6962_v46, %v6958_v40  ;;  %v2168_v55 = vpop.permute.xlu1 %2167 }
 0x5e3   : > { %v2067_v49 = vpack.c.bf16 %v2065_v48, %v2065_v48 }
 0x5e5   : > { %6403 = vmatmul.mubr.msk.bf16.vlgmr.msra.gmra.mrb[12].mxu1 %vm2044_vm4, %v2067_v49  ;;  %v2220_v58 = vpop.permute.xlu1 %2219 }
 0x5e6   : > { %6407 = vmatpush3.bf16.msra.mxu1 %v2120_v50  ;;  %6408 = vmatprep.mubr.msk.bf16.mxu1 %vm7515_vm0, %v7514_v8  ;;  %v2225_v59 = vsel %vm1951_vm1, %v2220_v58, 0 }
 0x5e7   : > { %6412 = vmatprep.subr.bf16.mxu1 %v7514_v8 }
 0x5e8   : > { %v6964_v51 = vpop.eup %6963 }
 0x5e9   : > { %v2066_v52 = vmul.f32 %v6964_v51, %v6960_v42  ;;  %v2218_v60 = vpop.permute.xlu1 %2217 }
 0x5eb   : > { %v2068_v54 = vpack.c.bf16 %v2066_v52, %v2066_v52 }
 0x5ed   : > { %6409 = vmatmul.mubr.msk.bf16.vlgmr.msra.gmra.mrb[16].mxu1 %vm2044_vm4, %v2068_v54 }
 0x5ee   : > { %6414 = vmatprep.mubr.msk.bf16.mxu1 %vm7515_vm0, %v7514_v8 }
 0x5ef   : > { %6413 = vmatpush3.bf16.xpose.msra.mxu1 %v2175_v56 }
 0x5f0   : > { %6418 = vmatprep.subr.bf16.mxu1 %v7514_v8 }
 0x5f6   : > { %6415 = vmatmul.mubr.msk.bf16.vlgmr.msra.gmra.mrb[20].mxu1 %vm1951_vm1, %v2168_v55 }
 0x5f7   : > { %6419 = vmatpush3.bf16.xpose.msra.mxu1 %v2225_v59  ;;  %6420 = vmatprep.mubr.msk.bf16.mxu1 %vm7515_vm0, %v7514_v8 }
 0x5f8   : > { %6424 = vmatprep.subr.bf16.mxu1 %v7514_v8 }
 0x5fe   : > { %6421 = vmatmul.mubr.msk.bf16.vlgmr.msra.gmra.mrb[24].mxu1 %vm1951_vm1, %v2218_v60 }
 0x5ff   : > { %6426 = vmatprep.mubr.msk.bf16.mxu1 %vm7515_vm0, %v7514_v8 }
 0x6b8   : > { %v2110_v61 = vpop.f32.mrb[12].mxu1 }
 0x6b9   : > { %v2162_v62 = vpack.c.bf16 %v2110_v61, %v2110_v61  ;;  %v6404_v63 = vpop.f32.mrb[13].mxu1 }
 0x6ba   : > { %v2113_v0 = vpop.f32.mrb[14].mxu1 }
 0x6bb   : > { %2165 = vst.msk [vmem:[#allocation4] sm:$0xf] %vm2164_vm5, %v2162_v62  ;;  %v6405_v1 = vpop.f32.mrb[15].mxu1 }
 0x6c0   : > { %v2156_v2 = vpop.f32.mrb[16].mxu1 }
 0x6c1   : > { %v2163_v5 = vpack.c.bf16 %v2156_v2, %v2156_v2  ;;  %v6410_v6 = vpop.f32.mrb[17].mxu1 }
 0x6c2   : > { %v2159_v9 = vpop.f32.mrb[18].mxu1 }
 0x6c3   : > { %2166 = vst.msk [vmem:[#allocation4 + $0x4] sm:$0xf] %vm2164_vm5, %v2163_v5  ;;  %v6411_v10 = vpop.f32.mrb[19].mxu1 }
 0x6c9   : > { %v2211_v11 = vpop.f32.mrb[20].mxu1 }
 0x6ca   : > { %v2212_v12 = vadd.f32 %v2211_v11, %v8346_v21  ;;  %v6416_v13 = vpop.f32.mrb[21].mxu1 }
 0x6cb   : > { %v2214_v15 = vpop.f32.mrb[22].mxu1 }
 0x6cc   : > { %v6417_v16 = vpop.f32.mrb[23].mxu1  ;;  %v2267_v17 = vsel %vm2044_vm4, %v2212_v12, -inf }
 0x6cd   : > { %2268 = vmax.xlane.f32.xlu0 %v2267_v17 }
 0x6d1   : > { %v2261_v18 = vpop.f32.mrb[24].mxu1 }
 0x6d2   : > { %v2262_v20 = vadd.f32 %v2261_v18, %v8346_v21  ;;  %v6422_v22 = vpop.f32.mrb[25].mxu1 }
 0x6d3   : > { %v2264_v23 = vpop.f32.mrb[26].mxu1 }
 0x6d4   : > { %v6423_v24 = vpop.f32.mrb[27].mxu1  ;;  %v2270_v25 = vsel %vm2044_vm4, %v2262_v20, -inf }
 0x6d5   : > { %2271 = vmax.xlane.f32.xlu1 %v2270_v25 }
 0x6e6   : > { %2339 = vrot.lane.b32.xlu1 %v8362_v47, %s7516_s28 }
 0x6ea   : > { %2406 = vrot.lane.b32.xlu1 %v8311_v57, %s7517_s21 }
 0x6ee   : > { %2456 = vrot.lane.b32.xlu1 %v8318_v3, %s7517_s21 }
 0x6f2   : > { %2454 = vrot.lane.b32.xlu1 %v8329_v7, %s7517_s21 }
 0x75a   : > { %v2269_v26 = vpop.xlane.xlu0 %2268 }
 0x75b   : > { %v2273_v27 = vsub.f32 %v2212_v12, %v2269_v26 }
 0x75d   : > { %v2275_v28 = vmul.f32 1.442695, %v2273_v27 }
 0x75f   : > { %6965 = vpow2.f32 %v2275_v28 }
 0x762   : > { %v2272_v29 = vpop.xlane.xlu1 %2271 }
 0x763   : > { %v2274_v30 = vsub.f32 %v2262_v20, %v2272_v29 }
 0x765   : > { %v2277_v31 = vmul.f32 1.442695, %v2274_v30 }
 0x766   : > { %v2340_v32 = vpop.permute.xlu1 %2339 }
 0x767   : > { %6967 = vpow2.f32 %v2277_v31  ;;  %v2345_v48 = vsel %vm2072_vm2, %v2340_v32, 0 }
 0x769   : > { %v6966_v33 = vpop.eup %6965 }
 0x76a   : > { %v2407_v34 = vpop.permute.xlu1 %2406  ;;  %v2279_v35 = vsel %vm2044_vm4, %v6966_v33, 0.0 }
 0x76b   : > { %v2412_v36 = vsel %vm1951_vm1, %v2407_v34, 0  ;;  %2280 = vadd.xlane.f32.xlu0 %v2279_v35 }
 0x76c   : > { %6437 = vmatpush3.bf16.xpose.msra.mxu0 %v2412_v36 }
 0x76d   : > { %6448 = vmatprep.subr.bf16.mxu0 %v7514_v8 }
 0x76e   : > { %v2457_v52 = vpop.permute.xlu1 %2456 }
 0x76f   : > { %v2462_v53 = vsel %vm1951_vm1, %v2457_v52, 0 }
 0x771   : > { %v6968_v37 = vpop.eup %6967 }
 0x772   : > { %v2282_v38 = vsel %vm2044_vm4, %v6968_v37, 0.0  ;;  %v2455_v54 = vpop.permute.xlu1 %2454 }
 0x773   : > { %2283 = vadd.xlane.f32.xlu0 %v2282_v38 }
 0x789   : > { %2291 = vrot.lane.b32.xlu0 %v8337_v14, %s7516_s28 }
 0x78d   : > { %2404 = vrot.lane.b32.xlu0 %v8320_v4, %s7517_s21 }
 0x7f8   : > { %v2281_v39 = vpop.xlane.xlu0 %2280 }
 0x7f9   : > { %6969 = vrcp.f32 %v2281_v39 }
 0x800   : > { %v2284_v40 = vpop.xlane.xlu0 %2283 }
 0x801   : > { %6971 = vrcp.f32 %v2284_v40 }
 0x803   : > { %v6970_v41 = vpop.eup %6969 }
 0x804   : > { %v2287_v42 = vmul.f32 %v6970_v41, %v6966_v33  ;;  %v2292_v43 = vpop.permute.xlu0 %2291 }
 0x805   : > { %v2297_v44 = vsel %vm2072_vm2, %v2292_v43, 0 }
 0x806   : > { %6425 = vmatpush3.bf16.msra.mxu1 %v2297_v44  ;;  %v2289_v45 = vpack.c.bf16 %v2287_v42, %v2287_v42 }
 0x807   : > { %6430 = vmatprep.subr.bf16.mxu1 %v7514_v8 }
 0x808   : > { %v2405_v46 = vpop.permute.xlu0 %2404 }
 0x809   : > { %6427 = vmatmul.mubr.msk.bf16.vlgmr.msra.gmra.mrb[28].mxu1 %vm2044_vm4, %v2289_v45  ;;  %6439 = vmatmul.mubr.msk.bf16.vlgmr.msra.gmra.mrb[8].mxu0 %vm1951_vm1, %v2405_v46 }
 0x80a   : > { %6431 = vmatpush3.bf16.msra.mxu1 %v2345_v48  ;;  %6432 = vmatprep.mubr.msk.bf16.mxu1 %vm7515_vm0, %v7514_v8 }
 0x80b   : > { %v6972_v49 = vpop.eup %6971  ;;  %6442 = vmatprep.subr.bf16.mxu1 %v7514_v8  ;;  %6450 = vmatprep.mubr.msk.bf16.mxu0 %vm7515_vm0, %v7514_v8 }
 0x80c   : > { %v2288_v50 = vmul.f32 %v6972_v49, %v6968_v37 }
 0x80e   : > { %v2290_v51 = vpack.c.bf16 %v2288_v50, %v2288_v50 }
 0x811   : > { %6433 = vmatmul.mubr.msk.bf16.vlgmr.msra.gmra.mrb[32].mxu1 %vm2044_vm4, %v2290_v51 }
 0x812   : > { %6444 = vmatprep.mubr.msk.bf16.mxu1 %vm7515_vm0, %v7514_v8 }
 0x813   : > { %6443 = vmatpush3.bf16.xpose.msra.mxu1 %v2462_v53 }
 0x814   : > { %6454 = vmatprep.subr.bf16.mxu1 %v7514_v8 }
 0x81a   : > { %6445 = vmatmul.mubr.msk.bf16.vlgmr.msra.gmra.mrb[36].mxu1 %vm1951_vm1, %v2455_v54 }
 0x81b   : > { %6456 = vmatprep.mubr.msk.bf16.mxu1 %vm7515_vm0, %v7514_v8 }
 0x8dc   : > { %v8423_v55 = vpop.f32.mrb[28].mxu1  ;;  %v2448_v56 = vpop.f32.mrb[8].mxu0 }
 0x8dd   : > { %v2449_v58 = vadd.f32 %v2448_v56, %v8346_v21  ;;  %v6428_v59 = vpop.f32.mrb[29].mxu1  ;;  %v6440_v60 = vpop.f32.mrb[9].mxu0 }
 0x8de   : > { %v2336_v61 = vpop.f32.mrb[30].mxu1  ;;  %v2451_v62 = vpop.f32.mrb[10].mxu0 }
 0x8df   : > { %v6429_v63 = vpop.f32.mrb[31].mxu1  ;;  %v6441_v0 = vpop.f32.mrb[11].mxu0  ;;  %v2504_v1 = vsel %vm2044_vm4, %v2449_v58, -inf }
 0x8e0   : > { %2505 = vmax.xlane.f32.xlu0 %v2504_v1 }
 0x8e4   : > { %v8427_v2 = vpop.f32.mrb[32].mxu1 }
 0x8e5   : > { %v6434_v5 = vpop.f32.mrb[33].mxu1 }
 0x8e6   : > { %v2384_v6 = vpop.f32.mrb[34].mxu1  ;;  %v6125_v5 = vpack.c.bf16 %v8423_v55, %v8423_v55 }
 0x8e7   : > { %v6435_v9 = vpop.f32.mrb[35].mxu1 }
 0x8ed   : > { %v2498_v10 = vpop.f32.mrb[36].mxu1 }
 0x8ee   : > { %v2499_v11 = vadd.f32 %v2498_v10, %v8346_v21  ;;  %v6446_v12 = vpop.f32.mrb[37].mxu1 }
 0x8ef   : > { %v2501_v13 = vpop.f32.mrb[38].mxu1 }
 0x8f0   : > { %v6447_v15 = vpop.f32.mrb[39].mxu1  ;;  %v2507_v16 = vsel %vm2044_vm4, %v2499_v11, -inf }
 0x8f1   : > { %2508 = vmax.xlane.f32.xlu1 %v2507_v16 }
 0x902   : > { %2576 = vrot.lane.b32.xlu1 %v8362_v47, %s7517_s21 }
 0x906   : > { %2643 = vrot.lane.b32.xlu1 %v8311_v57, %s7518_s1 }
 0x90a   : > { %2693 = vrot.lane.b32.xlu1 %v8318_v3, %s7518_s1 }
 0x90e   : > { %2691 = vrot.lane.b32.xlu1 %v8329_v7, %s7518_s1 }
 0x96d   : > { %v2506_v17 = vpop.xlane.xlu0 %2505 }
 0x96e   : > { %v2510_v18 = vsub.f32 %v2449_v58, %v2506_v17 }
 0x970   : > { %v2512_v20 = vmul.f32 1.442695, %v2510_v18 }
 0x972   : > { %6973 = vpow2.f32 %v2512_v20 }
 0x97c   : > { %v6974_v22 = vpop.eup %6973 }
 0x97d   : > { %v2516_v23 = vsel %vm2044_vm4, %v6974_v22, 0.0 }
 0x97e   : > { %v2509_v24 = vpop.xlane.xlu1 %2508  ;;  %2517 = vadd.xlane.f32.xlu0 %v2516_v23 }
 0x97f   : > { %v2511_v25 = vsub.f32 %v2499_v11, %v2509_v24 }
 0x981   : > { %v2514_v26 = vmul.f32 1.442695, %v2511_v25 }
 0x982   : > { %v2577_v27 = vpop.permute.xlu1 %2576 }
 0x983   : > { %6975 = vpow2.f32 %v2514_v26  ;;  %v2582_v57 = vsel %vm2072_vm2, %v2577_v27, 0 }
 0x984   : > { %6455 = vmatpush3.bf16.msra.mxu1 %v2582_v57 }
 0x985   : > { %6466 = vmatprep.subr.bf16.mxu1 %v7514_v8 }
 0x986   : > { %v2644_v34 = vpop.permute.xlu1 %2643 }
 0x987   : > { %v2649_v38 = vsel %vm1951_vm1, %v2644_v34, 0  ;;  %v6831_v34 = vld [vmem:[%s8142_s29 + $0x10] sm:$0xff]  }
 0x98a   : > { %v2694_v37 = vpop.permute.xlu1 %2693 }
 0x98b   : > { %v2699_v40 = vsel %vm1951_vm1, %v2694_v37, 0  ;;  %v6835_v37 = vld [vmem:[%s8142_s29 + $0x30] sm:$0xff]  }
 0x98d   : > { %v6976_v3 = vpop.eup %6975 }
 0x98e   : > { %v2519_v7 = vsel %vm2044_vm4, %v6976_v3, 0.0  ;;  %v2692_v42 = vpop.permute.xlu1 %2691 }
 0x98f   : > { %2520 = vadd.xlane.f32.xlu0 %v2519_v7 }
 0x9a5   : > { %2528 = vrot.lane.b32.xlu0 %v8337_v14, %s7517_s21 }
 0x9a9   : > { %2641 = vrot.lane.b32.xlu0 %v8320_v4, %s7518_s1 }
 0xa0b   : > { %v2518_v28 = vpop.xlane.xlu0 %2517 }
 0xa0c   : > { %6977 = vrcp.f32 %v2518_v28 }
 0xa16   : > { %v6978_v29 = vpop.eup %6977 }
 0xa17   : > { %v2524_v31 = vmul.f32 %v6978_v29, %v6974_v22 }
 0xa19   : > { %v2526_v35 = vpack.c.bf16 %v2524_v31, %v2524_v31 }
 0xa1c   : > { %v2521_v30 = vpop.xlane.xlu0 %2520 }
 0xa1d   : > { %6979 = vrcp.f32 %v2521_v30 }
 0xa20   : > { %v2529_v32 = vpop.permute.xlu0 %2528 }
 0xa21   : > { %v2534_v33 = vsel %vm2072_vm2, %v2529_v32, 0  ;;  %v6829_v32 = vld [vmem:[%s8142_s29] sm:$0xff]  }
 0xa22   : > { %6449 = vmatpush3.bf16.msra.mxu0 %v2534_v33  ;;  %v6830_v33 = vld [vmem:[%s8142_s29 + $0x8] sm:$0xff]  }
 0xa23   : > { %6460 = vmatprep.subr.bf16.mxu0 %v7514_v8 }
 0xa24   : > { %v2642_v41 = vpop.permute.xlu0 %2641 }
 0xa25   : > { %6451 = vmatmul.mubr.msk.bf16.vlgmr.msra.gmra.mrb[12].mxu0 %vm2044_vm4, %v2526_v35  ;;  %v6832_v35 = vld [vmem:[%s8142_s29 + $0x18] sm:$0xff]  }
 0xa26   : > { %6462 = vmatprep.mubr.msk.bf16.mxu0 %vm7515_vm0, %v7514_v8 }
 0xa27   : > { %v6980_v4 = vpop.eup %6979 }
 0xa28   : > { %v2525_v36 = vmul.f32 %v6980_v4, %v6976_v3  ;;  %v6833_v4 = vld [vmem:[%s8142_s29 + $0x20] sm:$0xff]  }
 0xa2a   : > { %v2527_v39 = vpack.c.bf16 %v2525_v36, %v2525_v36  ;;  %v6834_v36 = vld [vmem:[%s8142_s29 + $0x28] sm:$0xff]  }
 0xa2b   : > { %6461 = vmatpush3.bf16.xpose.msra.mxu0 %v2649_v38  ;;  %v6836_v38 = vld [vmem:[%s8142_s29 + $0x38] sm:$0xff]   ;;  %s9234_s29 = scalar_lea.vmem [#allocation13], %s8125_s8 }
 0xa2c   : > { %6457 = vmatmul.mubr.msk.bf16.vlgmr.msra.gmra.mrb[40].mxu1 %vm2044_vm4, %v2527_v39  ;;  %6472 = vmatprep.subr.bf16.mxu0 %v7514_v8 }
 0xa2d   : > { %6467 = vmatpush3.bf16.xpose.msra.mxu1 %v2699_v40  ;;  %6468 = vmatprep.mubr.msk.bf16.mxu1 %vm7515_vm0, %v7514_v8 }
 0xa2e   : > { %6478 = vmatprep.subr.bf16.mxu1 %v7514_v8 }
 0xa32   : > { %6463 = vmatmul.mubr.msk.bf16.vlgmr.msra.gmra.mrb[16].mxu0 %vm1951_vm1, %v2642_v41 }
 0xa33   : > { %6474 = vmatprep.mubr.msk.bf16.mxu0 %vm7515_vm0, %v7514_v8 }
 0xa34   : > { %6469 = vmatmul.mubr.msk.bf16.vlgmr.msra.gmra.mrb[44].mxu1 %vm1951_vm1, %v2692_v42 }
 0xa35   : > { %6480 = vmatprep.mubr.msk.bf16.mxu1 %vm7515_vm0, %v7514_v8 }
 0xaf8   : > { %v2570_v43 = vpop.f32.mrb[12].mxu0 }
 0xaf9   : > { %v6452_v44 = vpop.f32.mrb[13].mxu0  ;;  %v6127_v24 = vpack.c.bf16 %v2570_v43, %v2570_v43 }
 0xafa   : > { %v2573_v45 = vpop.f32.mrb[14].mxu0 }
 0xafb   : > { %v6453_v46 = vpop.f32.mrb[15].mxu0 }
 0xaff   : > { %v2618_v48 = vpop.f32.mrb[40].mxu1 }
 0xb00   : > { %v6458_v49 = vpop.f32.mrb[41].mxu1  ;;  %v6128_v6 = vpack.c.bf16 %v2618_v48, %v2618_v48 }
 0xb01   : > { %v2621_v50 = vpop.f32.mrb[42].mxu1 }
 0xb02   : > { %v6459_v51 = vpop.f32.mrb[43].mxu1 }
 0xb05   : > { %v2685_v52 = vpop.f32.mrb[16].mxu0 }
 0xb06   : > { %v2686_v53 = vadd.f32 %v2685_v52, %v8346_v21  ;;  %v6464_v54 = vpop.f32.mrb[17].mxu0 }
 0xb07   : > { %v2688_v56 = vpop.f32.mrb[18].mxu0  ;;  %v2735_v58 = vpop.f32.mrb[44].mxu1 }
 0xb08   : > { %v2736_v59 = vadd.f32 %v2735_v58, %v8346_v21  ;;  %v6465_v60 = vpop.f32.mrb[19].mxu0  ;;  %v6470_v61 = vpop.f32.mrb[45].mxu1  ;;  %v2741_v62 = vsel %vm2044_vm4, %v2686_v53, -inf  ;;  %v6126_v21 = vpack.c.bf16 %v8427_v2, %v8427_v2 }
 0xb09   : > { %v2738_v63 = vpop.f32.mrb[46].mxu1  ;;  %2742 = vmax.xlane.f32.xlu0 %v2741_v62  ;;  %v7061_v60 = vld [vmem:[#allocation2] sm:$0xff] }
 0xb0a   : > { %v6471_v0 = vpop.f32.mrb[47].mxu1  ;;  %v2744_v1 = vsel %vm2044_vm4, %v2736_v59, -inf }
 0xb0b   : > { %2745 = vmax.xlane.f32.xlu1 %v2744_v1  ;;  %v7062_v0 = vld [vmem:[#allocation2 + $0x8] sm:$0xff] }
 0xb1c   : > { %2813 = vrot.lane.b32.xlu1 %v8362_v47, %s7518_s1 }
 0xb20   : > { %2395 = vrot.lane.b32.xlu1 %v6125_v5, %s7518_s1  ;;  %v6838_v5 = vld [vmem:[%s8155_s7] sm:$0xff]  }
 0xb24   : > { %2397 = vrot.lane.b32.xlu1 %v6126_v21, %s7518_s1  ;;  %v6839_v21 = vld [vmem:[%s8155_s7 + $0x8] sm:$0xff]  }
 0xb28   : > { %2634 = vrot.lane.b32.xlu1 %v6128_v6, %s7517_s21  ;;  %v6841_v6 = vld [vmem:[%s9235_s23] sm:$0xff]  }
 0xb96   : > { %v2743_v9 = vpop.xlane.xlu0 %2742 }
 0xb97   : > { %v2747_v10 = vsub.f32 %v2686_v53, %v2743_v9  ;;  %v5957_v53 = vld [vmem:[%s9234_s29] ss:$0 sm:$0xff]  ;;  %v6840_v9 = vld [vmem:[%s8155_s7 + $0x10] sm:$0xff]   ;;  %s9244_s29 = scalar_lea.vmem %s9243_s26, %s8175_s25  ;;  %s9252_s25 = sld [smem:[#allocation33_spill]] }
 0xb98   : > { %v2746_v11 = vpop.xlane.xlu1 %2745 }
 0xb99   : > { %v2749_v12 = vmul.f32 1.442695, %v2747_v10  ;;  %v2748_v13 = vsub.f32 %v2736_v59, %v2746_v11  ;;  %v6842_v10 = vld [vmem:[%s8155_s7 + $0x18] sm:$0xff]  }
 0xb9b   : > { %6981 = vpow2.f32 %v2749_v12  ;;  %v2751_v47 = vmul.f32 1.442695, %v2748_v13 }
 0xb9c   : > { %v2814_v15 = vpop.permute.xlu1 %2813 }
 0xb9d   : > { %6983 = vpow2.f32 %v2751_v47  ;;  %v2819_v55 = vsel %vm2072_vm2, %v2814_v15, 0  ;;  %p5356_p6 = scmp.eq.s32.totalorder %s9252_s25, 1 }
 0xb9e   : > { %6479 = vmatpush3.bf16.msra.mxu1 %v2819_v55  ;;  %s9254_s10 = sld [smem:[#allocation72_spill]] (%p5356_p6) }
 0xb9f   : > { %6504 = vmatprep.subr.bf16.mxu1 %v7514_v8 }
 0xba0   : > { %v2396_v2 = vpop.permute.xlu1 %2395 }
 0xba1   : > { %2402 = vst.msk [vmem:[#allocation4] sm:$0xf] %vm2401_vm6, %v2396_v2 }
 0xba4   : > { %v2398_v16 = vpop.permute.xlu1 %2397 }
 0xba5   : > { %v6982_v17 = vpop.eup %6981  ;;  %2403 = vst.msk [vmem:[#allocation4 + $0x4] sm:$0xf] %vm2401_vm6, %v2398_v16 }
 0xba6   : > { %v2753_v18 = vsel %vm2044_vm4, %v6982_v17, 0.0 }
 0xba7   : > { %v6984_v20 = vpop.eup %6983  ;;  %2754 = vadd.xlane.f32.xlu0 %v2753_v18  ;;  %v6843_v18 = vld [vmem:[%s9235_s23 + $0x8] sm:$0xff]  }
 0xba8   : > { %v2635_v22 = vpop.permute.xlu1 %2634  ;;  %v2756_v23 = vsel %vm2044_vm4, %v6984_v20, 0.0 }
 0xba9   : > { %2640 = vst.msk [vmem:[#allocation4 + $0x4] sm:$0xf] %vm2638_vm7, %v2635_v22  ;;  %v6845_v22 = vld [vmem:[%s9235_s23 + $0x10] sm:$0xff]  }
 0xbab   : > { %2757 = vadd.xlane.f32.xlu0 %v2756_v23  ;;  %v6848_v23 = vld [vmem:[%s8155_s7 + $0x30] sm:$0xff]  }
 0xbc1   : > { %2765 = vrot.lane.b32.xlu0 %v8337_v14, %s7518_s1 }
 0xbc5   : > { %2632 = vrot.lane.b32.xlu0 %v6127_v24, %s7517_s21  ;;  %v6847_v24 = vld [vmem:[%s9235_s23 + $0x18] sm:$0xff]  }
 0xc34   : > { %v2755_v25 = vpop.xlane.xlu0 %2754 }
 0xc35   : > { %6985 = vrcp.f32 %v2755_v25  ;;  %v6850_v25 = vld [vmem:[%s8155_s7 + $0x38] sm:$0xff]  }
 0xc38   : > { %v2758_v26 = vpop.xlane.xlu0 %2757 }
 0xc39   : > { %6987 = vrcp.f32 %v2758_v26  ;;  %v6849_v26 = vld [vmem:[%s9235_s23 + $0x20] sm:$0xff]  }
 0xc3c   : > { %v2766_v27 = vpop.permute.xlu0 %2765 }
 0xc3d   : > { %v2771_v57 = vsel %vm2072_vm2, %v2766_v27, 0  ;;  %v6852_v27 = vld [vmem:[%s9236_s6] sm:$0xff]  }
 0xc3e   : > { %6473 = vmatpush3.bf16.msra.mxu0 %v2771_v57  ;;  %v6853_v57 = vld [vmem:[%s9237_s0 + $0x8] sm:$0xff]  }
 0xc3f   : > { %v6986_v3 = vpop.eup %6985  ;;  %6484 = vmatprep.subr.bf16.mxu0 %v7514_v8 }
 0xc40   : > { %v2761_v7 = vmul.f32 %v6986_v3, %v6982_v17  ;;  %v2633_v28 = vpop.permute.xlu0 %2632  ;;  %v6844_v17 = vld [vmem:[%s8155_s7 + $0x20] sm:$0xff]   ;;  %v6851_v3 = vld [vmem:[%s9235_s23 + $0x28] sm:$0xff]  }
 0xc41   : > { %2639 = vst.msk [vmem:[#allocation4] sm:$0xf] %vm2638_vm7, %v2633_v28  ;;  %v6855_v28 = vld [vmem:[%s9235_s23 + $0x38] sm:$0xff]  }
 0xc42   : > { %v2763_v14 = vpack.c.bf16 %v2761_v7, %v2761_v7  ;;  %v6854_v7 = vld [vmem:[%s9235_s23 + $0x30] sm:$0xff]  }
 0xc43   : > { %v6988_v29 = vpop.eup %6987 }
 0xc44   : > { %v2762_v30 = vmul.f32 %v6988_v29, %v6984_v20  ;;  %6475 = vmatmul.mubr.msk.bf16.vlgmr.msra.gmra.mrb[20].mxu0 %vm2044_vm4, %v2763_v14  ;;  %v6846_v20 = vld [vmem:[%s8155_s7 + $0x28] sm:$0xff]  }
 0xc45   : > { %6500 = vmatprep.mubr.msk.bf16.mxu0 %vm7515_vm0, %v7514_v8  ;;  %6485 = vmatpush3.bf16.msra.mxu0 %v6829_v32  ;;  %v6856_v14 = vld [vmem:[%s9238_s5] sm:$0xff]  }
 0xc46   : > { %v2764_v31 = vpack.c.bf16 %v2762_v30, %v2762_v30  ;;  %6486 = vmatprep.subr.bf16.mxu0 %v7514_v8 }
 0xc48   : > { %6481 = vmatmul.mubr.msk.bf16.vlgmr.msra.gmra.mrb[48].mxu1 %vm2044_vm4, %v2764_v31 }
 0xc49   : > { %6520 = vmatprep.mubr.msk.bf16.mxu1 %vm7515_vm0, %v7514_v8  ;;  %6487 = vmatpush3.bf16.msra.mxu0 %v6830_v33 }
 0xc4a   : > { %6488 = vmatprep.subr.bf16.mxu0 %v7514_v8  ;;  %6505 = vmatpush3.bf16.msra.mxu1 %v6841_v6 }
 0xc4b   : > { %6506 = vmatprep.subr.bf16.mxu1 %v7514_v8 }
 0xc4d   : > { %6489 = vmatpush3.bf16.msra.mxu0 %v6831_v34 }
 0xc4e   : > { %6490 = vmatprep.subr.bf16.mxu0 %v7514_v8  ;;  %6507 = vmatpush3.bf16.msra.mxu1 %v6843_v18 }
 0xc4f   : > { %6508 = vmatprep.subr.bf16.mxu1 %v7514_v8 }
 0xc51   : > { %6491 = vmatpush3.bf16.msra.mxu0 %v6832_v35 }
 0xc52   : > { %6492 = vmatprep.subr.bf16.mxu0 %v7514_v8  ;;  %6509 = vmatpush3.bf16.msra.mxu1 %v6845_v22 }
 0xc53   : > { %6510 = vmatprep.subr.bf16.mxu1 %v7514_v8 }
 0xc55   : > { %6493 = vmatpush3.bf16.msra.mxu0 %v6833_v4 }
 0xc56   : > { %6494 = vmatprep.subr.bf16.mxu0 %v7514_v8  ;;  %6511 = vmatpush3.bf16.msra.mxu1 %v6847_v24 }
 0xc57   : > { %6512 = vmatprep.subr.bf16.mxu1 %v7514_v8 }
 0xc59   : > { %6495 = vmatpush3.bf16.msra.mxu0 %v6834_v36  ;;  %v5967_v36 = vld [vmem:[%s9240_s13] ss:$0 sm:$0xff] }
 0xc5a   : > { %6496 = vmatprep.subr.bf16.mxu0 %v7514_v8  ;;  %6513 = vmatpush3.bf16.msra.mxu1 %v6849_v26 }
 0xc5b   : > { %6514 = vmatprep.subr.bf16.mxu1 %v7514_v8 }
 0xc5d   : > { %6497 = vmatpush3.bf16.msra.mxu0 %v6835_v37 }
 0xc5e   : > { %6498 = vmatprep.subr.bf16.mxu0 %v7514_v8  ;;  %6515 = vmatpush3.bf16.msra.mxu1 %v6851_v3 }
 0xc5f   : > { %6516 = vmatprep.subr.bf16.mxu1 %v7514_v8 }
 0xc61   : > { %6499 = vmatpush3.bf16.msra.mxu0 %v6836_v38 }
 0xc62   : > { %6524 = vmatprep.subr.bf16.mxu0 %v6838_v5  ;;  %6517 = vmatpush3.bf16.msra.mxu1 %v6854_v7 }
 0xc63   : > { %6518 = vmatprep.subr.bf16.mxu1 %v7514_v8 }
 0xc66   : > { %6519 = vmatpush3.bf16.msra.mxu1 %v6855_v28 }
 0xc67   : > { %6544 = vmatprep.subr.bf16.mxu1 %v6856_v14 }
 0xd17   : > { %v2807_v39 = vpop.f32.mrb[20].mxu0 }
 0xd18   : > { %v6129_v40 = vpack.c.bf16 %v2807_v39, %v2807_v39  ;;  %v6476_v41 = vpop.f32.mrb[21].mxu0 }
 0xd19   : > { %v2810_v42 = vpop.f32.mrb[22].mxu0 }
 0xd1a   : > { %2869 = vrot.lane.b32.xlu0 %v6129_v40, %s7516_s28  ;;  %v6477_v43 = vpop.f32.mrb[23].mxu0  ;;  %v5968_v40 = vld [vmem:[%s9242_s4] ss:$0 sm:$0xff] }
 0xd1b   : > { %v2855_v44 = vpop.f32.mrb[48].mxu1 }
 0xd1c   : > { %v6130_v45 = vpack.c.bf16 %v2855_v44, %v2855_v44  ;;  %v6482_v46 = vpop.f32.mrb[49].mxu1 }
 0xd1d   : > { %v2858_v48 = vpop.f32.mrb[50].mxu1  ;;  %v6858_v46 = vld [vmem:[%s9238_s5 + $0x10] sm:$0xff]  }
 0xd1e   : > { %2871 = vrot.lane.b32.xlu1 %v6130_v45, %s7516_s28  ;;  %v6483_v49 = vpop.f32.mrb[51].mxu1  ;;  %v6857_v45 = vld [vmem:[%s9238_s5 + $0x8] sm:$0xff]   ;;  %v6859_v48 = vld [vmem:[%s9238_s5 + $0x18] sm:$0xff]  }
 0xd1f   : > { %v6860_v49 = vld [vmem:[%s9238_s5 + $0x20] sm:$0xff]  }
 0xd8c   : > { %v2870_v50 = vpop.permute.xlu0 %2869 }
 0xd8d   : > { %2876 = vst.msk [vmem:[#allocation4] sm:$0xf] %vm2875_vm8, %v2870_v50  ;;  %v6861_v50 = vld [vmem:[%s9238_s5 + $0x28] sm:$0xff]  }
 0xd90   : > { %v2872_v51 = vpop.permute.xlu1 %2871 }
 0xd91   : > { %2877 = vst.msk [vmem:[#allocation4 + $0x4] sm:$0xf] %vm2875_vm8, %v2872_v51  ;;  %v6862_v51 = vld [vmem:[%s9238_s5 + $0x30] sm:$0xff]  }
 0xd98   : > { %v6837_v52 = vld [vmem:[#allocation4] sm:$0xff]  }
 0xd99   : > { %6501 = vmatmul.mubr.bf16.vlgmr.msra.gmra.mrb[24].mxu0 %v6837_v52  ;;  %v6863_v52 = vld [vmem:[%s9238_s5 + $0x38] sm:$0xff]  }
 0xd9a   : > { %6525 = vmatpush3.bf16.msra.mxu0 %v6838_v5  ;;  %6540 = vmatprep.mubr.bf16.mxu0 %v6852_v27 }
 0xd9b   : > { %6526 = vmatprep.subr.bf16.mxu0 %v6839_v21 }
 0xd9e   : > { %6527 = vmatpush3.bf16.msra.mxu0 %v6839_v21 }
 0xd9f   : > { %6528 = vmatprep.subr.bf16.mxu0 %v6840_v9 }
 0xda2   : > { %6529 = vmatpush3.bf16.msra.mxu0 %v6840_v9 }
 0xda3   : > { %6530 = vmatprep.subr.bf16.mxu0 %v6842_v10 }
 0xda6   : > { %6531 = vmatpush3.bf16.msra.mxu0 %v6842_v10 }
 0xda7   : > { %6532 = vmatprep.subr.bf16.mxu0 %v6844_v17 }
 0xdaa   : > { %6533 = vmatpush3.bf16.msra.mxu0 %v6844_v17 }
 0xdab   : > { %6534 = vmatprep.subr.bf16.mxu0 %v6846_v20 }
 0xdae   : > { %6535 = vmatpush3.bf16.msra.mxu0 %v6846_v20 }
 0xdaf   : > { %6536 = vmatprep.subr.bf16.mxu0 %v6848_v23 }
 0xdb2   : > { %6537 = vmatpush3.bf16.msra.mxu0 %v6848_v23 }
 0xdb3   : > { %6538 = vmatprep.subr.bf16.mxu0 %v6850_v25 }
 0xdb6   : > { %6539 = vmatpush3.bf16.msra.mxu0 %v6850_v25 }
 0xdb7   : > { %6564 = vmatprep.subr.bf16.mxu0 %v7514_v8 }
 0xdb9   : > { %6541 = vmatmul.mubr.bf16.vlgmr.msra.gmra.mrb[28].mxu0 %v6853_v57 }
 0xdba   : > { %6566 = vmatprep.mubr.msk.bf16.mxu0 %vm7515_vm0, %v7514_v8 }
 0xe6c   : > { %v2974_v54 = vpop.f32.mrb[24].mxu0 }
 0xe6d   : > { %v2975_v56 = vadd.f32 %v5957_v53, %v2974_v54  ;;  %v6502_v58 = vpop.f32.mrb[25].mxu0 }
 0xe6e   : > { %v2977_v59 = vpop.f32.mrb[26].mxu0 }
 0xe6f   : > { %v8518_v61 = vadd.f32 %v7061_v60, %v2975_v56  ;;  %v2978_v62 = vadd.f32 %v5957_v53, %v2977_v59  ;;  %v6503_v63 = vpop.f32.mrb[27].mxu0 }
 0xe71   : > { %v8520_v1 = vadd.f32 %v7062_v0, %v2978_v62  ;;  %2985 = vadd.xlane.f32.xlu0 %v8518_v61  ;;  %v5969_v0 = vld [vmem:[%s9244_s29] ss:$0 sm:$0xff] }
 0xe73   : > { %2987 = vadd.xlane.f32.xlu1 %v8520_v1 }
 0xe8c   : > { %v6542_v53 = vpop.f32.mrb[28].mxu0 }
 0xe8d   : > { %v3291_v54 = vpop.f32.mrb[29].mxu0 }
 0xe8e   : > { %v6543_v56 = vpop.f32.mrb[30].mxu0 }
 0xe8f   : > { %v8579_v58 = vpack.c.bf16 %v6543_v56, %v6542_v53  ;;  %v3294_v59 = vpop.f32.mrb[31].mxu0 }
 0xe90   : > { %v8581_v60 = vpack.c.bf16 %v3294_v59, %v3291_v54 }
 0xe91   : > { %v3469_v62 = vsel %vm1951_vm1, %v8579_v58, 0 }
 0xe92   : > { %v3423_v63 = vsel %vm1951_vm1, %v8581_v60, 0 }
 0xe93   : > { %6565 = vmatpush3.bf16.xpose.msra.mxu0 %v3423_v63 }
 0xe94   : > { %6576 = vmatprep.subr.bf16.mxu0 %v7514_v8 }
 0xefe   : > { %v2986_v11 = vpop.xlane.xlu0 %2985 }
 0xeff   : > { %v2989_v12 = vmul.f32 0.0078125, %v2986_v11 }
 0xf00   : > { %v2988_v13 = vpop.xlane.xlu1 %2987 }
 0xf01   : > { %v2991_v47 = vsub.f32 %v8518_v61, %v2989_v12  ;;  %v2990_v15 = vmul.f32 0.0078125, %v2988_v13 }
 0xf03   : > { %v2992_v55 = vsub.f32 %v8520_v1, %v2990_v15  ;;  %v2993_v2 = vmul.f32 %v2991_v47, %v2991_v47 }
 0xf05   : > { %2995 = vadd.xlane.f32.xlu0 %v2993_v2  ;;  %v2994_v16 = vmul.f32 %v2992_v55, %v2992_v55 }
 0xf09   : > { %2997 = vadd.xlane.f32.xlu0 %v2994_v16 }
 0xf92   : > { %v2996_v29 = vpop.xlane.xlu0 %2995 }
 0xf93   : > { %v2999_v30 = vmul.f32 0.0078125, %v2996_v29 }
 0xf95   : > { %v3001_v31 = vadd.f32 1e-05, %v2999_v30 }
 0xf96   : > { %v2998_v32 = vpop.xlane.xlu0 %2997 }
 0xf97   : > { %6989 = vrsqrt.f32 %v3001_v31  ;;  %v3000_v33 = vmul.f32 0.0078125, %v2998_v32 }
 0xf99   : > { %v3002_v34 = vadd.f32 1e-05, %v3000_v33 }
 0xf9b   : > { %6991 = vrsqrt.f32 %v3002_v34 }
 0xfa1   : > { %v6990_v35 = vpop.eup %6989 }
 0xfa2   : > { %v3005_v4 = vmul.f32 %v6990_v35, %v2991_v47  ;;  %v5989_v47 = vld [vmem:[%s1489_s17] ss:$0 sm:$0xff]  ;;  %s9246_s17 = sld [smem:[#allocation43_spill]] }
 0xfa4   : > { %v3013_v39 = vmul.f32 %v5967_v36, %v3005_v4 }
 0xfa5   : > { %v6992_v37 = vpop.eup %6991 }
 0xfa6   : > { %v3006_v38 = vmul.f32 %v6992_v37, %v2992_v55  ;;  %v3021_v42 = vadd.f32 %v5968_v40, %v3013_v39 }
 0xfa8   : > { %v3014_v41 = vmul.f32 %v5967_v36, %v3006_v38 }
 0xfaa   : > { %v3022_v43 = vadd.f32 %v5968_v40, %v3014_v41 }
 0xfac   : > { %v6131_v44 = vpack.c.bf16 %v3022_v43, %v3021_v42 }
 0xfae   : > { %6521 = vmatmul.mubr.bf16.vlgmr.msra.gmra.mrb[52].mxu1 %v6131_v44 }
 0xfaf   : > { %6545 = vmatpush3.bf16.msra.mxu1 %v6856_v14  ;;  %6560 = vmatprep.mubr.bf16.mxu1 %v6852_v27 }
 0xfb0   : > { %6546 = vmatprep.subr.bf16.mxu1 %v6857_v45 }
 0xfb3   : > { %6547 = vmatpush3.bf16.msra.mxu1 %v6857_v45 }
 0xfb4   : > { %6548 = vmatprep.subr.bf16.mxu1 %v6858_v46 }
 0xfb7   : > { %6549 = vmatpush3.bf16.msra.mxu1 %v6858_v46 }
 0xfb8   : > { %6550 = vmatprep.subr.bf16.mxu1 %v6859_v48 }
 0xfbb   : > { %6551 = vmatpush3.bf16.msra.mxu1 %v6859_v48 }
 0xfbc   : > { %6552 = vmatprep.subr.bf16.mxu1 %v6860_v49 }
 0xfbf   : > { %6553 = vmatpush3.bf16.msra.mxu1 %v6860_v49 }
 0xfc0   : > { %6554 = vmatprep.subr.bf16.mxu1 %v6861_v50 }
 0xfc3   : > { %6555 = vmatpush3.bf16.msra.mxu1 %v6861_v50 }
 0xfc4   : > { %6556 = vmatprep.subr.bf16.mxu1 %v6862_v51 }
 0xfc7   : > { %6557 = vmatpush3.bf16.msra.mxu1 %v6862_v51 }
 0xfc8   : > { %6558 = vmatprep.subr.bf16.mxu1 %v6863_v52 }
 0xfcb   : > { %6559 = vmatpush3.bf16.msra.mxu1 %v6863_v52 }
 0xfcc   : > { %6570 = vmatprep.subr.bf16.mxu1 %v7514_v8 }
 0xfce   : > { %6561 = vmatmul.mubr.bf16.vlgmr.msra.gmra.mrb[56].mxu1 %v6853_v57 }
 0xfcf   : > { %6572 = vmatprep.mubr.msk.bf16.mxu1 %vm7515_vm0, %v7514_v8 }
 0xfd4   : > { %6571 = vmatpush3.bf16.xpose.msra.mxu1 %v3469_v62 }
 0xfd5   : > { %6582 = vmatprep.subr.bf16.mxu1 %v7514_v8 }
0x1081   : > { %v3190_v5 = vpop.f32.mrb[52].mxu1 }
0x1082   : > { %v3191_v21 = vadd.f32 %v5969_v0, %v3190_v5  ;;  %v6522_v6 = vpop.f32.mrb[53].mxu1 }
0x1083   : > { %v3193_v9 = vpop.f32.mrb[54].mxu1 }
0x1084   : > { %v8594_v10 = vpack.c.bf16 %v3191_v21, %v3191_v21  ;;  %v3194_v11 = vadd.f32 %v5969_v0, %v3193_v9  ;;  %v6523_v12 = vpop.f32.mrb[55].mxu1 }
0x1086   : > { %v8596_v13 = vpack.c.bf16 %v3194_v11, %v3194_v11  ;;  %6567 = vmatmul.mubr.msk.bf16.vlgmr.msra.gmra.mrb[32].mxu0 %vm1951_vm1, %v8594_v10 }
0x1087   : > { %6578 = vmatprep.mubr.msk.bf16.mxu0 %vm7515_vm0, %v7514_v8 }
0x1088   : > { %6573 = vmatmul.mubr.msk.bf16.vlgmr.msra.gmra.mrb[60].mxu1 %vm1951_vm1, %v8596_v13 }
0x1089   : > { %6584 = vmatprep.mubr.msk.bf16.mxu1 %vm7515_vm0, %v7514_v8 }
0x10a1   : > { %v6562_v15 = vpop.f32.mrb[56].mxu1 }
0x10a2   : > { %v3403_v55 = vadd.f32 %v6562_v15, %v5989_v47  ;;  %v3394_v2 = vpop.f32.mrb[57].mxu1 }
0x10a3   : > { %v3395_v16 = vadd.f32 %v5989_v47, %v3394_v2  ;;  %v6563_v17 = vpop.f32.mrb[58].mxu1 }
0x10a4   : > { %v3406_v18 = vadd.f32 %v6563_v17, %v5989_v47  ;;  %v3397_v20 = vpop.f32.mrb[59].mxu1 }
0x10a5   : > { %v3398_v22 = vadd.f32 %v5989_v47, %v3397_v20 }
0x10a6   : > { %v8611_v23 = vpack.c.bf16 %v3406_v18, %v3403_v55 }
0x10a7   : > { %v8613_v24 = vpack.c.bf16 %v3398_v22, %v3395_v16 }
0x10a8   : > { %6583 = vmatpush3.bf16.msra.mxu1 %v8611_v23 }
0x10a9   : > { %6577 = vmatpush3.bf16.msra.mxu0 %v8613_v24  ;;  %6594 = vmatprep.subr.bf16.mxu1 %v7514_v8 }
0x10aa   : > { %6588 = vmatprep.subr.bf16.mxu0 %v7514_v8 }
0x1159   : > { %v3459_v25 = vpop.f32.mrb[32].mxu0 }
0x115a   : > { %v6568_v26 = vpop.f32.mrb[33].mxu0  ;;  %v3512_v27 = vsel %vm3511_vm9, %v3459_v25, -inf }
0x115b   : > { %v3505_v57 = vpop.f32.mrb[60].mxu1  ;;  %3513 = vmax.xlane.f32.xlu0 %v3512_v27  ;;  %v3462_v3 = vpop.f32.mrb[34].mxu0 }
0x115c   : > { %v6569_v7 = vpop.f32.mrb[35].mxu0  ;;  %v6574_v28 = vpop.f32.mrb[61].mxu1  ;;  %v3515_v14 = vsel %vm3511_vm9, %v3505_v57, -inf }
0x115d   : > { %3516 = vmax.xlane.f32.xlu1 %v3515_v14  ;;  %v3508_v29 = vpop.f32.mrb[62].mxu1 }
0x115e   : > { %v6575_v30 = vpop.f32.mrb[63].mxu1 }
0x116e   : > { %3680 = vrot.lane.b32.xlu1 %v8579_v58, %s7516_s28 }
0x11e8   : > { %v3514_v31 = vpop.xlane.xlu0 %3513 }
0x11e9   : > { %v3518_v32 = vsub.f32 %v3459_v25, %v3514_v31 }
0x11ea   : > { %v3517_v33 = vpop.xlane.xlu1 %3516 }
0x11eb   : > { %v3520_v34 = vmul.f32 1.442695, %v3518_v32  ;;  %v3519_v35 = vsub.f32 %v3505_v57, %v3517_v33 }
0x11ed   : > { %6993 = vpow2.f32 %v3520_v34  ;;  %v3522_v4 = vmul.f32 1.442695, %v3519_v35 }
0x11ee   : > { %v3681_v40 = vpop.permute.xlu1 %3680 }
0x11ef   : > { %6995 = vpow2.f32 %v3522_v4  ;;  %v3686_v52 = vsel %vm1951_vm1, %v3681_v40, 0 }
0x11f7   : > { %v6994_v36 = vpop.eup %6993 }
0x11f8   : > { %v3524_v37 = vsel %vm3511_vm9, %v6994_v36, 0.0 }
0x11f9   : > { %v6996_v38 = vpop.eup %6995  ;;  %3525 = vadd.xlane.f32.xlu0 %v3524_v37 }
0x11fa   : > { %v3527_v39 = vsel %vm3511_vm9, %v6996_v38, 0.0 }
0x11fb   : > { %3528 = vadd.xlane.f32.xlu1 %v3527_v39 }
0x120c   : > { %3626 = vrot.lane.b32.xlu1 %v8594_v10, %s7516_s28 }
0x120f   : > { %3629 = vrot.lane.b32.xlu0 %v8581_v60, %s7516_s28 }
0x1210   : > { %3677 = vrot.lane.b32.xlu1 %v8596_v13, %s7516_s28 }
0x1286   : > { %v3526_v41 = vpop.xlane.xlu0 %3525 }
0x1287   : > { %6997 = vrcp.f32 %v3526_v41 }
0x1288   : > { %v3529_v42 = vpop.xlane.xlu1 %3528 }
0x1289   : > { %6999 = vrcp.f32 %v3529_v42 }
0x128a   : > { %v3630_v46 = vpop.permute.xlu0 %3629 }
0x128b   : > { %v3635_v50 = vsel %vm1951_vm1, %v3630_v46, 0 }
0x128c   : > { %v3627_v53 = vpop.permute.xlu1 %3626 }
0x1290   : > { %v3678_v54 = vpop.permute.xlu1 %3677 }
0x1291   : > { %v6998_v43 = vpop.eup %6997 }
0x1292   : > { %v3532_v44 = vmul.f32 %v6998_v43, %v6994_v36 }
0x1293   : > { %v7000_v45 = vpop.eup %6999 }
0x1294   : > { %v3533_v48 = vmul.f32 %v7000_v45, %v6996_v38  ;;  %v3534_v49 = vpack.c.bf16 %v3532_v44, %v3532_v44 }
0x1296   : > { %6579 = vmatmul.mubr.msk.bf16.vlgmr.msra.gmra.mrb[36].mxu0 %vm3511_vm9, %v3534_v49  ;;  %v3535_v51 = vpack.c.bf16 %v3533_v48, %v3533_v48 }
0x1297   : > { %6589 = vmatpush3.bf16.xpose.msra.mxu0 %v3635_v50  ;;  %6590 = vmatprep.mubr.msk.bf16.mxu0 %vm7515_vm0, %v7514_v8 }
0x1298   : > { %6585 = vmatmul.mubr.msk.bf16.vlgmr.msra.gmra.mrb[64].mxu1 %vm3511_vm9, %v3535_v51  ;;  %6600 = vmatprep.subr.bf16.mxu0 %v7514_v8 }
0x1299   : > { %6595 = vmatpush3.bf16.xpose.msra.mxu1 %v3686_v52  ;;  %6596 = vmatprep.mubr.msk.bf16.mxu1 %vm7515_vm0, %v7514_v8 }
0x129a   : > { %6606 = vmatprep.subr.bf16.mxu1 %v7514_v8 }
0x129e   : > { %6591 = vmatmul.mubr.msk.bf16.vlgmr.msra.gmra.mrb[40].mxu0 %vm1951_vm1, %v3627_v53 }
0x129f   : > { %6602 = vmatprep.mubr.msk.bf16.mxu0 %vm7515_vm0, %v7514_v8 }
0x12a0   : > { %6597 = vmatmul.mubr.msk.bf16.vlgmr.msra.gmra.mrb[68].mxu1 %vm1951_vm1, %v3678_v54 }
0x12a1   : > { %6608 = vmatprep.mubr.msk.bf16.mxu1 %vm7515_vm0, %v7514_v8 }
0x1369   : > { %v3573_v56 = vpop.f32.mrb[36].mxu0 }
0x136a   : > { %v3622_v59 = vpack.c.bf16 %v3573_v56, %v3573_v56  ;;  %v6580_v62 = vpop.f32.mrb[37].mxu0 }
0x136b   : > { %v3576_v63 = vpop.f32.mrb[38].mxu0  ;;  %v3616_v0 = vpop.f32.mrb[64].mxu1 }
0x136c   : > { %3624 = vst.msk [vmem:[#allocation4] sm:$0xf] %vm2164_vm5, %v3622_v59  ;;  %v3623_v5 = vpack.c.bf16 %v3616_v0, %v3616_v0  ;;  %v6581_v21 = vpop.f32.mrb[39].mxu0  ;;  %v6586_v6 = vpop.f32.mrb[65].mxu1 }
0x136d   : > { %v3619_v9 = vpop.f32.mrb[66].mxu1 }
0x136e   : > { %3625 = vst.msk [vmem:[#allocation4 + $0x4] sm:$0xf] %vm2164_vm5, %v3623_v5  ;;  %v6587_v11 = vpop.f32.mrb[67].mxu1 }
0x1371   : > { %v3671_v12 = vpop.f32.mrb[40].mxu0 }
0x1372   : > { %v6592_v47 = vpop.f32.mrb[41].mxu0  ;;  %v3728_v15 = vsel %vm3511_vm9, %v3671_v12, -inf }
0x1373   : > { %v3722_v55 = vpop.f32.mrb[68].mxu1  ;;  %3729 = vmax.xlane.f32.xlu0 %v3728_v15  ;;  %v3674_v2 = vpop.f32.mrb[42].mxu0 }
0x1374   : > { %v6593_v16 = vpop.f32.mrb[43].mxu0  ;;  %v6598_v17 = vpop.f32.mrb[69].mxu1  ;;  %v3731_v18 = vsel %vm3511_vm9, %v3722_v55, -inf }
0x1375   : > { %3732 = vmax.xlane.f32.xlu1 %v3731_v18  ;;  %v3725_v20 = vpop.f32.mrb[70].mxu1 }
0x1376   : > { %v6599_v22 = vpop.f32.mrb[71].mxu1 }
0x1386   : > { %3800 = vrot.lane.b32.xlu1 %v8611_v23, %s7516_s28 }
0x138a   : > { %3864 = vrot.lane.b32.xlu1 %v8581_v60, %s7517_s21 }
0x138e   : > { %3914 = vrot.lane.b32.xlu1 %v8579_v58, %s7517_s21 }
0x1392   : > { %3912 = vrot.lane.b32.xlu1 %v8596_v13, %s7517_s21 }
0x1400   : > { %v3730_v25 = vpop.xlane.xlu0 %3729 }
0x1401   : > { %v3734_v26 = vsub.f32 %v3671_v12, %v3730_v25 }
0x1402   : > { %v3733_v27 = vpop.xlane.xlu1 %3732 }
0x1403   : > { %v3736_v57 = vmul.f32 1.442695, %v3734_v26  ;;  %v3735_v3 = vsub.f32 %v3722_v55, %v3733_v27 }
0x1405   : > { %7001 = vpow2.f32 %v3736_v57  ;;  %v3738_v7 = vmul.f32 1.442695, %v3735_v3 }
0x1406   : > { %v3801_v28 = vpop.permute.xlu1 %3800 }
0x1407   : > { %7003 = vpow2.f32 %v3738_v7  ;;  %6607 = vmatpush3.bf16.msra.mxu1 %v3801_v28 }
0x1408   : > { %6618 = vmatprep.subr.bf16.mxu1 %v7514_v8 }
0x140a   : > { %v3865_v4 = vpop.permute.xlu1 %3864 }
0x140b   : > { %v3870_v40 = vsel %vm1951_vm1, %v3865_v4, 0 }
0x140e   : > { %v3915_v41 = vpop.permute.xlu1 %3914 }
0x140f   : > { %v7002_v14 = vpop.eup %7001  ;;  %v3920_v43 = vsel %vm1951_vm1, %v3915_v41, 0 }
0x1410   : > { %v3740_v29 = vsel %vm3511_vm9, %v7002_v14, 0.0 }
0x1411   : > { %v7004_v30 = vpop.eup %7003  ;;  %3741 = vadd.xlane.f32.xlu0 %v3740_v29 }
0x1412   : > { %v3743_v31 = vsel %vm3511_vm9, %v7004_v30, 0.0  ;;  %v3913_v45 = vpop.permute.xlu1 %3912 }
0x1415   : > { %3744 = vadd.xlane.f32.xlu0 %v3743_v31 }
0x142b   : > { %3753 = vrot.lane.b32.xlu0 %v8613_v24, %s7516_s28 }
0x142f   : > { %3862 = vrot.lane.b32.xlu0 %v8594_v10, %s7517_s21 }
0x149e   : > { %v3742_v32 = vpop.xlane.xlu0 %3741 }
0x149f   : > { %7005 = vrcp.f32 %v3742_v32 }
0x14a2   : > { %v3745_v33 = vpop.xlane.xlu0 %3744 }
0x14a3   : > { %7007 = vrcp.f32 %v3745_v33 }
0x14a6   : > { %v3754_v34 = vpop.permute.xlu0 %3753 }
0x14a7   : > { %6601 = vmatpush3.bf16.msra.mxu0 %v3754_v34 }
0x14a8   : > { %6612 = vmatprep.subr.bf16.mxu0 %v7514_v8 }
0x14a9   : > { %v7006_v35 = vpop.eup %7005 }
0x14aa   : > { %v3748_v36 = vmul.f32 %v7006_v35, %v7002_v14  ;;  %v3863_v44 = vpop.permute.xlu0 %3862 }
0x14ac   : > { %v3750_v37 = vpack.c.bf16 %v3748_v36, %v3748_v36 }
0x14ad   : > { %v7008_v38 = vpop.eup %7007 }
0x14ae   : > { %v3749_v39 = vmul.f32 %v7008_v38, %v7004_v30  ;;  %6603 = vmatmul.mubr.msk.bf16.vlgmr.msra.gmra.mrb[44].mxu0 %vm3511_vm9, %v3750_v37 }
0x14af   : > { %6614 = vmatprep.mubr.msk.bf16.mxu0 %vm7515_vm0, %v7514_v8 }
0x14b0   : > { %6613 = vmatpush3.bf16.xpose.msra.mxu0 %v3870_v40  ;;  %v3751_v42 = vpack.c.bf16 %v3749_v39, %v3749_v39 }
0x14b1   : > { %6624 = vmatprep.subr.bf16.mxu0 %v7514_v8 }
0x14b2   : > { %6609 = vmatmul.mubr.msk.bf16.vlgmr.msra.gmra.mrb[72].mxu1 %vm3511_vm9, %v3751_v42 }
0x14b3   : > { %6619 = vmatpush3.bf16.xpose.msra.mxu1 %v3920_v43  ;;  %6620 = vmatprep.mubr.msk.bf16.mxu1 %vm7515_vm0, %v7514_v8 }
0x14b4   : > { %6630 = vmatprep.subr.bf16.mxu1 %v7514_v8 }
0x14b7   : > { %6615 = vmatmul.mubr.msk.bf16.vlgmr.msra.gmra.mrb[48].mxu0 %vm1951_vm1, %v3863_v44 }
0x14b8   : > { %6626 = vmatprep.mubr.msk.bf16.mxu0 %vm7515_vm0, %v7514_v8 }
0x14ba   : > { %6621 = vmatmul.mubr.msk.bf16.vlgmr.msra.gmra.mrb[76].mxu1 %vm1951_vm1, %v3913_v45 }
0x14bb   : > { %6632 = vmatprep.mubr.msk.bf16.mxu1 %vm7515_vm0, %v7514_v8 }
0x1581   : > { %v8683_v46 = vpop.f32.mrb[44].mxu0 }
0x1582   : > { %v6604_v48 = vpop.f32.mrb[45].mxu0 }
0x1583   : > { %v3796_v49 = vpop.f32.mrb[46].mxu0 }
0x1584   : > { %v6605_v50 = vpop.f32.mrb[47].mxu0 }
0x1585   : > { %v8685_v51 = vpop.f32.mrb[72].mxu1 }
0x1586   : > { %v6610_v52 = vpop.f32.mrb[73].mxu1 }
0x1587   : > { %v3843_v53 = vpop.f32.mrb[74].mxu1 }
0x1588   : > { %v6611_v54 = vpop.f32.mrb[75].mxu1  ;;  %v6134_v53 = vpack.c.bf16 %v8683_v46, %v8683_v46 }
0x1589   : > { %v6135_v54 = vpack.c.bf16 %v8685_v51, %v8685_v51 }
0x158a   : > { %v3906_v56 = vpop.f32.mrb[48].mxu0 }
0x158b   : > { %v6616_v59 = vpop.f32.mrb[49].mxu0  ;;  %v3962_v62 = vsel %vm3511_vm9, %v3906_v56, -inf }
0x158c   : > { %3963 = vmax.xlane.f32.xlu0 %v3962_v62  ;;  %v3909_v63 = vpop.f32.mrb[50].mxu0 }
0x158d   : > { %v6617_v0 = vpop.f32.mrb[51].mxu0  ;;  %v3956_v5 = vpop.f32.mrb[76].mxu1 }
0x158e   : > { %v6622_v21 = vpop.f32.mrb[77].mxu1  ;;  %v3965_v6 = vsel %vm3511_vm9, %v3956_v5, -inf }
0x158f   : > { %3966 = vmax.xlane.f32.xlu1 %v3965_v6  ;;  %v3959_v9 = vpop.f32.mrb[78].mxu1 }
0x1590   : > { %v6623_v11 = vpop.f32.mrb[79].mxu1 }
0x15a0   : > { %4032 = vrot.lane.b32.xlu1 %v8611_v23, %s7517_s21 }
0x15a4   : > { %4096 = vrot.lane.b32.xlu1 %v8581_v60, %s7518_s1 }
0x15a8   : > { %4146 = vrot.lane.b32.xlu1 %v8579_v58, %s7518_s1 }
0x15ac   : > { %4144 = vrot.lane.b32.xlu1 %v8596_v13, %s7518_s1 }
0x1619   : > { %v3964_v12 = vpop.xlane.xlu0 %3963 }
0x161a   : > { %v3968_v47 = vsub.f32 %v3906_v56, %v3964_v12 }
0x161c   : > { %v3970_v15 = vmul.f32 1.442695, %v3968_v47  ;;  %v3967_v55 = vpop.xlane.xlu1 %3966 }
0x161d   : > { %v3969_v2 = vsub.f32 %v3956_v5, %v3967_v55 }
0x161e   : > { %7009 = vpow2.f32 %v3970_v15 }
0x161f   : > { %v3972_v16 = vmul.f32 1.442695, %v3969_v2 }
0x1620   : > { %v4033_v17 = vpop.permute.xlu1 %4032 }
0x1621   : > { %7011 = vpow2.f32 %v3972_v16  ;;  %6631 = vmatpush3.bf16.msra.mxu1 %v4033_v17 }
0x1622   : > { %6642 = vmatprep.subr.bf16.mxu1 %v7514_v8 }
0x1624   : > { %v4097_v27 = vpop.permute.xlu1 %4096 }
0x1625   : > { %v4102_v14 = vsel %vm1951_vm1, %v4097_v27, 0  ;;  %v6867_v27 = vld [vmem:[%s9246_s17 + $0x18] sm:$0xff]  }
0x1628   : > { %v7010_v18 = vpop.eup %7009  ;;  %v4147_v29 = vpop.permute.xlu1 %4146 }
0x1629   : > { %v3974_v60 = vsel %vm3511_vm9, %v7010_v18, 0.0  ;;  %v4152_v30 = vsel %vm1951_vm1, %v4147_v29, 0 }
0x162a   : > { %3975 = vadd.xlane.f32.xlu0 %v3974_v60 }
0x162b   : > { %v7012_v58 = vpop.eup %7011 }
0x162c   : > { %v3977_v20 = vsel %vm3511_vm9, %v7012_v58, 0.0  ;;  %v4145_v32 = vpop.permute.xlu1 %4144 }
0x162e   : > { %3978 = vadd.xlane.f32.xlu0 %v3977_v20 }
0x1644   : > { %3986 = vrot.lane.b32.xlu0 %v8613_v24, %s7517_s21 }
0x1648   : > { %4094 = vrot.lane.b32.xlu0 %v8594_v10, %s7518_s1 }
0x16b7   : > { %v3976_v13 = vpop.xlane.xlu0 %3975 }
0x16b8   : > { %7013 = vrcp.f32 %v3976_v13 }
0x16bb   : > { %v3979_v22 = vpop.xlane.xlu0 %3978 }
0x16bc   : > { %7015 = vrcp.f32 %v3979_v22  ;;  %v6864_v22 = vld [vmem:[%s9246_s17] sm:$0xff]  }
0x16bf   : > { %v3987_v25 = vpop.permute.xlu0 %3986 }
0x16c0   : > { %6625 = vmatpush3.bf16.msra.mxu0 %v3987_v25  ;;  %v6865_v25 = vld [vmem:[%s9246_s17 + $0x8] sm:$0xff]  }
0x16c1   : > { %6636 = vmatprep.subr.bf16.mxu0 %v7514_v8 }
0x16c2   : > { %v7014_v26 = vpop.eup %7013 }
0x16c3   : > { %v3982_v57 = vmul.f32 %v7014_v26, %v7010_v18  ;;  %v4095_v31 = vpop.permute.xlu0 %4094  ;;  %v6866_v26 = vld [vmem:[%s9246_s17 + $0x10] sm:$0xff]  }
0x16c5   : > { %v3984_v3 = vpack.c.bf16 %v3982_v57, %v3982_v57  ;;  %v6868_v57 = vld [vmem:[%s9246_s17 + $0x20] sm:$0xff]  }
0x16c6   : > { %v7016_v7 = vpop.eup %7015 }
0x16c7   : > { %v3983_v28 = vmul.f32 %v7016_v7, %v7012_v58  ;;  %6627 = vmatmul.mubr.msk.bf16.vlgmr.msra.gmra.mrb[52].mxu0 %vm3511_vm9, %v3984_v3  ;;  %v6869_v3 = vld [vmem:[%s9246_s17 + $0x28] sm:$0xff]   ;;  %v6870_v7 = vld [vmem:[%s9246_s17 + $0x30] sm:$0xff]  }
0x16c8   : > { %6638 = vmatprep.mubr.msk.bf16.mxu0 %vm7515_vm0, %v7514_v8 }
0x16c9   : > { %6637 = vmatpush3.bf16.xpose.msra.mxu0 %v4102_v14  ;;  %v3985_v10 = vpack.c.bf16 %v3983_v28, %v3983_v28  ;;  %v6871_v28 = vld [vmem:[%s9246_s17 + $0x38] sm:$0xff]  }
0x16ca   : > { %6648 = vmatprep.subr.bf16.mxu0 %v7514_v8 }
0x16cb   : > { %6633 = vmatmul.mubr.msk.bf16.vlgmr.msra.gmra.mrb[80].mxu1 %vm3511_vm9, %v3985_v10 }
0x16cc   : > { %6643 = vmatpush3.bf16.xpose.msra.mxu1 %v4152_v30  ;;  %6644 = vmatprep.mubr.msk.bf16.mxu1 %vm7515_vm0, %v7514_v8 }
0x16cd   : > { %6654 = vmatprep.subr.bf16.mxu1 %v7514_v8 }
0x16d0   : > { %6639 = vmatmul.mubr.msk.bf16.vlgmr.msra.gmra.mrb[56].mxu0 %vm1951_vm1, %v4095_v31 }
0x16d1   : > { %6650 = vmatprep.mubr.msk.bf16.mxu0 %vm7515_vm0, %v7514_v8 }
0x16d3   : > { %6645 = vmatmul.mubr.msk.bf16.vlgmr.msra.gmra.mrb[84].mxu1 %vm1951_vm1, %v4145_v32 }
0x16d4   : > { %6656 = vmatprep.mubr.msk.bf16.mxu1 %vm7515_vm0, %v7514_v8 }
0x179a   : > { %v4026_v33 = vpop.f32.mrb[52].mxu0 }
0x179b   : > { %v6628_v34 = vpop.f32.mrb[53].mxu0  ;;  %v6136_v15 = vpack.c.bf16 %v4026_v33, %v4026_v33 }
0x179c   : > { %v4029_v35 = vpop.f32.mrb[54].mxu0 }
0x179d   : > { %v6629_v4 = vpop.f32.mrb[55].mxu0 }
0x179e   : > { %v4072_v36 = vpop.f32.mrb[80].mxu1 }
0x179f   : > { %v6634_v37 = vpop.f32.mrb[81].mxu1  ;;  %v6137_v56 = vpack.c.bf16 %v4072_v36, %v4072_v36 }
0x17a0   : > { %v4075_v38 = vpop.f32.mrb[82].mxu1 }
0x17a1   : > { %v6635_v39 = vpop.f32.mrb[83].mxu1  ;;  %v6022_v38 = vld [vmem:[%s1492_s27] ss:$0 sm:$0xff] }
0x17a3   : > { %v4138_v40 = vpop.f32.mrb[56].mxu0 }
0x17a4   : > { %v6640_v41 = vpop.f32.mrb[57].mxu0  ;;  %v4194_v42 = vsel %vm3511_vm9, %v4138_v40, -inf }
0x17a5   : > { %4195 = vmax.xlane.f32.xlu0 %v4194_v42  ;;  %v4141_v43 = vpop.f32.mrb[58].mxu0 }
0x17a6   : > { %v6641_v44 = vpop.f32.mrb[59].mxu0  ;;  %v4188_v45 = vpop.f32.mrb[84].mxu1 }
0x17a7   : > { %v6646_v48 = vpop.f32.mrb[85].mxu1  ;;  %v4197_v49 = vsel %vm3511_vm9, %v4188_v45, -inf }
0x17a8   : > { %4198 = vmax.xlane.f32.xlu1 %v4197_v49  ;;  %v4191_v50 = vpop.f32.mrb[86].mxu1  ;;  %v8780_v49 = vld [vmem:[%s1512_s9] ss:$0 sm:$0xff] }
0x17a9   : > { %v6647_v52 = vpop.f32.mrb[87].mxu1 }
0x17b9   : > { %4264 = vrot.lane.b32.xlu1 %v8611_v23, %s7518_s1 }
0x17bd   : > { %3854 = vrot.lane.b32.xlu1 %v6134_v53, %s7518_s1 }
0x17c1   : > { %3856 = vrot.lane.b32.xlu1 %v6135_v54, %s7518_s1 }
0x17c5   : > { %4088 = vrot.lane.b32.xlu1 %v6137_v56, %s7517_s21 }
0x1832   : > { %v4196_v59 = vpop.xlane.xlu0 %4195 }
0x1833   : > { %v4200_v62 = vsub.f32 %v4138_v40, %v4196_v59 }
0x1835   : > { %v4202_v63 = vmul.f32 1.442695, %v4200_v62  ;;  %v4199_v0 = vpop.xlane.xlu1 %4198 }
0x1836   : > { %v4201_v5 = vsub.f32 %v4188_v45, %v4199_v0 }
0x1837   : > { %7017 = vpow2.f32 %v4202_v63 }
0x1838   : > { %v4204_v23 = vmul.f32 1.442695, %v4201_v5 }
0x1839   : > { %v4265_v21 = vpop.permute.xlu1 %4264 }
0x183a   : > { %7019 = vpow2.f32 %v4204_v23  ;;  %6655 = vmatpush3.bf16.msra.mxu1 %v4265_v21 }
0x183d   : > { %v3855_v46 = vpop.permute.xlu1 %3854 }
0x183e   : > { %3860 = vst.msk [vmem:[#allocation4] sm:$0xf] %vm2401_vm6, %v3855_v46 }
0x1841   : > { %v7018_v6 = vpop.eup %7017  ;;  %v3857_v51 = vpop.permute.xlu1 %3856 }
0x1842   : > { %3861 = vst.msk [vmem:[#allocation4 + $0x4] sm:$0xf] %vm2401_vm6, %v3857_v51  ;;  %v4206_v9 = vsel %vm3511_vm9, %v7018_v6, 0.0 }
0x1843   : > { %4207 = vadd.xlane.f32.xlu0 %v4206_v9 }
0x1844   : > { %v7020_v11 = vpop.eup %7019 }
0x1845   : > { %v4089_v12 = vpop.permute.xlu1 %4088  ;;  %v4209_v47 = vsel %vm3511_vm9, %v7020_v11, 0.0 }
0x1846   : > { %4093 = vst.msk [vmem:[#allocation4 + $0x4] sm:$0xf] %vm2638_vm7, %v4089_v12 }
0x1847   : > { %4210 = vadd.xlane.f32.xlu0 %v4209_v47 }
0x185d   : > { %4218 = vrot.lane.b32.xlu0 %v8613_v24, %s7518_s1 }
0x1861   : > { %4086 = vrot.lane.b32.xlu0 %v6136_v15, %s7517_s21  ;;  %s9247_s21 = sld [smem:[#allocation44_spill]] }
0x1867   : > { %v6875_v52 = vld [vmem:[%s9247_s21 + $0x4] ss:$16 sps:$4 sm:$0xff]   ;;  %v6876_v53 = vld [vmem:[%s9247_s21 + $0x8] ss:$16 sps:$4 sm:$0xff]   ;;  %v6878_v54 = vld [vmem:[%s9247_s21 + $0xc] ss:$16 sps:$4 sm:$0xff]  }
0x1868   : > { %v6881_v56 = vld [vmem:[%s9247_s21 + $0x24] ss:$16 sps:$4 sm:$0xff]   ;;  %4706 = vmatprep.subr.bf16.mxu1 %v6875_v52  ;;  %v6879_v59 = vld [vmem:[%s9247_s21 + $0x20] ss:$16 sps:$4 sm:$0xff]   ;;  %v6882_v62 = vld [vmem:[%s9247_s21 + $0x28] ss:$16 sps:$4 sm:$0xff]  }
0x1869   : > { %v6887_v9 = vld [vmem:[%s9247_s21 + $0x44] ss:$16 sps:$4 sm:$0xff]   ;;  %v6885_v12 = vld [vmem:[%s9247_s21 + $0x40] ss:$16 sps:$4 sm:$0xff]   ;;  %v6888_v47 = vld [vmem:[%s9247_s21 + $0x48] ss:$16 sps:$4 sm:$0xff]  }
0x186a   : > { %v6893_v15 = vld [vmem:[%s9247_s21 + $0x64] ss:$16 sps:$4 sm:$0xff]  }
0x186b   : > { %v6925_v52 = vld [vmem:[%s8234_s20 + $0x48] sm:$0xff]  }
0x18d0   : > { %v4208_v55 = vpop.xlane.xlu0 %4207 }
0x18d1   : > { %7021 = vrcp.f32 %v4208_v55  ;;  %v6896_v55 = vld [vmem:[%s9247_s21 + $0x6c] ss:$16 sps:$4 sm:$0xff]  }
0x18d4   : > { %v4211_v2 = vpop.xlane.xlu0 %4210 }
0x18d5   : > { %7023 = vrcp.f32 %v4211_v2  ;;  %v6891_v2 = vld [vmem:[%s9247_s21 + $0x60] ss:$16 sps:$4 sm:$0xff]  }
0x18d8   : > { %v4219_v16 = vpop.permute.xlu0 %4218 }
0x18d9   : > { %6649 = vmatpush3.bf16.msra.mxu0 %v4219_v16  ;;  %v6894_v16 = vld [vmem:[%s9247_s21 + $0x68] ss:$16 sps:$4 sm:$0xff]  }
0x18da   : > { %6660 = vmatprep.subr.bf16.mxu0 %v7514_v8 }
0x18db   : > { %v7022_v17 = vpop.eup %7021 }
0x18dc   : > { %v4214_v18 = vmul.f32 %v7022_v17, %v7018_v6  ;;  %v4087_v60 = vpop.permute.xlu0 %4086  ;;  %v6899_v17 = vld [vmem:[%s9247_s21 + $0x84] ss:$16 sps:$4 sm:$0xff]  }
0x18dd   : > { %4092 = vst.msk [vmem:[#allocation4] sm:$0xf] %vm2638_vm7, %v4087_v60  ;;  %v6897_v60 = vld [vmem:[%s9247_s21 + $0x80] ss:$16 sps:$4 sm:$0xff]  }
0x18de   : > { %v4216_v24 = vpack.c.bf16 %v4214_v18, %v4214_v18  ;;  %v6902_v18 = vld [vmem:[%s9247_s21 + $0x8c] ss:$16 sps:$4 sm:$0xff]  }
0x18df   : > { %v7024_v58 = vpop.eup %7023 }
0x18e0   : > { %v4215_v20 = vmul.f32 %v7024_v58, %v7020_v11  ;;  %6651 = vmatmul.mubr.msk.bf16.vlgmr.msra.gmra.mrb[60].mxu0 %vm3511_vm9, %v4216_v24  ;;  %v6890_v11 = vld [vmem:[%s9247_s21 + $0x4c] ss:$16 sps:$4 sm:$0xff]   ;;  %v6900_v24 = vld [vmem:[%s9247_s21 + $0x88] ss:$16 sps:$4 sm:$0xff]   ;;  %v6905_v58 = vld [vmem:[%s9247_s21 + $0xa4] ss:$16 sps:$4 sm:$0xff]  }
0x18e1   : > { %6676 = vmatprep.mubr.msk.bf16.mxu0 %vm7515_vm0, %v7514_v8  ;;  %6661 = vmatpush3.bf16.msra.mxu0 %v6864_v22  ;;  %v6906_v22 = vld [vmem:[%s9247_s21 + $0xa8] ss:$16 sps:$4 sm:$0xff]  }
0x18e2   : > { %v4217_v13 = vpack.c.bf16 %v4215_v20, %v4215_v20  ;;  %6662 = vmatprep.subr.bf16.mxu0 %v7514_v8  ;;  %v6908_v20 = vld [vmem:[%s9247_s21 + $0xac] ss:$16 sps:$4 sm:$0xff]  }
0x18e4   : > { %6657 = vmatmul.mubr.msk.bf16.vlgmr.msra.gmra.mrb[88].mxu1 %vm3511_vm9, %v4217_v13  ;;  %v6903_v13 = vld [vmem:[%s9247_s21 + $0xa0] ss:$16 sps:$4 sm:$0xff]  }
0x18e5   : > { %6663 = vmatpush3.bf16.msra.mxu0 %v6865_v25  ;;  %v6911_v25 = vld [vmem:[%s9247_s21 + $0xc4] ss:$16 sps:$4 sm:$0xff]  }
0x18e6   : > { %6664 = vmatprep.subr.bf16.mxu0 %v7514_v8 }
0x18e9   : > { %6665 = vmatpush3.bf16.msra.mxu0 %v6866_v26  ;;  %v6914_v26 = vld [vmem:[%s9247_s21 + $0xcc] ss:$16 sps:$4 sm:$0xff]  }
0x18ea   : > { %6666 = vmatprep.subr.bf16.mxu0 %v7514_v8 }
0x18ed   : > { %6667 = vmatpush3.bf16.msra.mxu0 %v6867_v27  ;;  %v6909_v27 = vld [vmem:[%s9247_s21 + $0xc0] ss:$16 sps:$4 sm:$0xff]  }
0x18ee   : > { %6668 = vmatprep.subr.bf16.mxu0 %v7514_v8 }
0x18f1   : > { %6669 = vmatpush3.bf16.msra.mxu0 %v6868_v57  ;;  %v6912_v57 = vld [vmem:[%s9247_s21 + $0xc8] ss:$16 sps:$4 sm:$0xff]  }
0x18f2   : > { %6670 = vmatprep.subr.bf16.mxu0 %v7514_v8 }
0x18f5   : > { %6671 = vmatpush3.bf16.msra.mxu0 %v6869_v3  ;;  %v6917_v3 = vld [vmem:[%s9247_s21 + $0xe4] ss:$16 sps:$4 sm:$0xff]  }
0x18f6   : > { %6672 = vmatprep.subr.bf16.mxu0 %v7514_v8 }
0x18f9   : > { %6673 = vmatpush3.bf16.msra.mxu0 %v6870_v7  ;;  %v6920_v7 = vld [vmem:[%s9247_s21 + $0xec] ss:$16 sps:$4 sm:$0xff]  }
0x18fa   : > { %6674 = vmatprep.subr.bf16.mxu0 %v7514_v8 }
0x18fd   : > { %6675 = vmatpush3.bf16.msra.mxu0 %v6871_v28  ;;  %v6915_v28 = vld [vmem:[%s9247_s21 + $0xe0] ss:$16 sps:$4 sm:$0xff]  }
0x18fe   : > { %4749 = vmatprep.subr.bf16.mxu0 %v6878_v54  ;;  %v6927_v54 = vld [vmem:[%s8234_s20 + $0x8] sm:$0xff]  }
0x19b3   : > { %v4258_v14 = vpop.f32.mrb[60].mxu0 }
0x19b4   : > { %v6138_v29 = vpack.c.bf16 %v4258_v14, %v4258_v14  ;;  %v6652_v10 = vpop.f32.mrb[61].mxu0  ;;  %v6918_v14 = vld [vmem:[%s9247_s21 + $0xe8] ss:$16 sps:$4 sm:$0xff]  }
0x19b5   : > { %v4261_v30 = vpop.f32.mrb[62].mxu0 }
0x19b6   : > { %4318 = vrot.lane.b32.xlu0 %v6138_v29, %s7516_s28  ;;  %v6653_v31 = vpop.f32.mrb[63].mxu0  ;;  %v7519_v29 = vmov 0  }
0x19b7   : > { %v4304_v32 = vpop.f32.mrb[88].mxu1  ;;  %4738 = vmatprep.mubr.bf16.mxu1 %v7519_v29 }
0x19b8   : > { %v6139_v33 = vpack.c.bf16 %v4304_v32, %v4304_v32  ;;  %v6658_v34 = vpop.f32.mrb[89].mxu1 }
0x19b9   : > { %v4307_v35 = vpop.f32.mrb[90].mxu1 }
0x19ba   : > { %4320 = vrot.lane.b32.xlu1 %v6139_v33, %s7516_s28  ;;  %v6659_v4 = vpop.f32.mrb[91].mxu1 }
0x1a28   : > { %v4319_v36 = vpop.permute.xlu0 %4318 }
0x1a29   : > { %4324 = vst.msk [vmem:[#allocation4] sm:$0xf] %vm2875_vm8, %v4319_v36  ;;  %v6032_v36 = vld [vmem:[%s1495_s16] ss:$0 sm:$0xff] }
0x1a2c   : > { %v4321_v8 = vpop.permute.xlu1 %4320 }
0x1a2d   : > { %4325 = vst.msk [vmem:[#allocation4 + $0x4] sm:$0xf] %vm2875_vm8, %v4321_v8 }
0x1a34   : > { %v6872_v37 = vld [vmem:[#allocation4] sm:$0xff]  }
0x1a35   : > { %6677 = vmatmul.mubr.bf16.vlgmr.msra.gmra.mrb[64].mxu0 %v6872_v37 }
0x1a36   : > { %4750 = vmatpush1.bf16.msra.mxu0 %v6876_v53  ;;  %4781 = vmatprep.mubr.bf16.mxu0 %v7519_v29  ;;  %v6926_v53 = vld [vmem:[%s8234_s20 + $0xc8] sm:$0xff]  }
0x1b08   : > { %v4422_v39 = vpop.f32.mrb[64].mxu0 }
0x1b09   : > { %v4423_v40 = vadd.f32 %v6022_v38, %v4422_v39  ;;  %v6678_v41 = vpop.f32.mrb[65].mxu0  ;;  %v6033_v39 = vld [vmem:[%s1498_s3] ss:$0 sm:$0xff] }
0x1b0a   : > { %v4425_v42 = vpop.f32.mrb[66].mxu0 }
0x1b0b   : > { %v8771_v43 = vadd.f32 %v4423_v40, %v8518_v61  ;;  %v4426_v44 = vadd.f32 %v6022_v38, %v4425_v42  ;;  %v6679_v45 = vpop.f32.mrb[67].mxu0  ;;  %v6873_v61 = vld [vmem:[%s9247_s21] ss:$16 sps:$4 sm:$0xff]  }
0x1b0c   : > { %4707 = vmatpush1.bf16.msra.mxu1 %v6873_v61  ;;  %v6921_v45 = vld [vmem:[%s8234_s20 + $0x40] sm:$0xff]  }
0x1b0d   : > { %v4430_v48 = vadd.f32 %v4426_v44, %v8520_v1  ;;  %4433 = vadd.xlane.f32.xlu0 %v8771_v43  ;;  %v6884_v1 = vld [vmem:[%s9247_s21 + $0x2c] ss:$16 sps:$4 sm:$0xff]   ;;  %4708 = vmatprep.subr.bf16.mxu1 %v6881_v56 }
0x1b0e   : > { %4751 = vmatprep.subr.bf16.mxu0 %v6884_v1  ;;  %v6924_v61 = vld [vmem:[%s8234_s20 + $0x80] sm:$0xff]   ;;  %v6928_v56 = vld [vmem:[%s8234_s20 + $0x88] sm:$0xff]   ;;  %v6929_v1 = vld [vmem:[%s8234_s20 + $0x50] sm:$0xff]  }
0x1b0f   : > { %v4488_v50 = vadd.f32 %v8780_v49, %v4430_v48  ;;  %4435 = vadd.xlane.f32.xlu1 %v4430_v48  ;;  %4752 = vmatpush1.bf16.msra.mxu0 %v6882_v62  ;;  %v6931_v62 = vld [vmem:[%s8234_s20 + $0x10] sm:$0xff]  }
0x1b10   : > { %4709 = vmatpush1.bf16.msra.mxu1 %v6879_v59  ;;  %4753 = vmatprep.subr.bf16.mxu0 %v6890_v11  ;;  %v6930_v59 = vld [vmem:[%s8234_s20 + $0xd0] sm:$0xff]   ;;  %v6941_v11 = vld [vmem:[%s8234_s20 + $0x68] sm:$0xff]  }
0x1b11   : > { %4490 = vst [vmem:[#allocation2 + $0x8] sm:$0xff] %v4488_v50  ;;  %4710 = vmatprep.subr.bf16.mxu1 %v6887_v9  ;;  %v6923_v50 = vld [vmem:[%s8234_s20] sm:$0xff]  }
0x1b12   : > { %v6940_v9 = vld [vmem:[%s8234_s20 + $0xa0] sm:$0xff]  }
0x1b13   : > { %4754 = vmatpush1.bf16.msra.mxu0 %v6888_v47  ;;  %v6943_v47 = vld [vmem:[%s8234_s20 + $0x28] sm:$0xff]  }
0x1b14   : > { %4711 = vmatpush1.bf16.msra.mxu1 %v6885_v12  ;;  %4755 = vmatprep.subr.bf16.mxu0 %v6896_v55  ;;  %v6942_v12 = vld [vmem:[%s8234_s20 + $0xe8] sm:$0xff]   ;;  %v6945_v55 = vld [vmem:[%s8234_s20 + $0x70] sm:$0xff]  }
0x1b15   : > { %4712 = vmatprep.subr.bf16.mxu1 %v6893_v15  ;;  %v6944_v15 = vld [vmem:[%s8234_s20 + $0xa8] sm:$0xff]  }
0x1b17   : > { %4756 = vmatpush1.bf16.msra.mxu0 %v6894_v16  ;;  %v6947_v16 = vld [vmem:[%s8234_s20 + $0x30] sm:$0xff]  }
0x1b18   : > { %4713 = vmatpush1.bf16.msra.mxu1 %v6891_v2  ;;  %4757 = vmatprep.subr.bf16.mxu0 %v6902_v18  ;;  %v6946_v2 = vld [vmem:[%s8234_s20 + $0xf0] sm:$0xff]   ;;  %v6949_v18 = vld [vmem:[%s8234_s20 + $0x78] sm:$0xff]  }
0x1b19   : > { %4714 = vmatprep.subr.bf16.mxu1 %v6899_v17  ;;  %v6948_v17 = vld [vmem:[%s8234_s20 + $0xb0] sm:$0xff]  }
0x1b1b   : > { %4758 = vmatpush1.bf16.msra.mxu0 %v6900_v24  ;;  %v6951_v24 = vld [vmem:[%s8234_s20 + $0x38] sm:$0xff]  }
0x1b1c   : > { %4715 = vmatpush1.bf16.msra.mxu1 %v6897_v60  ;;  %4759 = vmatprep.subr.bf16.mxu0 %v6908_v20  ;;  %v6950_v60 = vld [vmem:[%s8234_s20 + $0xf8] sm:$0xff]   ;;  %v4528_v20 = vsub.s32 0, %v8342_v19 }
0x1b1d   : > { %4716 = vmatprep.subr.bf16.mxu1 %v6905_v58  ;;  %v6952_v58 = vld [vmem:[%s8234_s20 + $0xb8] sm:$0xff]  }
0x1b1f   : > { %4760 = vmatpush1.bf16.msra.mxu0 %v6906_v22  ;;  %v4524_v22 = vld [vmem:[%s8232_s14] sm:$0xf]  ;;  %s9253_s14 = sld [smem:[#allocation71_spill]] (%p5356_p6) }
0x1b20   : > { %4717 = vmatpush1.bf16.msra.mxu1 %v6903_v13  ;;  %4761 = vmatprep.subr.bf16.mxu0 %v6914_v26  ;;  %v4536_v13 = vsub.s32 2, %v8342_v19  ;;  %v4540_v26 = vsub.s32 3, %v8342_v19 }
0x1b21   : > { %4718 = vmatprep.subr.bf16.mxu1 %v6911_v25  ;;  %v4532_v25 = vsub.s32 1, %v8342_v19 }
0x1b23   : > { %4762 = vmatpush1.bf16.msra.mxu0 %v6912_v57  ;;  %v4537_v57 = vrot.slane %v4524_v22, %v4536_v13 }
0x1b24   : > { %4719 = vmatpush1.bf16.msra.mxu1 %v6909_v27  ;;  %4763 = vmatprep.subr.bf16.mxu0 %v6920_v7  ;;  %v4529_v27 = vrot.slane %v4524_v22, %v4528_v20  ;;  %v4541_v7 = vrot.slane %v4524_v22, %v4540_v26 }
0x1b25   : > { %4720 = vmatprep.subr.bf16.mxu1 %v6917_v3  ;;  %v4533_v3 = vrot.slane %v4524_v22, %v4532_v25 }
0x1b27   : > { %4764 = vmatpush1.bf16.msra.mxu0 %v6918_v14 }
0x1b28   : > { %4721 = vmatpush1.bf16.msra.mxu1 %v6915_v28 }
0x1b29   : > { %6284 = vmatprep.subr.bf16.mxu1 %v6921_v45 }
0x1b9a   : > { %v4434_v63 = vpop.xlane.xlu0 %4433 }
0x1b9b   : > { %v4437_v0 = vmul.f32 0.0078125, %v4434_v63  ;;  %v6932_v63 = vld [vmem:[%s8234_s20 + $0x90] sm:$0xff]  }
0x1b9c   : > { %v4436_v5 = vpop.xlane.xlu1 %4435 }
0x1b9d   : > { %v8792_v23 = vsub.f32 %v8771_v43, %v4437_v0  ;;  %v4438_v21 = vmul.f32 0.0078125, %v4436_v5  ;;  %v6933_v0 = vld [vmem:[%s8234_s20 + $0x58] sm:$0xff]  }
0x1b9e   : > { %v6934_v5 = vld [vmem:[%s8234_s20 + $0xd8] sm:$0xff]  }
0x1b9f   : > { %v8794_v46 = vsub.f32 %v4430_v48, %v4438_v21  ;;  %v4441_v6 = vmul.f32 %v8792_v23, %v8792_v23  ;;  %v6922_v48 = vld [vmem:[%s8234_s20 + $0xc0] sm:$0xff]   ;;  %v6936_v21 = vld [vmem:[%s8234_s20 + $0x98] sm:$0xff]  }
0x1ba0   : > { %6306 = vmatprep.subr.bf16.mxu0 %v6922_v48 }
0x1ba1   : > { %4443 = vadd.xlane.f32.xlu0 %v4441_v6  ;;  %v4442_v51 = vmul.f32 %v8794_v46, %v8794_v46  ;;  %v6938_v6 = vld [vmem:[%s8234_s20 + $0xe0] sm:$0xff]  }
0x1ba5   : > { %4445 = vadd.xlane.f32.xlu0 %v4442_v51  ;;  %v6939_v51 = vld [vmem:[%s8234_s20 + $0x20] sm:$0xff]  }
0x1c2e   : > { %v4444_v10 = vpop.xlane.xlu0 %4443 }
0x1c2f   : > { %v4447_v30 = vmul.f32 0.0078125, %v4444_v10 }
0x1c31   : > { %v4449_v31 = vadd.f32 1e-05, %v4447_v30 }
0x1c32   : > { %v4446_v32 = vpop.xlane.xlu0 %4445 }
0x1c33   : > { %7025 = vrsqrt.f32 %v4449_v31  ;;  %v4448_v33 = vmul.f32 0.0078125, %v4446_v32 }
0x1c35   : > { %v4450_v34 = vadd.f32 1e-05, %v4448_v33 }
0x1c37   : > { %7027 = vrsqrt.f32 %v4450_v34 }
0x1c3d   : > { %v7026_v35 = vpop.eup %7025 }
0x1c3e   : > { %v4453_v4 = vmul.f32 %v7026_v35, %v8792_v23  ;;  %v6935_v23 = vld [vmem:[%s8234_s20 + $0x18] sm:$0xff]  }
0x1c40   : > { %v4461_v38 = vmul.f32 %v6032_v36, %v4453_v4 }
0x1c41   : > { %v7028_v8 = vpop.eup %7027 }
0x1c42   : > { %v4454_v37 = vmul.f32 %v7028_v8, %v8794_v46  ;;  %v4469_v41 = vadd.f32 %v6033_v39, %v4461_v38  ;;  %v6937_v46 = vld [vmem:[%s8234_s20 + $0x60] sm:$0xff]  }
0x1c44   : > { %v4462_v40 = vmul.f32 %v6032_v36, %v4454_v37 }
0x1c46   : > { %v4470_v42 = vadd.f32 %v6033_v39, %v4462_v40 }
0x1c48   : > { %v6140_v44 = vpack.c.bf16 %v4470_v42, %v4469_v41 }
0x1c4a   : > { %4739 = vmatmul.mubr.bf16.vlgmr.msra.gmra.mrb[92].mxu1 %v6140_v44  ;;  %4782 = vmatmul.mubr.bf16.vlgmr.msra.gmra.mrb[68].mxu0 %v6140_v44 }
0x1c4b   : > { %6285 = vmatpush3.bf16.msra.mxu1 %v6923_v50  ;;  %6307 = vmatpush3.bf16.msra.mxu0 %v6924_v61 }
0x1c4c   : > { %6286 = vmatprep.subr.bf16.mxu1 %v6925_v52  ;;  %6308 = vmatprep.subr.bf16.mxu0 %v6926_v53 }
0x1c4f   : > { %6287 = vmatpush3.bf16.msra.mxu1 %v6927_v54  ;;  %6309 = vmatpush3.bf16.msra.mxu0 %v6928_v56 }
0x1c50   : > { %6288 = vmatprep.subr.bf16.mxu1 %v6929_v1  ;;  %6310 = vmatprep.subr.bf16.mxu0 %v6930_v59 }
0x1c53   : > { %6289 = vmatpush3.bf16.msra.mxu1 %v6931_v62  ;;  %6311 = vmatpush3.bf16.msra.mxu0 %v6932_v63 }
0x1c54   : > { %6290 = vmatprep.subr.bf16.mxu1 %v6933_v0  ;;  %6312 = vmatprep.subr.bf16.mxu0 %v6934_v5 }
0x1c57   : > { %6291 = vmatpush3.bf16.msra.mxu1 %v6935_v23  ;;  %6313 = vmatpush3.bf16.msra.mxu0 %v6936_v21 }
0x1c58   : > { %6292 = vmatprep.subr.bf16.mxu1 %v6937_v46  ;;  %6314 = vmatprep.subr.bf16.mxu0 %v6938_v6 }
0x1c5b   : > { %6293 = vmatpush3.bf16.msra.mxu1 %v6939_v51  ;;  %6315 = vmatpush3.bf16.msra.mxu0 %v6940_v9 }
0x1c5c   : > { %6294 = vmatprep.subr.bf16.mxu1 %v6941_v11  ;;  %6316 = vmatprep.subr.bf16.mxu0 %v6942_v12 }
0x1c5f   : > { %6295 = vmatpush3.bf16.msra.mxu1 %v6943_v47  ;;  %6317 = vmatpush3.bf16.msra.mxu0 %v6944_v15 }
0x1c60   : > { %6296 = vmatprep.subr.bf16.mxu1 %v6945_v55  ;;  %6318 = vmatprep.subr.bf16.mxu0 %v6946_v2 }
0x1c63   : > { %6297 = vmatpush3.bf16.msra.mxu1 %v6947_v16  ;;  %6319 = vmatpush3.bf16.msra.mxu0 %v6948_v17 }
0x1c64   : > { %6298 = vmatprep.subr.bf16.mxu1 %v6949_v18  ;;  %6320 = vmatprep.subr.bf16.mxu0 %v6950_v60 }
0x1c67   : > { %6299 = vmatpush3.bf16.msra.mxu1 %v6951_v24  ;;  %6321 = vmatpush3.bf16.msra.mxu0 %v6952_v58 }
0x1d1d   : > { %v4740_v28 = vpop.f32.mrb[92].mxu1  ;;  %v4783_v14 = vpop.f32.mrb[68].mxu0 }
0x1d1e   : > { %v4741_v29 = vadd.f32 %v4740_v28, %v4529_v27  ;;  %v4784_v10 = vadd.f32 %v4783_v14, %v4537_v57  ;;  %v4742_v30 = vpop.f32.mrb[93].mxu1  ;;  %v4785_v31 = vpop.f32.mrb[69].mxu0 }
0x1d1f   : > { %v8873_v32 = vadd.f32 %v4742_v30, %v4533_v3  ;;  %v8875_v33 = vadd.f32 %v4785_v31, %v4541_v7  ;;  %v4744_v34 = vpop.f32.mrb[94].mxu1  ;;  %v4787_v35 = vpop.f32.mrb[70].mxu0 }
0x1d20   : > { %v8877_v4 = vmul.f32 0.70710677, %v4741_v29  ;;  %v8879_v36 = vmul.f32 0.70710677, %v4784_v10  ;;  %v4746_v40 = vpop.f32.mrb[95].mxu1  ;;  %v4789_v45 = vpop.f32.mrb[71].mxu0  ;;  %v8891_v53 = vadd.f32 %v4744_v34, %v4529_v27  ;;  %v8896_v1 = vadd.f32 %v4787_v35, %v4537_v57 }
0x1d21   : > { %v8882_v19 = vmul.f32 0.70710677, %v8873_v32  ;;  %v8888_v39 = vmul.f32 0.70710677, %v8875_v33  ;;  %v8898_v62 = vadd.f32 %v4746_v40, %v4533_v3  ;;  %v8908_v11 = vadd.f32 %v4789_v45, %v4541_v7 }
0x1d22   : > { %v4824_v8 = vand.u32 2147483647, %v8877_v4  ;;  %v4826_v37 = vand.u32 2147483647, %v8879_v36  ;;  %v8894_v56 = vmul.f32 0.70710677, %v8891_v53 }
0x1d23   : > { %v4825_v38 = vand.u32 2147483647, %v8882_v19  ;;  %v4827_v61 = vand.u32 2147483647, %v8888_v39  ;;  %v8902_v5 = vmul.f32 0.70710677, %v8896_v1 }
0x1d24   : > { %v4832_v41 = vmul.f32 0.3275911, %v4824_v8  ;;  %v4834_v42 = vmul.f32 0.3275911, %v4826_v37  ;;  %v4828_v63 = vand.u32 2147483647, %v8894_v56 }
0x1d25   : > { %v4833_v44 = vmul.f32 0.3275911, %v4825_v38  ;;  %v4835_v54 = vmul.f32 0.3275911, %v4827_v61  ;;  %v4936_v0 = vsub.f32 0.0, %v4824_v8  ;;  %v4938_v23 = vsub.f32 0.0, %v4826_v37 }
0x1d26   : > { %v4840_v48 = vadd.f32 1.0, %v4832_v41  ;;  %v4842_v50 = vadd.f32 1.0, %v4834_v42  ;;  %v4836_v21 = vmul.f32 0.3275911, %v4828_v63  ;;  %v4937_v46 = vsub.f32 0.0, %v4825_v38 }
0x1d27   : > { %v4841_v52 = vadd.f32 1.0, %v4833_v44  ;;  %v4843_v59 = vadd.f32 1.0, %v4835_v54  ;;  %v4830_v6 = vand.u32 2147483647, %v8902_v5  ;;  %v8906_v51 = vmul.f32 0.70710677, %v8898_v62 }
0x1d28   : > { %7029 = vrcp.f32 %v4840_v48  ;;  %v4844_v9 = vadd.f32 1.0, %v4836_v21  ;;  %v4944_v12 = vmul.f32 %v4936_v0, %v4824_v8  ;;  %v4946_v2 = vmul.f32 %v4938_v23, %v4826_v37 }
0x1d29   : > { %7031 = vrcp.f32 %v4842_v50  ;;  %v4838_v47 = vmul.f32 0.3275911, %v4830_v6  ;;  %v8911_v15 = vand.u32 2147483647, %v8906_v51  ;;  %v4939_v16 = vsub.f32 0.0, %v4827_v61 }
0x1d2a   : > { %7033 = vrcp.f32 %v4841_v52  ;;  %v4945_v60 = vmul.f32 %v4937_v46, %v4825_v38  ;;  %v8919_v20 = vmul.f32 0.5, %v4741_v29  ;;  %v8921_v13 = vmul.f32 0.5, %v4784_v10 }
0x1d2b   : > { %7035 = vrcp.f32 %v4843_v59  ;;  %v4846_v24 = vadd.f32 1.0, %v4838_v47  ;;  %v4837_v58 = vmul.f32 0.3275911, %v8911_v15  ;;  %v8925_v25 = vmul.f32 0.70710677, %v8908_v11 }
0x1d2c   : > { %7037 = vrcp.f32 %v4844_v9  ;;  %v4952_v27 = vmul.f32 1.442695, %v4944_v12  ;;  %v4956_v28 = vmul.f32 1.442695, %v4946_v2  ;;  %v4947_v14 = vmul.f32 %v4939_v16, %v4827_v61 }
0x1d2d   : > { %7039 = vrcp.f32 %v4846_v24  ;;  %v4845_v57 = vadd.f32 1.0, %v4837_v58  ;;  %v8930_v30 = vand.u32 2147483647, %v8925_v25  ;;  %v4954_v31 = vmul.f32 1.442695, %v4945_v60 }
0x1d2e   : > { %v4940_v34 = vsub.f32 0.0, %v4828_v63  ;;  %v4942_v37 = vsub.f32 0.0, %v4830_v6  ;;  %v4958_v45 = vmul.f32 1.442695, %v4947_v14  ;;  %vm4808_vm10 = vcmp.ge.f32.partialorder %v8877_v4, 0.0 }
0x1d2f   : > { %7041 = vrcp.f32 %v4845_v57  ;;  %v4839_v38 = vmul.f32 0.3275911, %v8930_v30  ;;  %v4941_v2 = vsub.f32 0.0, %v8911_v15  ;;  %vm4810_vm11 = vcmp.ge.f32.partialorder %v8879_v36, 0.0 }
0x1d30   : > { %7043 = vpow2.f32 %v4952_v27  ;;  %v4948_v0 = vmul.f32 %v4940_v34, %v4828_v63  ;;  %v4950_v23 = vmul.f32 %v4942_v37, %v4830_v6  ;;  %v4943_v34 = vsub.f32 0.0, %v8930_v30 }
0x1d31   : > { %7045 = vpow2.f32 %v4956_v28  ;;  %v4847_v48 = vadd.f32 1.0, %v4839_v38  ;;  %vm4809_vm12 = vcmp.ge.f32.partialorder %v8882_v19, 0.0  ;;  %vm4812_vm13 = vcmp.ge.f32.partialorder %v8894_v56, 0.0 }
0x1d32   : > { %v8913_v55 = vpop.eup %7029  ;;  %7047 = vpow2.f32 %v4954_v31  ;;  %v4960_v58 = vmul.f32 1.442695, %v4948_v0  ;;  %v4949_v31 = vmul.f32 %v4941_v2, %v8911_v15  ;;  %vm4814_vm14 = vcmp.ge.f32.partialorder %v8902_v5, 0.0 }
0x1d33   : > { %v8915_v17 = vpop.eup %7031  ;;  %v4864_v18 = vmul.f32 1.0614054, %v8913_v55  ;;  %7049 = vrcp.f32 %v4847_v48  ;;  %vm4811_vm15 = vcmp.ge.f32.partialorder %v8888_v39, 0.0  ;;  %vm4813_vm0 = vcmp.ge.f32.partialorder %v8906_v51, 0.0 }
0x1d34   : > { %v4866_v22 = vmul.f32 1.0614054, %v8915_v17  ;;  %v8927_v3 = vpop.eup %7033  ;;  %7051 = vpow2.f32 %v4958_v45  ;;  %vm4815_vm1 = vcmp.ge.f32.partialorder %v8925_v25, 0.0  ;;  %v4795_v25 = vmul.f32 0.5, %v8875_v33 }
0x1d35   : > { %v4872_v26 = vadd.f32 -1.4531521, %v4864_v18  ;;  %v4865_v10 = vmul.f32 1.0614054, %v8927_v3  ;;  %v8934_v35 = vpop.eup %7035  ;;  %7053 = vpow2.f32 %v4960_v58 }
0x1d36   : > { %v4874_v7 = vadd.f32 -1.4531521, %v4866_v22  ;;  %v4867_v42 = vmul.f32 1.0614054, %v8934_v35  ;;  %v8941_v54 = vpop.eup %7037 }
0x1d37   : > { %v4880_v29 = vmul.f32 %v8913_v55, %v4872_v26  ;;  %v4873_v41 = vadd.f32 -1.4531521, %v4865_v10  ;;  %v4868_v12 = vmul.f32 1.0614054, %v8941_v54  ;;  %v8948_v16 = vpop.eup %7039  ;;  %v4964_v26 = vmul.f32 1.442695, %v4950_v23 }
0x1d38   : > { %v4882_v8 = vmul.f32 %v8915_v17, %v4874_v7  ;;  %v4875_v52 = vadd.f32 -1.4531521, %v4867_v42  ;;  %v4870_v22 = vmul.f32 1.0614054, %v8948_v16 }
0x1d39   : > { %v4888_v40 = vadd.f32 1.4214138, %v4880_v29  ;;  %v4881_v61 = vmul.f32 %v8927_v3, %v4873_v41  ;;  %v4876_v60 = vadd.f32 -1.4531521, %v4868_v12  ;;  %v8956_v14 = vpop.eup %7041  ;;  %7055 = vpow2.f32 %v4964_v26 }
0x1d3a   : > { %v4890_v44 = vadd.f32 1.4214138, %v4882_v8  ;;  %v4883_v9 = vmul.f32 %v8934_v35, %v4875_v52  ;;  %v4878_v10 = vadd.f32 -1.4531521, %v4870_v22  ;;  %v7044_v8 = vpop.eup %7043  ;;  %v4869_v45 = vmul.f32 1.0614054, %v8956_v14 }
0x1d3b   : > { %v4896_v50 = vmul.f32 %v8913_v55, %v4888_v40  ;;  %v4889_v46 = vadd.f32 1.4214138, %v4881_v61  ;;  %v4884_v28 = vmul.f32 %v8941_v54, %v4876_v60  ;;  %v7046_v42 = vpop.eup %7045  ;;  %v4962_v12 = vmul.f32 1.442695, %v4949_v31 }
0x1d3c   : > { %v4898_v59 = vmul.f32 %v8915_v17, %v4890_v44  ;;  %v4891_v6 = vadd.f32 1.4214138, %v4883_v9  ;;  %v4886_v44 = vmul.f32 %v8948_v16, %v4878_v10  ;;  %v7048_v48 = vpop.eup %7047 }
0x1d3d   : > { %v4904_v21 = vadd.f32 -0.28449672, %v4896_v50  ;;  %v4897_v63 = vmul.f32 %v8927_v3, %v4889_v46  ;;  %v4892_v41 = vadd.f32 1.4214138, %v4884_v28  ;;  %v8968_v52 = vpop.eup %7049  ;;  %7057 = vpow2.f32 %v4962_v12 }
0x1d3e   : > { %v4906_v47 = vadd.f32 -0.28449672, %v4898_v59  ;;  %v4899_v7 = vmul.f32 %v8934_v35, %v4891_v6  ;;  %v7520_v59 = vmov -1.0   ;;  %v4894_v23 = vadd.f32 1.4214138, %v4886_v44 }
0x1d3f   : > { %v4912_v18 = vmul.f32 %v8913_v55, %v4904_v21  ;;  %v4905_v57 = vadd.f32 -0.28449672, %v4897_v63  ;;  %v4816_v0 = vsel %vm4808_vm10, 1.0, %v7520_v59  ;;  %v4877_v21 = vadd.f32 -1.4531521, %v4869_v45 }
0x1d40   : > { %v4914_v24 = vmul.f32 %v8915_v17, %v4906_v47  ;;  %v4907_v40 = vadd.f32 -0.28449672, %v4899_v7  ;;  %v7052_v47 = vpop.eup %7051  ;;  %v4818_v2 = vsel %vm4810_vm11, 1.0, %v7520_v59  ;;  %v4871_v4 = vmul.f32 1.0614054, %v8968_v52 }
0x1d41   : > { %v4920_v27 = vadd.f32 0.2548296, %v4912_v18  ;;  %v4913_v38 = vmul.f32 %v8927_v3, %v4905_v57  ;;  %v4902_v18 = vmul.f32 %v8948_v16, %v4894_v23  ;;  %v4885_v63 = vmul.f32 %v8956_v14, %v4877_v21 }
0x1d42   : > { %v4922_v29 = vadd.f32 0.2548296, %v4914_v24  ;;  %v4915_v61 = vmul.f32 %v8934_v35, %v4907_v40  ;;  %v4817_v19 = vsel %vm4809_vm12, 1.0, %v7520_v59  ;;  %v4820_v45 = vsel %vm4812_vm13, 1.0, %v7520_v59 }
0x1d43   : > { %v4928_v37 = vmul.f32 %v8913_v55, %v4920_v27  ;;  %v4921_v50 = vadd.f32 0.2548296, %v4913_v38  ;;  %v4900_v55 = vmul.f32 %v8941_v54, %v4892_v41  ;;  %v4910_v22 = vadd.f32 -0.28449672, %v4902_v18 }
0x1d44   : > { %v4930_v15 = vmul.f32 %v8915_v17, %v4922_v29  ;;  %v4951_v17 = vmul.f32 %v4943_v34, %v8930_v30  ;;  %v4923_v24 = vadd.f32 0.2548296, %v4915_v61  ;;  %v4893_v26 = vadd.f32 1.4214138, %v4885_v63  ;;  %v7054_v34 = vpop.eup %7053 }
0x1d45   : > { %v4968_v46 = vmul.f32 %v7044_v8, %v4928_v37  ;;  %v4908_v9 = vadd.f32 -0.28449672, %v4900_v55  ;;  %v4929_v60 = vmul.f32 %v8927_v3, %v4921_v50  ;;  %v4879_v30 = vadd.f32 -1.4531521, %v4871_v4  ;;  %v7056_v44 = vpop.eup %7055 }
0x1d46   : > { %v4970_v6 = vmul.f32 %v7046_v42, %v4930_v15  ;;  %v4966_v36 = vmul.f32 1.442695, %v4951_v17  ;;  %v4918_v7 = vmul.f32 %v8948_v16, %v4910_v22  ;;  %v4901_v28 = vmul.f32 %v8956_v14, %v4893_v26 }
0x1d47   : > { %v4916_v58 = vmul.f32 %v8941_v54, %v4908_v9  ;;  %v4976_v27 = vsub.f32 1.0, %v4968_v46  ;;  %v4887_v29 = vmul.f32 %v8968_v52, %v4879_v30  ;;  %v4969_v3 = vmul.f32 %v7048_v48, %v4929_v60  ;;  %v7058_v18 = vpop.eup %7057 }
0x1d48   : > { %v4978_v10 = vsub.f32 1.0, %v4970_v6  ;;  %v4931_v8 = vmul.f32 %v8934_v35, %v4923_v24  ;;  %v4926_v37 = vadd.f32 0.2548296, %v4918_v7  ;;  %v4909_v38 = vadd.f32 -0.28449672, %v4901_v28 }
0x1d49   : > { %v4924_v57 = vadd.f32 0.2548296, %v4916_v58  ;;  %v4895_v40 = vadd.f32 1.4214138, %v4887_v29  ;;  %v4984_v41 = vmul.f32 %v4976_v27, %v4816_v0  ;;  %7059 = vpow2.f32 %v4966_v36 }
0x1d4a   : > { %v4934_v48 = vmul.f32 %v8948_v16, %v4926_v37  ;;  %v4917_v56 = vmul.f32 %v8956_v14, %v4909_v38  ;;  %v4986_v15 = vmul.f32 %v4978_v10, %v4818_v2  ;;  %v4977_v50 = vsub.f32 1.0, %v4969_v3 }
0x1d4b   : > { %v4932_v31 = vmul.f32 %v8941_v54, %v4924_v57  ;;  %v4903_v54 = vmul.f32 %v8968_v52, %v4895_v40  ;;  %v4971_v61 = vmul.f32 %v7052_v47, %v4931_v8  ;;  %v4992_v21 = vadd.f32 1.0, %v4984_v41 }
0x1d4c   : > { %v4974_v55 = vmul.f32 %v7056_v44, %v4934_v48  ;;  %v4925_v0 = vadd.f32 0.2548296, %v4917_v56  ;;  %v4796_v46 = vmul.f32 0.5, %v8891_v53  ;;  %v4822_v16 = vsel %vm4814_vm14, 1.0, %v7520_v59 }
0x1d4d   : > { %v4972_v42 = vmul.f32 %v7054_v34, %v4932_v31  ;;  %v4911_v23 = vadd.f32 -0.28449672, %v4903_v54  ;;  %v4994_v63 = vadd.f32 1.0, %v4986_v15  ;;  %v4985_v5 = vmul.f32 %v4977_v50, %v4817_v19 }
0x1d4e   : > { %v4982_v12 = vsub.f32 1.0, %v4974_v55  ;;  %v4933_v17 = vmul.f32 %v8956_v14, %v4925_v0  ;;  %v4979_v4 = vsub.f32 1.0, %v4971_v61  ;;  %v5000_v53 = vmul.f32 %v4992_v21, %v8919_v20 }
0x1d4f   : > { %v4980_v35 = vsub.f32 1.0, %v4972_v42  ;;  %v4919_v2 = vmul.f32 %v8968_v52, %v4911_v23  ;;  %v4819_v58 = vsel %vm4811_vm15, 1.0, %v7520_v59  ;;  %v4798_v14 = vmul.f32 0.5, %v8896_v1 }
0x1d50   : > { %v4990_v6 = vmul.f32 %v4982_v12, %v4822_v16  ;;  %v4973_v60 = vmul.f32 %v7058_v18, %v4933_v17  ;;  %v4821_v30 = vsel %vm4813_vm0, 1.0, %v7520_v59  ;;  %v5002_v36 = vmul.f32 %v4994_v63, %v8921_v13 }
0x1d51   : > { %v4988_v9 = vmul.f32 %v4980_v35, %v4820_v45  ;;  %v4927_v24 = vadd.f32 0.2548296, %v4919_v2  ;;  %v4993_v7 = vadd.f32 1.0, %v4985_v5  ;;  %v4987_v20 = vmul.f32 %v4979_v4, %v4819_v58 }
0x1d52   : > { %v4998_v26 = vadd.f32 1.0, %v4990_v6  ;;  %v4981_v27 = vsub.f32 1.0, %v4973_v60  ;;  %v4793_v3 = vmul.f32 0.5, %v8873_v32  ;;  %v4797_v31 = vmul.f32 0.5, %v8898_v62 }
0x1d53   : > { %v4996_v47 = vadd.f32 1.0, %v4988_v9  ;;  %v4935_v57 = vmul.f32 %v8968_v52, %v4927_v24  ;;  %v7060_v51 = vpop.eup %7059  ;;  %v4823_v52 = vsel %vm4815_vm1, 1.0, %v7520_v59  ;;  %v4995_v13 = vadd.f32 1.0, %v4987_v20  ;;  %v5009_v9 = vld [vmem:[#allocation2 + $0x8] sm:$0xff] }
0x1d54   : > { %v5006_v29 = vmul.f32 %v4998_v26, %v4798_v14  ;;  %v4989_v39 = vmul.f32 %v4981_v27, %v4821_v30  ;;  %v5001_v37 = vmul.f32 %v4993_v7, %v4793_v3  ;;  %v4799_v41 = vmul.f32 0.5, %v8908_v11  ;;  %v6101_v26 = vld [vmem:[%s9253_s14] ss:$0 sm:$0xff] (%p5356_p6) }
0x1d55   : > { %v5004_v22 = vmul.f32 %v4996_v47, %v4796_v46  ;;  %v4975_v10 = vmul.f32 %v7060_v51, %v4935_v57  ;;  %v5003_v44 = vmul.f32 %v4995_v13, %v4795_v25  ;;  %v4487_v55 = vadd.f32 %v8780_v49, %v8771_v43  ;;  %v6102_v27 = vld [vmem:[%s9254_s10] ss:$0 sm:$0xff] (%p5356_p6) }
0x1d56   : > { %v5012_v1 = vpack.c.bf16 %v5006_v29, %v5002_v36  ;;  %v4997_v34 = vadd.f32 1.0, %v4989_v39 }
0x1d57   : > { %v5010_v28 = vpack.c.bf16 %v5004_v22, %v5000_v53  ;;  %v4983_v8 = vsub.f32 1.0, %v4975_v10 }
0x1d58   : > { %v5005_v38 = vmul.f32 %v4997_v34, %v4797_v31 }
0x1d59   : > { %v4991_v40 = vmul.f32 %v4983_v8, %v4823_v52 }
0x1d5a   : > { %v5011_v42 = vpack.c.bf16 %v5005_v38, %v5001_v37 }
0x1d5b   : > { %v4999_v19 = vadd.f32 1.0, %v4991_v40 }
0x1d5c   : > { %5302 = vmatprep.mubr.bf16.mxu1 %v5011_v42 }
0x1d5d   : > { %v5007_v32 = vmul.f32 %v4999_v19, %v4799_v41  ;;  %5303 = vmatmul.mubr.bf16.vlgmr.msra.gmra.mrb[96].mxu1 %v5010_v28 }
0x1d5f   : > { %v5013_v62 = vpack.c.bf16 %v5007_v32, %v5003_v44 }
0x1d61   : > { %5343 = vmatprep.mubr.bf16.mxu0 %v5013_v62 }
0x1d62   : > { %5344 = vmatmul.mubr.bf16.vlgmr.msra.gmra.mrb[72].mxu0 %v5012_v1 }
0x1e30   : > { %v6300_v59 = vpop.f32.mrb[96].mxu1 }
0x1e31   : > { %v6301_v45 = vpop.f32.mrb[97].mxu1 }
0x1e32   : > { %v6302_v48 = vadd.f32 %v6301_v45, %v6300_v59  ;;  %v6303_v56 = vpop.f32.mrb[98].mxu1 }
0x1e33   : > { %v6304_v54 = vpop.f32.mrb[99].mxu1 }
0x1e34   : > { %v6305_v50 = vadd.f32 %v6304_v54, %v6303_v56 }
0x1e35   : > { %v6322_v15 = vpop.f32.mrb[72].mxu0 }
0x1e36   : > { %v6323_v33 = vpop.f32.mrb[73].mxu0 }
0x1e37   : > { %v6324_v35 = vadd.f32 %v6323_v33, %v6322_v15  ;;  %v6325_v11 = vpop.f32.mrb[74].mxu0 }
0x1e38   : > { %v6326_v61 = vpop.f32.mrb[75].mxu0 }
0x1e39   : > { %v5346_v0 = vadd.f32 %v6324_v35, %v6302_v48  ;;  %v6327_v23 = vadd.f32 %v6326_v61, %v6325_v11  ;;  %5360 = sbr.rel (!%p5356_p6) target bundleno = 8065 (0x1f81), region = 188 }
0x1e3b   : > { %v5352_v21 = vadd.f32 %v5346_v0, %v4487_v55  ;;  %v5349_v46 = vadd.f32 %v6327_v23, %v6305_v50 }
0x1e3d   : > { %5354 = vst [vmem:[#allocation2] sm:$0xff] %v5352_v21  ;;  %v5353_v16 = vadd.f32 %v5349_v46, %v5009_v9 }
0x1e3f   : > { %5355 = vst [vmem:[#allocation2 + $0x8] sm:$0xff] %v5353_v16 }
0x1e44   : > { %v5361_v12 = vld [vmem:[#allocation2] sm:$0xff] }
0x1e45   : > { %5365 = vadd.xlane.f32.xlu0 %v5361_v12 }
0x1e46   : > { %v5362_v17 = vld [vmem:[#allocation2 + $0x8] sm:$0xff] }
0x1e49   : > { %5367 = vadd.xlane.f32.xlu0 %v5362_v17 }
0x1ed2   : > { %v5366_v2 = vpop.xlane.xlu0 %5365 }
0x1ed3   : > { %v5370_v18 = vmul.f32 0.0078125, %v5366_v2 }
0x1ed5   : > { %v5372_v63 = vsub.f32 %v5361_v12, %v5370_v18 }
0x1ed6   : > { %v5368_v5 = vpop.xlane.xlu0 %5367 }
0x1ed7   : > { %v5371_v43 = vmul.f32 0.0078125, %v5368_v5  ;;  %v5374_v49 = vmul.f32 %v5372_v63, %v5372_v63 }
0x1ed9   : > { %v5373_v47 = vsub.f32 %v5362_v17, %v5371_v43  ;;  %5376 = vadd.xlane.f32.xlu1 %v5374_v49 }
0x1edb   : > { %v5375_v4 = vmul.f32 %v5373_v47, %v5373_v47 }
0x1edd   : > { %5378 = vadd.xlane.f32.xlu1 %v5375_v4 }
0x1f66   : > { %v5377_v6 = vpop.xlane.xlu1 %5376 }
0x1f67   : > { %v5380_v60 = vmul.f32 0.0078125, %v5377_v6 }
0x1f69   : > { %v5382_v24 = vadd.f32 1e-05, %v5380_v60 }
0x1f6a   : > { %v5379_v53 = vpop.xlane.xlu1 %5378 }
0x1f6b   : > { %7063 = vrsqrt.f32 %v5382_v24  ;;  %v5381_v58 = vmul.f32 0.0078125, %v5379_v53 }
0x1f6d   : > { %v5383_v22 = vadd.f32 1e-05, %v5381_v58 }
0x1f6f   : > { %7065 = vrsqrt.f32 %v5383_v22 }
0x1f75   : > { %v7064_v14 = vpop.eup %7063 }
0x1f76   : > { %v5386_v30 = vmul.f32 %v7064_v14, %v5372_v63 }
0x1f78   : > { %v5394_v57 = vmul.f32 %v6101_v26, %v5386_v30 }
0x1f79   : > { %v7066_v51 = vpop.eup %7065 }
0x1f7a   : > { %v5402_v36 = vadd.f32 %v6102_v27, %v5394_v57  ;;  %v5387_v7 = vmul.f32 %v7066_v51, %v5373_v47 }
0x1f7c   : > { %5404 = vst [vmem:[#allocation23] sm:$0xff] %v5402_v36  ;;  %v5395_v28 = vmul.f32 %v6101_v26, %v5387_v7 }
0x1f7e   : > { %v5403_v20 = vadd.f32 %v6102_v27, %v5395_v28 }
0x1f80   : > { %5405 = vst [vmem:[#allocation23 + $0x8] sm:$0xff] %v5403_v20 }
0x1f81 PF: > { %s9255_s12 = sld [smem:[#allocation36_spill]]  ;;  %s7521_s4 = smov [#allocation23]  }
0x1f82   : > { %s5415_s15 = sshll.u32 %s7521_s4, 4  ;;  %s5416_s15 = int_to_ptr.vmem [resolvable:$true] %s5415_s15 }
0x1f83   : > { %s7397_s18 = scalar_lea.vmem %s5416_s15, 256  ;;  %p7404_p3 = scmp.lt.s32.totalorder %s5416_s15, %s5416_s15 }
0x1f84   : > { %p7398_p0 = scmp.ne.s32.totalorder %s5416_s15, %s7397_s18  ;;  %p7405_p9 = scmp.lt.s32.totalorder %s7397_s18, %s7397_s18 }
0x1f86   : > { %p7406_p11 = por %p7405_p9, %p7404_p3 }
0x1f87   : > { %p6741_p5 = scmp.eq.s32.totalorder %s9255_s12, 1 }
0x1f89   : > { %p7399_p1 = pnand %p7398_p0, %p6741_p5 }
0x1f8b   : > { %p7400_p13 = pneg %p7399_p1 }
0x1f8d   : > { %p7407_p4 = pnand %p7406_p11, %p7400_p13 }
0x1f8f   : > { %7410 = shalt.err (!%p7407_p4)
}
0x1f90   : > { %s9256_s23 = sld [smem:[#allocation73_spill]] }
0x1f96   : > { %s7411_s8 = scalar_lea.hbm %s9256_s23, 256 }
0x1f97   : > { %p7412_p10 = scmp.ne.s32.totalorder %s9256_s23, %s7411_s8  ;;  %p7417_p8 = scmp.lt.u32.totalorder %s7411_s8, %s9256_s23 }
0x1f99   : > { %p7413_p12 = pnand %p7412_p10, %p6741_p5 }
0x1f9b   : > { %p7414_p2 = pneg %p7413_p12 }
0x1f9d   : > { %p7419_p7 = pnand %p7417_p8, %p7414_p2 }
0x1f9f   : > { %7422 = shalt.err (!%p7419_p7)
}
0x1fa0   : > { %s7522_s6 = smov 128   ;;  %s7523_s5 = smov 8  }
0x1fa1   : > { %6703 = dma.vmem_to_hbm [thread:$0]  (%p6741_p5), %s5416_s15, 256, %s9256_s23, [#allocation7], %s7522_s6, %s7522_s6, %s7523_s5  }
0x1fa2   : > { %7472 = dma.done.wait (%p6741_p5), [#allocation7], 256  }
0x1fa3   : > { %7474 = vsyncadd (%p6741_p5), [#allocation7], 4294967040 }
0x1fa4 PF: > { %s9257_s11 = sld [smem:[#allocation35_spill]]  ;;  %s9258_s8 = sld [smem:[#allocation31_spill]] }
0x1fa5   : > { %s9259_s5 = sld [smem:[#allocation32_spill]]  ;;  %s9260_s9 = sld [smem:[#allocation39_spill]] }
0x1fa6   : > { %s9261_s30 = sld [smem:[#allocation34_spill]]  ;;  %s9262_s3 = sld [smem:[#allocation37_spill]] }
0x1faa   : > { %s57_s6 = sadd.s32 1, %s9257_s11  }
0x1fab   : > { %p54_p6 = scmp.ge.s32.totalorder %s57_s6, 4  }
0x1fad   :  { %56 = sbr.rel (!%p54_p6) target bundleno = 45 (0x2d), region = 347 }
0x1fb4   :  { %5431 = vsyncpa [#allocation6], 1 }
0x1fb5   :  { %5433 = vsyncpa [#allocation6 + $0x1], 1 }
0x1fb6   :  { %5434 = vsyncpa [#allocation9], 1 }
0x1fb7   :  { %5436 = vsyncpa [#allocation9 + $0x1], 1 }
0x1fb8   :  { %5437 = vsyncpa [#allocation12], 1 }
0x1fb9   :  { %5439 = vsyncpa [#allocation12 + $0x1], 1 }
0x1fba   :  { %5440 = vsyncpa [#allocation15], 1 }
0x1fbb   :  { %5442 = vsyncpa [#allocation15 + $0x1], 1 }
0x1fbc   :  { %5443 = vsyncpa [#allocation18], 1 }
0x1fbd   :  { %5445 = vsyncpa [#allocation18 + $0x1], 1 }
0x1fbe   :  { %5446 = vsyncpa [#allocation21], 1 }
0x1fbf   :  { %5448 = vsyncpa [#allocation21 + $0x1], 1 }
0x1fc0   :  { %5449 = vsyncpa [#allocation7], 1 }
0x1fc1   :  { %5451 = vsyncpa [#allocation7 + $0x1], 1 }

</bundles_post_ra>
